<compile_context>
chip_gen: v6e
topology: v6e:2x2x1
jax: 0.10.0
libtpu: 0.0.40
codegen_flags: <defaults>
</compile_context>

<pallas_src>
import jax
import jax.numpy as jnp
from jax.experimental import pallas as pl
from jax.experimental.pallas import tpu as pltpu

EPS = 1e-5          # PyTorch BatchNorm2d default eps
NUM_COL = 5
C1 = 20             # conv1 out-channels per column
C1_PAD = 128        # lane-dense Cout for the fused conv1 (5*20 -> pad to 128)
C2 = 800            # conv2 out-channels
K2_PAD = 512        # conv2 contraction 5*5*20 = 500 -> pad to 512
H1_PAD = 256        # linear1 out-features 150 -> pad to 256 (zero pad, exact)


# ----------------------------- Pallas kernels ------------------------------

def conv1_all_columns_kernel(p_ref, w_ref, b_ref, g_ref, bt_ref, o_ref):
    # p: [M, 16] bf16   w: [16, 128] bf16   b/g/bt: [1, 128] f32   o: [M, 128] f32
    y = jnp.dot(p_ref[...], w_ref[...], preferred_element_type=jnp.float32)
    y = jnp.tanh(y + b_ref[...])
    # Training-mode BatchNorm2d: per-channel batch stats over (N,H,W) == the M
    # rows; single pass (sum / sum of squares), biased variance.
    m = y.shape[0]
    mean = jnp.sum(y, axis=0, keepdims=True) * (1.0 / m)
    ex2 = jnp.sum(y * y, axis=0, keepdims=True) * (1.0 / m)
    var = jnp.maximum(ex2 - mean * mean, 0.0)
    y = (y - mean) * jax.lax.rsqrt(var + EPS) * g_ref[...] + bt_ref[...]
    # relu(maxpool(x)) == maxpool(relu(x)): fold the ReLU in here, pool outside.
    o_ref[...] = jnp.maximum(y, 0.0)


def column_tail_kernel(p2_ref, w2_ref, b2_ref, g2_ref, bt2_ref,
                       lw1_ref, lb1_ref, lw2_ref, lb2_ref, o_ref):
    # Per-column tail (grid axis = column):
    #   p2: [1, N*16, 512] bf16      w2: [1, 512, 800] bf16
    #   b2/g2/bt2: [1, 1, 800] f32
    #   lw1: [1, 800, 256] bf16      lb1: [1, 1, 256] f32
    #   lw2: [1, 256, 10]  bf16      lb2: [1, 1, 10]  f32
    #   o:   [1, N, 10] f32
    y = jnp.dot(p2_ref[0], w2_ref[0], preferred_element_type=jnp.float32)
    y = jnp.tanh(y + b2_ref[0])                                  # [N*16, 800]
    m = y.shape[0]
    mean = jnp.sum(y, axis=0, keepdims=True) * (1.0 / m)
    ex2 = jnp.sum(y * y, axis=0, keepdims=True) * (1.0 / m)
    var = jnp.maximum(ex2 - mean * mean, 0.0)
    y = (y - mean) * jax.lax.rsqrt(var + EPS) * g2_ref[0] + bt2_ref[0]

    # MaxPool2d(3,3 stride 3) on the 4x4 spatial map -> single top-left 3x3
    # window: flattened spatial rows {0,1,2, 4,5,6, 8,9,10} per batch element.
    # (Hard-coded for the 20x20 input size; asserted in the wrapper.)
    n_batch = y.shape[0] // 16
    pooled_rows = []
    for n in range(n_batch):
        b0 = n * 16
        r = jnp.maximum(jnp.maximum(y[b0 + 0:b0 + 3, :], y[b0 + 4:b0 + 7, :]),
                        y[b0 + 8:b0 + 11, :])                    # [3, 800]
        pooled_rows.append(jnp.max(r, axis=0, keepdims=True))    # [1, 800]
    pooled = jnp.maximum(jnp.concatenate(pooled_rows, axis=0), 0.0)   # [N, 800]

    h = jnp.dot(pooled.astype(jnp.bfloat16), lw1_ref[0],
                preferred_element_type=jnp.float32) + lb1_ref[0]
    h = jnp.tanh(h)                                              # [N, 256]
    logits = jnp.dot(h.astype(jnp.bfloat16), lw2_ref[0],
                     preferred_element_type=jnp.float32) + lb2_ref[0]   # [N, 10]
    mx = jnp.max(logits, axis=-1, keepdims=True)
    e = jnp.exp(logits - mx)
    o_ref[0] = e / jnp.sum(e, axis=-1, keepdims=True)


# ------------------------------ kernel wrappers -----------------------------

def _vmem():
    return pl.BlockSpec(memory_space=pltpu.MemorySpace.VMEM)


def conv1_all_columns(p1, w, b, g, bt):
    M = p1.shape[0]
    C = w.shape[1]
    return pl.pallas_call(
        conv1_all_columns_kernel,
        out_shape=jax.ShapeDtypeStruct((M, C), jnp.float32),
        in_specs=[_vmem() for _ in range(5)],
        out_specs=_vmem(),
    )(p1, w, b, g, bt)


def column_tails(p2, w2, b2, g2, bt2, lw1, lb1, lw2, lb2):
    ncol, M2, K2 = p2.shape
    N = M2 // 16
    c2 = w2.shape[2]
    h1 = lw1.shape[2]
    return pl.pallas_call(
        column_tail_kernel,
        out_shape=jax.ShapeDtypeStruct((ncol, N, 10), jnp.float32),
        grid=(ncol,),
        in_specs=[
            pl.BlockSpec((1, M2, K2), lambda c: (c, 0, 0)),   # p2
            pl.BlockSpec((1, K2, c2), lambda c: (c, 0, 0)),   # w2
            pl.BlockSpec((1, 1, c2), lambda c: (c, 0, 0)),    # b2
            pl.BlockSpec((1, 1, c2), lambda c: (c, 0, 0)),    # g2
            pl.BlockSpec((1, 1, c2), lambda c: (c, 0, 0)),    # bt2
            pl.BlockSpec((1, c2, h1), lambda c: (c, 0, 0)),   # lw1
            pl.BlockSpec((1, 1, h1), lambda c: (c, 0, 0)),    # lb1
            pl.BlockSpec((1, h1, 10), lambda c: (c, 0, 0)),   # lw2
            pl.BlockSpec((1, 1, 10), lambda c: (c, 0, 0)),    # lb2
        ],
        out_specs=pl.BlockSpec((1, N, 10), lambda c: (c, 0, 0)),
        compiler_params=pltpu.CompilerParams(
            dimension_semantics=("parallel",)),
    )(p2, w2, b2, g2, bt2, lw1, lb1, lw2, lb2)


# --------------------------------- JAX glue ---------------------------------

def im2col_nhwc(x, kh, kw):
    """x: [..., H, W, C] -> ([..., OH, OW, kh*kw*C], (OH, OW)); K order (kh,kw,cin)."""
    H, W = x.shape[-3], x.shape[-2]
    oh, ow = H - kh + 1, W - kw + 1
    cols = []
    for i in range(kh):
        for j in range(kw):
            cols.append(x[..., i:i + oh, j:j + ow, :])
    return jnp.concatenate(cols, axis=-1), (oh, ow)


def my_model_forward(x_nchw, params):
    """x_nchw: [N,1,20,20]; all 5 column input shapes == (20,20)."""
    x = jnp.transpose(x_nchw.astype(jnp.float32), (0, 2, 3, 1))   # NHWC
    N, H, W, _ = x.shape
    assert (H, W) == (20, 20), "kernel hard-codes the 20x20 -> 4x4 -> 1x1 pipeline"

    # conv1 for all 5 columns at once (shared input patches, concatenated weights)
    p1, (oh1, ow1) = im2col_nhwc(x, 4, 4)                         # [N,17,17,16]
    p1 = p1.reshape(N * oh1 * ow1, 16).astype(jnp.bfloat16)
    y1 = conv1_all_columns(p1, params["w1"], params["b1"],
                           params["g1"], params["bt1"])           # [578, 128] f32
    y1 = y1[:, :NUM_COL * C1].reshape(N, oh1, ow1, NUM_COL, C1)

    # MaxPool2d(2,2) (ReLU already folded into the kernel; it commutes)
    Hc, Wc = (oh1 // 2) * 2, (ow1 // 2) * 2
    y1 = y1[:, :Hc, :Wc].reshape(N, Hc // 2, 2, Wc // 2, 2, NUM_COL, C1)
    y1 = jnp.max(y1, axis=(2, 4))                                 # [N,8,8,5,20]
    y1 = jnp.transpose(y1, (3, 0, 1, 2, 4))                       # [5,N,8,8,20]

    # per-column im2col for conv2 (5x5), pad K 500 -> 512, cast to bf16
    p2, (oh2, ow2) = im2col_nhwc(y1, 5, 5)                        # [5,N,4,4,500]
    p2 = p2.reshape(NUM_COL, N * oh2 * ow2, 5 * 5 * C1)
    p2 = jnp.pad(p2, ((0, 0), (0, 0), (0, K2_PAD - 5 * 5 * C1))).astype(jnp.bfloat16)

    # fused per-column tail: conv2 + tanh + BN + pool(3,3) + relu + MLP + softmax
    probs = column_tails(p2, params["w2"], params["b2"], params["g2"], params["bt2"],
                         params["lw1"], params["lb1"], params["lw2"], params["lb2"])
    return jnp.mean(probs, axis=0)                                # [N, 10]


# ------------------------------ parameter setup ------------------------------

def init_column_params(key):
    ks = jax.random.split(key, 8)

    def u(k, shape, fan_in):
        bound = 1.0 / jnp.sqrt(jnp.float32(fan_in))
        return jax.random.uniform(k, shape, jnp.float32, -bound, bound)

    return dict(
        w1=u(ks[0], (20, 1, 4, 4), 16),       # Conv2d weight [Cout, Cin, KH, KW]
        b1=u(ks[1], (20,), 16),
        w2=u(ks[2], (800, 20, 5, 5), 500),
        b2=u(ks[3], (800,), 500),
        lw1=u(ks[4], (150, 800), 800),        # Linear weight [out, in]
        lb1=u(ks[5], (150,), 800),
        lw2=u(ks[6], (10, 150), 150),
        lb2=u(ks[7], (10,), 150),
    )


def pack_params(cols):
    # conv1: (Cout,Cin,KH,KW) -> (kh,kw,cin)xCout per column, concat Cout -> pad 128
    w1 = jnp.concatenate(
        [jnp.transpose(c["w1"], (2, 3, 1, 0)).reshape(16, C1) for c in cols], axis=1)
    w1 = jnp.pad(w1, ((0, 0), (0, C1_PAD - NUM_COL * C1))).astype(jnp.bfloat16)
    b1 = jnp.pad(jnp.concatenate([c["b1"] for c in cols]),
                 (0, C1_PAD - NUM_COL * C1))[None]                       # [1,128]
    g1 = jnp.ones((1, C1_PAD), jnp.float32)
    bt1 = jnp.zeros((1, C1_PAD), jnp.float32)

    # conv2: [500,800] per column, pad K -> 512, stack -> [5,512,800] bf16
    w2 = jnp.stack([jnp.transpose(c["w2"], (2, 3, 1, 0)).reshape(500, C2)
                    for c in cols])
    w2 = jnp.pad(w2, ((0, 0), (0, K2_PAD - 500), (0, 0))).astype(jnp.bfloat16)
    b2 = jnp.stack([c["b2"][None] for c in cols])                        # [5,1,800]
    g2 = jnp.ones((NUM_COL, 1, C2), jnp.float32)
    bt2 = jnp.zeros((NUM_COL, 1, C2), jnp.float32)

    # linear1: [800,150] -> pad out-dim to 256 (zeros -> tanh(0)=0, exact)
    lw1 = jnp.stack([c["lw1"].T for c in cols])
    lw1 = jnp.pad(lw1, ((0, 0), (0, 0), (0, H1_PAD - 150))).astype(jnp.bfloat16)
    lb1 = jnp.pad(jnp.stack([c["lb1"][None] for c in cols]),
                  ((0, 0), (0, 0), (0, H1_PAD - 150)))                   # [5,1,256]

    # linear2: columns 4 and 5 reuse col3_linear2 (0-based column 2); pad K -> 256
    lw2 = jnp.stack([cols[c if c < 3 else 2]["lw2"].T for c in range(NUM_COL)])
    lw2 = jnp.pad(lw2, ((0, 0), (0, H1_PAD - 150), (0, 0))).astype(jnp.bfloat16)
    lb2 = jnp.stack([cols[c if c < 3 else 2]["lb2"][None] for c in range(NUM_COL)])

    return dict(w1=w1, b1=b1, g1=g1, bt1=bt1,
                w2=w2, b2=b2, g2=g2, bt2=bt2,
                lw1=lw1, lb1=lb1, lw2=lw2, lb2=lb2)


# ----------------------------------- main -----------------------------------

if __name__ == "__main__":
    key = jax.random.PRNGKey(0)
    k_in, k_par = jax.random.split(key)

    # Input: batch=2, single channel, 20x20 (all column input shapes = (20,20),
    # which makes first_dense_layer_dimesion = 800 per column).
    x = jax.random.uniform(k_in, (2, 1, 20, 20), jnp.float32)

    col_keys = jax.random.split(k_par, NUM_COL)
    cols = [init_column_params(col_keys[c]) for c in range(NUM_COL)]
    params = pack_params(cols)

    fwd = jax.jit(my_model_forward)
    out = jax.block_until_ready(fwd(x, params))

    assert out.shape == (2, 10)
    assert bool(jnp.all(jnp.isfinite(out)))
    # each softmax sums to 1 (exact division), so the average of 5 also sums to 1
    assert bool(jnp.allclose(jnp.sum(out, axis=-1), 1.0, atol=1e-4))
    print("KERNEL_OK")
</pallas_src>

<mosaic_0001>
module attributes {stable_mosaic.version = 11 : i64} {
  func.func @conv1_all_columns_kernel(%arg0: memref<578x16xbf16, #tpu.memory_space<vmem>>, %arg1: memref<16x128xbf16, #tpu.memory_space<vmem>>, %arg2: memref<1x128xf32, #tpu.memory_space<vmem>>, %arg3: memref<1x128xf32, #tpu.memory_space<vmem>>, %arg4: memref<1x128xf32, #tpu.memory_space<vmem>>, %arg5: memref<578x128xf32, #tpu.memory_space<vmem>>) attributes {dimension_semantics = [], scalar_prefetch = 0 : i64, scratch_operands = 0 : i64, tpu.core_type = #tpu.core_type<tc>} {
    %c0 = arith.constant 0 : index
    %c0_0 = arith.constant 0 : index
    %0 = vector.load %arg0[%c0, %c0_0] : memref<578x16xbf16, #tpu.memory_space<vmem>>, vector<578x16xbf16>
    %c0_1 = arith.constant 0 : index
    %c0_2 = arith.constant 0 : index
    %1 = vector.load %arg1[%c0_1, %c0_2] : memref<16x128xbf16, #tpu.memory_space<vmem>>, vector<16x128xbf16>
    %cst = arith.constant dense<0.000000e+00> : vector<578x128xf32>
    %2 = tpu.matmul %0, %1, %cst {dimension_numbers = #tpu.dot_dimension_numbers<[1], [0], [0], [1], [0, 0, 1, 1], [], []>} : vector<578x16xbf16>, vector<16x128xbf16>, vector<578x128xf32> -> vector<578x128xf32>
    %c0_3 = arith.constant 0 : index
    %c0_4 = arith.constant 0 : index
    %3 = vector.load %arg2[%c0_3, %c0_4] : memref<1x128xf32, #tpu.memory_space<vmem>>, vector<1x128xf32>
    %4 = vector.broadcast %3 : vector<1x128xf32> to vector<578x128xf32>
    %5 = arith.addf %2, %4 : vector<578x128xf32>
    %6 = math.tanh %5 : vector<578x128xf32>
    %cst_5 = arith.constant dense<0.000000e+00> : vector<128xf32>
    %7 = vector.multi_reduction <add>, %6, %cst_5 [0] : vector<578x128xf32> to vector<128xf32>
    %8 = vector.shape_cast %7 : vector<128xf32> to vector<1x128xf32>
    %cst_6 = arith.constant 0.00173010386 : f32
    %9 = vector.broadcast %cst_6 : f32 to vector<1x128xf32>
    %10 = arith.mulf %8, %9 : vector<1x128xf32>
    %11 = arith.mulf %6, %6 : vector<578x128xf32>
    %cst_7 = arith.constant dense<0.000000e+00> : vector<128xf32>
    %12 = vector.multi_reduction <add>, %11, %cst_7 [0] : vector<578x128xf32> to vector<128xf32>
    %13 = vector.shape_cast %12 : vector<128xf32> to vector<1x128xf32>
    %cst_8 = arith.constant 0.00173010386 : f32
    %14 = vector.broadcast %cst_8 : f32 to vector<1x128xf32>
    %15 = arith.mulf %13, %14 : vector<1x128xf32>
    %16 = arith.mulf %10, %10 : vector<1x128xf32>
    %17 = arith.subf %15, %16 : vector<1x128xf32>
    %cst_9 = arith.constant 0.000000e+00 : f32
    %18 = vector.broadcast %cst_9 : f32 to vector<1x128xf32>
    %19 = arith.maximumf %17, %18 : vector<1x128xf32>
    %20 = vector.broadcast %10 : vector<1x128xf32> to vector<578x128xf32>
    %21 = arith.subf %6, %20 : vector<578x128xf32>
    %cst_10 = arith.constant 9.99999974E-6 : f32
    %22 = vector.broadcast %cst_10 : f32 to vector<1x128xf32>
    %23 = arith.addf %19, %22 : vector<1x128xf32>
    %24 = math.rsqrt %23 : vector<1x128xf32>
    %25 = vector.broadcast %24 : vector<1x128xf32> to vector<578x128xf32>
    %26 = arith.mulf %21, %25 : vector<578x128xf32>
    %c0_11 = arith.constant 0 : index
    %c0_12 = arith.constant 0 : index
    %27 = vector.load %arg3[%c0_11, %c0_12] : memref<1x128xf32, #tpu.memory_space<vmem>>, vector<1x128xf32>
    %28 = vector.broadcast %27 : vector<1x128xf32> to vector<578x128xf32>
    %29 = arith.mulf %26, %28 : vector<578x128xf32>
    %c0_13 = arith.constant 0 : index
    %c0_14 = arith.constant 0 : index
    %30 = vector.load %arg4[%c0_13, %c0_14] : memref<1x128xf32, #tpu.memory_space<vmem>>, vector<1x128xf32>
    %31 = vector.broadcast %30 : vector<1x128xf32> to vector<578x128xf32>
    %32 = arith.addf %29, %31 : vector<578x128xf32>
    %cst_15 = arith.constant 0.000000e+00 : f32
    %33 = vector.broadcast %cst_15 : f32 to vector<578x128xf32>
    %34 = arith.maximumf %32, %33 : vector<578x128xf32>
    %c0_16 = arith.constant 0 : index
    %c0_17 = arith.constant 0 : index
    %35 = vector.load %arg5[%c0_16, %c0_17] : memref<578x128xf32, #tpu.memory_space<vmem>>, vector<578x128xf32>
    tpu.vector_store %arg5[%c0_16, %c0_17], %34 {strides = array<i32>} : memref<578x128xf32, #tpu.memory_space<vmem>>, vector<578x128xf32>,
    return
  }
}

module attributes {stable_mosaic.version = 11 : i64} {
  func.func @column_tail_kernel(%arg0: i32, %arg1: memref<1x32x512xbf16, #tpu.memory_space<vmem>>, %arg2: memref<1x512x800xbf16, #tpu.memory_space<vmem>>, %arg3: memref<1x1x800xf32, #tpu.memory_space<vmem>>, %arg4: memref<1x1x800xf32, #tpu.memory_space<vmem>>, %arg5: memref<1x1x800xf32, #tpu.memory_space<vmem>>, %arg6: memref<1x800x256xbf16, #tpu.memory_space<vmem>>, %arg7: memref<1x1x256xf32, #tpu.memory_space<vmem>>, %arg8: memref<1x256x10xbf16, #tpu.memory_space<vmem>>, %arg9: memref<1x1x10xf32, #tpu.memory_space<vmem>>, %arg10: memref<1x2x10xf32, #tpu.memory_space<vmem>>) attributes {dimension_semantics = [#tpu.dimension_semantics<parallel>], iteration_bounds = array<i64: 5>, scalar_prefetch = 0 : i64, scratch_operands = 0 : i64, tpu.core_type = #tpu.core_type<tc>, window_params = [{transform_indices = @transform_0, window_bounds = array<i64: 1, 32, 512>}, {transform_indices = @transform_1, window_bounds = array<i64: 1, 512, 800>}, {transform_indices = @transform_2, window_bounds = array<i64: 1, 1, 800>}, {transform_indices = @transform_3, window_bounds = array<i64: 1, 1, 800>}, {transform_indices = @transform_4, window_bounds = array<i64: 1, 1, 800>}, {transform_indices = @transform_5, window_bounds = array<i64: 1, 800, 256>}, {transform_indices = @transform_6, window_bounds = array<i64: 1, 1, 256>}, {transform_indices = @transform_7, window_bounds = array<i64: 1, 256, 10>}, {transform_indices = @transform_8, window_bounds = array<i64: 1, 1, 10>}, {transform_indices = @transform_9, window_bounds = array<i64: 1, 2, 10>}]} {
    %c0 = arith.constant 0 : index
    %c0_0 = arith.constant 0 : index
    %c0_1 = arith.constant 0 : index
    %0 = vector.load %arg1[%c0, %c0_0, %c0_1] : memref<1x32x512xbf16, #tpu.memory_space<vmem>>, vector<1x32x512xbf16>
    %1 = vector.shape_cast %0 : vector<1x32x512xbf16> to vector<32x512xbf16>
    %c0_2 = arith.constant 0 : index
    %c0_3 = arith.constant 0 : index
    %c0_4 = arith.constant 0 : index
    %2 = vector.load %arg2[%c0_2, %c0_3, %c0_4] : memref<1x512x800xbf16, #tpu.memory_space<vmem>>, vector<1x512x800xbf16>
    %3 = vector.shape_cast %2 : vector<1x512x800xbf16> to vector<512x800xbf16>
    %cst = arith.constant dense<0.000000e+00> : vector<32x800xf32>
    %4 = tpu.matmul %1, %3, %cst {dimension_numbers = #tpu.dot_dimension_numbers<[1], [0], [0], [1], [0, 0, 1, 1], [], []>} : vector<32x512xbf16>, vector<512x800xbf16>, vector<32x800xf32> -> vector<32x800xf32>
    %c0_5 = arith.constant 0 : index
    %c0_6 = arith.constant 0 : index
    %c0_7 = arith.constant 0 : index
    %5 = vector.load %arg3[%c0_5, %c0_6, %c0_7] : memref<1x1x800xf32, #tpu.memory_space<vmem>>, vector<1x1x800xf32>
    %6 = vector.shape_cast %5 : vector<1x1x800xf32> to vector<1x800xf32>
    %7 = vector.broadcast %6 : vector<1x800xf32> to vector<32x800xf32>
    %8 = arith.addf %4, %7 : vector<32x800xf32>
    %9 = math.tanh %8 : vector<32x800xf32>
    %cst_8 = arith.constant dense<0.000000e+00> : vector<800xf32>
    %10 = vector.multi_reduction <add>, %9, %cst_8 [0] : vector<32x800xf32> to vector<800xf32>
    %11 = vector.shape_cast %10 : vector<800xf32> to vector<1x800xf32>
    %cst_9 = arith.constant 3.125000e-02 : f32
    %12 = vector.broadcast %cst_9 : f32 to vector<1x800xf32>
    %13 = arith.mulf %11, %12 : vector<1x800xf32>
    %14 = arith.mulf %9, %9 : vector<32x800xf32>
    %cst_10 = arith.constant dense<0.000000e+00> : vector<800xf32>
    %15 = vector.multi_reduction <add>, %14, %cst_10 [0] : vector<32x800xf32> to vector<800xf32>
    %16 = vector.shape_cast %15 : vector<800xf32> to vector<1x800xf32>
    %cst_11 = arith.constant 3.125000e-02 : f32
    %17 = vector.broadcast %cst_11 : f32 to vector<1x800xf32>
    %18 = arith.mulf %16, %17 : vector<1x800xf32>
    %19 = arith.mulf %13, %13 : vector<1x800xf32>
    %20 = arith.subf %18, %19 : vector<1x800xf32>
    %cst_12 = arith.constant 0.000000e+00 : f32
    %21 = vector.broadcast %cst_12 : f32 to vector<1x800xf32>
    %22 = arith.maximumf %20, %21 : vector<1x800xf32>
    %23 = vector.broadcast %13 : vector<1x800xf32> to vector<32x800xf32>
    %24 = arith.subf %9, %23 : vector<32x800xf32>
    %cst_13 = arith.constant 9.99999974E-6 : f32
    %25 = vector.broadcast %cst_13 : f32 to vector<1x800xf32>
    %26 = arith.addf %22, %25 : vector<1x800xf32>
    %27 = math.rsqrt %26 : vector<1x800xf32>
    %28 = vector.broadcast %27 : vector<1x800xf32> to vector<32x800xf32>
    %29 = arith.mulf %24, %28 : vector<32x800xf32>
    %c0_14 = arith.constant 0 : index
    %c0_15 = arith.constant 0 : index
    %c0_16 = arith.constant 0 : index
    %30 = vector.load %arg4[%c0_14, %c0_15, %c0_16] : memref<1x1x800xf32, #tpu.memory_space<vmem>>, vector<1x1x800xf32>
    %31 = vector.shape_cast %30 : vector<1x1x800xf32> to vector<1x800xf32>
    %32 = vector.broadcast %31 : vector<1x800xf32> to vector<32x800xf32>
    %33 = arith.mulf %29, %32 : vector<32x800xf32>
    %c0_17 = arith.constant 0 : index
    %c0_18 = arith.constant 0 : index
    %c0_19 = arith.constant 0 : index
    %34 = vector.load %arg5[%c0_17, %c0_18, %c0_19] : memref<1x1x800xf32, #tpu.memory_space<vmem>>, vector<1x1x800xf32>
    %35 = vector.shape_cast %34 : vector<1x1x800xf32> to vector<1x800xf32>
    %36 = vector.broadcast %35 : vector<1x800xf32> to vector<32x800xf32>
    %37 = arith.addf %33, %36 : vector<32x800xf32>
    %38 = vector.extract_strided_slice %37 {offsets = [0, 0], sizes = [3, 800], strides = [1, 1]} : vector<32x800xf32> to vector<3x800xf32>
    %39 = vector.extract_strided_slice %37 {offsets = [4, 0], sizes = [3, 800], strides = [1, 1]} : vector<32x800xf32> to vector<3x800xf32>
    %40 = arith.maximumf %38, %39 : vector<3x800xf32>
    %41 = vector.extract_strided_slice %37 {offsets = [8, 0], sizes = [3, 800], strides = [1, 1]} : vector<32x800xf32> to vector<3x800xf32>
    %42 = arith.maximumf %40, %41 : vector<3x800xf32>
    %cst_20 = arith.constant dense<0xFF800000> : vector<800xf32>
    %43 = vector.multi_reduction <maximumf>, %42, %cst_20 [0] : vector<3x800xf32> to vector<800xf32>
    %44 = vector.shape_cast %43 : vector<800xf32> to vector<1x800xf32>
    %45 = vector.extract_strided_slice %37 {offsets = [16, 0], sizes = [3, 800], strides = [1, 1]} : vector<32x800xf32> to vector<3x800xf32>
    %46 = vector.extract_strided_slice %37 {offsets = [20, 0], sizes = [3, 800], strides = [1, 1]} : vector<32x800xf32> to vector<3x800xf32>
    %47 = arith.maximumf %45, %46 : vector<3x800xf32>
    %48 = vector.extract_strided_slice %37 {offsets = [24, 0], sizes = [3, 800], strides = [1, 1]} : vector<32x800xf32> to vector<3x800xf32>
    %49 = arith.maximumf %47, %48 : vector<3x800xf32>
    %cst_21 = arith.constant dense<0xFF800000> : vector<800xf32>
    %50 = vector.multi_reduction <maximumf>, %49, %cst_21 [0] : vector<3x800xf32> to vector<800xf32>
    %51 = vector.shape_cast %50 : vector<800xf32> to vector<1x800xf32>
    %52 = tpu.concatenate %44, %51 in 0 : vector<1x800xf32>, vector<1x800xf32> -> vector<2x800xf32>
    %cst_22 = arith.constant 0.000000e+00 : f32
    %53 = vector.broadcast %cst_22 : f32 to vector<2x800xf32>
    %54 = arith.maximumf %52, %53 : vector<2x800xf32>
    %55 = arith.truncf %54 : vector<2x800xf32> to vector<2x800xbf16>
    %c0_23 = arith.constant 0 : index
    %c0_24 = arith.constant 0 : index
    %c0_25 = arith.constant 0 : index
    %56 = vector.load %arg6[%c0_23, %c0_24, %c0_25] : memref<1x800x256xbf16, #tpu.memory_space<vmem>>, vector<1x800x256xbf16>
    %57 = vector.shape_cast %56 : vector<1x800x256xbf16> to vector<800x256xbf16>
    %cst_26 = arith.constant dense<0.000000e+00> : vector<2x256xf32>
    %58 = tpu.matmul %55, %57, %cst_26 {dimension_numbers = #tpu.dot_dimension_numbers<[1], [0], [0], [1], [0, 0, 1, 1], [], []>} : vector<2x800xbf16>, vector<800x256xbf16>, vector<2x256xf32> -> vector<2x256xf32>
    %c0_27 = arith.constant 0 : index
    %c0_28 = arith.constant 0 : index
    %c0_29 = arith.constant 0 : index
    %59 = vector.load %arg7[%c0_27, %c0_28, %c0_29] : memref<1x1x256xf32, #tpu.memory_space<vmem>>, vector<1x1x256xf32>
    %60 = vector.shape_cast %59 : vector<1x1x256xf32> to vector<1x256xf32>
    %61 = vector.broadcast %60 : vector<1x256xf32> to vector<2x256xf32>
    %62 = arith.addf %58, %61 : vector<2x256xf32>
    %63 = math.tanh %62 : vector<2x256xf32>
    %64 = arith.truncf %63 : vector<2x256xf32> to vector<2x256xbf16>
    %c0_30 = arith.constant 0 : index
    %c0_31 = arith.constant 0 : index
    %c0_32 = arith.constant 0 : index
    %65 = vector.load %arg8[%c0_30, %c0_31, %c0_32] : memref<1x256x10xbf16, #tpu.memory_space<vmem>>, vector<1x256x10xbf16>
    %66 = vector.shape_cast %65 : vector<1x256x10xbf16> to vector<256x10xbf16>
    %cst_33 = arith.constant dense<0.000000e+00> : vector<2x10xf32>
    %67 = tpu.matmul %64, %66, %cst_33 {dimension_numbers = #tpu.dot_dimension_numbers<[1], [0], [0], [1], [0, 0, 1, 1], [], []>} : vector<2x256xbf16>, vector<256x10xbf16>, vector<2x10xf32> -> vector<2x10xf32>
    %c0_34 = arith.constant 0 : index
    %c0_35 = arith.constant 0 : index
    %c0_36 = arith.constant 0 : index
    %68 = vector.load %arg9[%c0_34, %c0_35, %c0_36] : memref<1x1x10xf32, #tpu.memory_space<vmem>>, vector<1x1x10xf32>
    %69 = vector.shape_cast %68 : vector<1x1x10xf32> to vector<1x10xf32>
    %70 = vector.broadcast %69 : vector<1x10xf32> to vector<2x10xf32>
    %71 = arith.addf %67, %70 : vector<2x10xf32>
    %cst_37 = arith.constant dense<0xFF800000> : vector<2xf32>
    %72 = vector.multi_reduction <maximumf>, %71, %cst_37 [1] : vector<2x10xf32> to vector<2xf32>
    %73 = vector.shape_cast %72 : vector<2xf32> to vector<2x1xf32>
    %74 = vector.broadcast %73 : vector<2x1xf32> to vector<2x10xf32>
    %75 = arith.subf %71, %74 : vector<2x10xf32>
    %76 = math.exp %75 : vector<2x10xf32>
    %cst_38 = arith.constant dense<0.000000e+00> : vector<2xf32>
    %77 = vector.multi_reduction <add>, %76, %cst_38 [1] : vector<2x10xf32> to vector<2xf32>
    %78 = vector.shape_cast %77 : vector<2xf32> to vector<2x1xf32>
    %79 = vector.broadcast %78 : vector<2x1xf32> to vector<2x10xf32>
    %80 = arith.divf %76, %79 : vector<2x10xf32>
    %c0_39 = arith.constant 0 : index
    %c0_40 = arith.constant 0 : index
    %c0_41 = arith.constant 0 : index
    %81 = vector.load %arg10[%c0_39, %c0_40, %c0_41] : memref<1x2x10xf32, #tpu.memory_space<vmem>>, vector<1x2x10xf32>
    %82 = vector.shape_cast %81 : vector<1x2x10xf32> to vector<2x10xf32>
    %83 = vector.shape_cast %80 : vector<2x10xf32> to vector<1x2x10xf32>
    tpu.vector_store %arg10[%c0_39, %c0_40, %c0_41], %83 {strides = array<i32>} : memref<1x2x10xf32, #tpu.memory_space<vmem>>, vector<1x2x10xf32>,
    return
  }
  func.func @transform_0(%arg0: i32) -> (i32, i32, i32) {
    %c0_i32 = arith.constant 0 : i32
    %c0_i32_0 = arith.constant 0 : i32
    %c0_i32_1 = arith.constant 0 : i32
    return %arg0, %c0_i32, %c0_i32_0 : i32, i32, i32
  }
  func.func @transform_1(%arg0: i32) -> (i32, i32, i32) {
    %c0_i32 = arith.constant 0 : i32
    %c0_i32_0 = arith.constant 0 : i32
    %c0_i32_1 = arith.constant 0 : i32
    return %arg0, %c0_i32, %c0_i32_0 : i32, i32, i32
  }
  func.func @transform_2(%arg0: i32) -> (i32, i32, i32) {
    %c0_i32 = arith.constant 0 : i32
    %c0_i32_0 = arith.constant 0 : i32
    %c0_i32_1 = arith.constant 0 : i32
    return %arg0, %c0_i32, %c0_i32_0 : i32, i32, i32
  }
  func.func @transform_3(%arg0: i32) -> (i32, i32, i32) {
    %c0_i32 = arith.constant 0 : i32
    %c0_i32_0 = arith.constant 0 : i32
    %c0_i32_1 = arith.constant 0 : i32
    return %arg0, %c0_i32, %c0_i32_0 : i32, i32, i32
  }
  func.func @transform_4(%arg0: i32) -> (i32, i32, i32) {
    %c0_i32 = arith.constant 0 : i32
    %c0_i32_0 = arith.constant 0 : i32
    %c0_i32_1 = arith.constant 0 : i32
    return %arg0, %c0_i32, %c0_i32_0 : i32, i32, i32
  }
  func.func @transform_5(%arg0: i32) -> (i32, i32, i32) {
    %c0_i32 = arith.constant 0 : i32
    %c0_i32_0 = arith.constant 0 : i32
    %c0_i32_1 = arith.constant 0 : i32
    return %arg0, %c0_i32, %c0_i32_0 : i32, i32, i32
  }
  func.func @transform_6(%arg0: i32) -> (i32, i32, i32) {
    %c0_i32 = arith.constant 0 : i32
    %c0_i32_0 = arith.constant 0 : i32
    %c0_i32_1 = arith.constant 0 : i32
    return %arg0, %c0_i32, %c0_i32_0 : i32, i32, i32
  }
  func.func @transform_7(%arg0: i32) -> (i32, i32, i32) {
    %c0_i32 = arith.constant 0 : i32
    %c0_i32_0 = arith.constant 0 : i32
    %c0_i32_1 = arith.constant 0 : i32
    return %arg0, %c0_i32, %c0_i32_0 : i32, i32, i32
  }
  func.func @transform_8(%arg0: i32) -> (i32, i32, i32) {
    %c0_i32 = arith.constant 0 : i32
    %c0_i32_0 = arith.constant 0 : i32
    %c0_i32_1 = arith.constant 0 : i32
    return %arg0, %c0_i32, %c0_i32_0 : i32, i32, i32
  }
  func.func @transform_9(%arg0: i32) -> (i32, i32, i32) {
    %c0_i32 = arith.constant 0 : i32
    %c0_i32_0 = arith.constant 0 : i32
    %c0_i32_1 = arith.constant 0 : i32
    return %arg0, %c0_i32, %c0_i32_0 : i32, i32, i32
  }
}

</mosaic_0001>

<bundles_post_ra>
// kernel: my_model_forward.2
= control target key start
LH: loop header
LB: loop body
LE: loop exit
PB: predicated region body
PF: predicated region fallthrough
CT: control target
= control target key end

     0   :  { %10 = vsyncpa [#allocation3], 0  ;;  %s4470_s0 = inlined_call_operand.vmem [shape: bf16[578,16], index: 0, kind: input, shape index: {}]   ;;  %s4471_s1 = inlined_call_operand.hbm [shape: bf16[16,128], index: 1, kind: input, shape index: {}]   ;;  %s4472_s2 = inlined_call_operand.hbm [shape: f32[1,128], index: 2, kind: input, shape index: {}]   ;;  %s4473_s3 = inlined_call_operand.hbm [shape: f32[1,128], index: 3, kind: input, shape index: {}]   ;;  %s4474_s4 = inlined_call_operand.hbm [shape: f32[1,128], index: 4, kind: input, shape index: {}]   ;;  %s4475_s5 = inlined_call_operand.vmem [shape: f32[578,128], index: 5, kind: output, shape index: {}]  }
   0x1   :  { %11 = vsyncpa [#allocation5], 0 }
   0x2   :  { %12 = vsyncpa [#allocation8], 0  ;;  %s2100_s18 = smov [#allocation4]   ;;  %s2101_s20 = smov [#allocation2]  }
   0x3   :  { %s33_s19 = sshll.u32 %s2100_s18, 4  ;;  %s20_s21 = sshll.u32 %s2101_s20, 4  ;;  %s34_s19 = int_to_ptr.vmem [resolvable:$true] %s33_s19  ;;  %s21_s21 = int_to_ptr.vmem [resolvable:$true] %s20_s21 }
   0x4   :  { %s2022_s22 = scalar_lea.vmem %s34_s19, 16  ;;  %s2026_s23 = scalar_lea.vmem %s34_s19, 32 }
   0x5   :  { %p2023_p0 = scmp.ne.s32.totalorder %s34_s19, %s2022_s22  ;;  %p2027_p1 = scmp.lt.s32.totalorder %s34_s19, %s34_s19 }
   0x6   :  { %p2028_p2 = scmp.lt.s32.totalorder %s2026_s23, %s2022_s22 }
   0x8   :  { %p2029_p3 = por %p2028_p2, %p2027_p1 }
   0xa   :  { %p2030_p4 = pnand %p2029_p3, %p2023_p0 }
   0xc   :  { %2033 = shalt.err (!%p2030_p4)
}
   0xd   :  { %36 = dma.hbm_to_vmem [thread:$0]  %s4472_s2, 16, %s34_s19, [#allocation5]  }
   0xe   :  { %s2042_s26 = scalar_lea.vmem %s21_s21, 128  ;;  %p2047_p6 = scmp.lt.s32.totalorder %s21_s21, %s21_s21 }
   0xf   :  { %p2043_p5 = scmp.ne.s32.totalorder %s21_s21, %s2042_s26  ;;  %p2048_p7 = scmp.lt.s32.totalorder %s2042_s26, %s2042_s26 }
  0x11   :  { %p2049_p8 = por %p2048_p7, %p2047_p6 }
  0x13   :  { %p2050_p9 = pnand %p2049_p8, %p2043_p5 }
  0x15   :  { %2053 = shalt.err (!%p2050_p9)
}
  0x16   :  { %s2102_s27 = smov 64   ;;  %s2103_s28 = smov 4  }
  0x17   :  { %26 = dma.hbm_to_vmem [thread:$0]  %s4471_s1, 128, %s21_s21, [#allocation3], %s2102_s27, %s2102_s27, %s2103_s28  }
  0x18   :  { %s2104_s6 = smov [#allocation6]   ;;  %s2105_s8 = smov [#allocation7]  }
  0x19   :  { %s43_s7 = sshll.u32 %s2104_s6, 4  ;;  %s53_s9 = sshll.u32 %s2105_s8, 4  ;;  %s44_s7 = int_to_ptr.vmem [resolvable:$true] %s43_s7  ;;  %s54_s9 = int_to_ptr.vmem [resolvable:$true] %s53_s9 }
  0x1a   :  { %s2062_s2 = scalar_lea.vmem %s44_s7, 16  ;;  %s2066_s10 = scalar_lea.vmem %s44_s7, 32 }
  0x1b   :  { %p2063_p10 = scmp.ne.s32.totalorder %s44_s7, %s2062_s2  ;;  %p2067_p11 = scmp.lt.s32.totalorder %s44_s7, %s44_s7 }
  0x1c   :  { %p2068_p12 = scmp.lt.s32.totalorder %s2066_s10, %s2062_s2 }
  0x1e   :  { %p2069_p13 = por %p2068_p12, %p2067_p11 }
  0x20   :  { %p2070_p0 = pnand %p2069_p13, %p2063_p10 }
  0x22   :  { %2073 = shalt.err (!%p2070_p0)
}
  0x23   :  { %46 = dma.hbm_to_vmem [thread:$0]  %s4473_s3, 16, %s44_s7, [#allocation5]  }
  0x24   :  { %s2082_s13 = scalar_lea.vmem %s54_s9, 16  ;;  %s2086_s1 = scalar_lea.vmem %s54_s9, 32 }
  0x25   :  { %p2083_p1 = scmp.ne.s32.totalorder %s54_s9, %s2082_s13  ;;  %p2087_p2 = scmp.lt.s32.totalorder %s54_s9, %s54_s9 }
  0x26   :  { %p2088_p3 = scmp.lt.s32.totalorder %s2086_s1, %s2082_s13 }
  0x28   :  { %p2089_p4 = por %p2088_p3, %p2087_p2 }
  0x2a   :  { %p2090_p5 = pnand %p2089_p4, %p2083_p1 }
  0x2c   :  { %2093 = shalt.err (!%p2090_p5)
}
  0x2d   :  { %56 = dma.hbm_to_vmem [thread:$0]  %s4474_s4, 16, %s54_s9, [#allocation8]  }
  0x2e   :  { %2094 = dma.done.wait [#allocation3], 128  }
  0x2f   :  { %2095 = vsyncadd [#allocation3], 4294967168 }
  0x30   :  { %2096 = dma.done.wait [#allocation5], 32  }
  0x31   :  { %2097 = vsyncadd [#allocation5], 4294967264 }
  0x32   :  { %2098 = dma.done.wait [#allocation8], 16  }
  0x33   :  { %2099 = vsyncadd [#allocation8], 4294967280  ;;  %v2106_v0 = vmov 0.0   ;;  %vm2107_vm0 = vmmov 0   ;;  %v1828_v1 = vld [vmem:[#allocation2] sm:$0xff]   ;;  %vm341_vm1 = vcmask 130048  }
  0x34   :  { %1668 = vmatprep.subr.bf16.mxu0 %v2106_v0  ;;  %1670 = vmatprep.mubr.msk.bf16.mxu0 %vm2107_vm0, %v2106_v0  ;;  %v1829_v2 = vld [vmem:[%s4470_s0] sm:$0xff]   ;;  %v1830_v3 = vld [vmem:[%s4470_s0 + $0x8] sm:$0xff]   ;;  %v1839_v4 = vld [vmem:[%s4470_s0 + $0x98] sm:$0xff]   ;;  %vm925_vm2 = vcmask 1041408  }
  0x35   :  { %1818 = vmatprep.subr.bf16.mxu1 %v2106_v0  ;;  %1746 = vmatprep.mubr.msk.bf16.mxu1 %vm2107_vm0, %v2106_v0  ;;  %v1831_v5 = vld [vmem:[%s4470_s0 + $0x10] sm:$0xff]   ;;  %v1841_v6 = vld [vmem:[%s4470_s0 + $0xa0] sm:$0xff]   ;;  %v1832_v7 = vld [vmem:[%s4470_s0 + $0x18] sm:$0xff]  }
  0x36   :  { %1669 = vmatpush3.bf16.msra.mxu0 %v1828_v1  ;;  %1819 = vmatpush3.bf16.msra.mxu1 %v1828_v1  ;;  %v1843_v8 = vld [vmem:[%s4470_s0 + $0xa8] sm:$0xff]   ;;  %v1833_v9 = vld [vmem:[%s4470_s0 + $0x20] sm:$0xff]   ;;  %v1845_v10 = vld [vmem:[%s4470_s0 + $0xb0] sm:$0xff]  }
  0x37   :  { %v1834_v11 = vld [vmem:[%s4470_s0 + $0x28] sm:$0xff]   ;;  %v1847_v12 = vld [vmem:[%s4470_s0 + $0xb8] sm:$0xff]   ;;  %v1835_v13 = vld [vmem:[%s4470_s0 + $0x30] sm:$0xff]  }
  0x38   :  { %v1849_v14 = vld [vmem:[%s4470_s0 + $0xc0] sm:$0xff]   ;;  %v1836_v15 = vld [vmem:[%s4470_s0 + $0x38] sm:$0xff]   ;;  %v1851_v16 = vld [vmem:[%s4470_s0 + $0xc8] sm:$0xff]  }
  0x39   :  { %1671 = vmatmul.mubr.msk.bf16.vlgmr.msra.gmra.mxu0 %vm341_vm1, %v1829_v2  ;;  %1747 = vmatmul.mubr.msk.bf16.vlgmr.msra.gmra.mxu1 %vm341_vm1, %v1839_v4  ;;  %v1837_v17 = vld [vmem:[%s4470_s0 + $0x40] sm:$0xff]   ;;  %v1853_v18 = vld [vmem:[%s4470_s0 + $0xd0] sm:$0xff]   ;;  %v1838_v19 = vld [vmem:[%s4470_s0 + $0x48] sm:$0xff]  }
  0x3a   :  { %1674 = vmatprep.mubr.msk.bf16.mxu0 %vm2107_vm0, %v2106_v0  ;;  %1750 = vmatprep.mubr.msk.bf16.mxu1 %vm2107_vm0, %v2106_v0  ;;  %v1855_v20 = vld [vmem:[%s4470_s0 + $0xd8] sm:$0xff]   ;;  %v1840_v21 = vld [vmem:[%s4470_s0 + $0x50] sm:$0xff]   ;;  %v1857_v22 = vld [vmem:[%s4470_s0 + $0xe0] sm:$0xff]  }
  0x3b   :  { %v1842_v23 = vld [vmem:[%s4470_s0 + $0x58] sm:$0xff]   ;;  %v1858_v24 = vld [vmem:[%s4470_s0 + $0xe8] sm:$0xff]   ;;  %v1844_v25 = vld [vmem:[%s4470_s0 + $0x60] sm:$0xff]  }
  0x3c   :  { %v1859_v26 = vld [vmem:[%s4470_s0 + $0xf0] sm:$0xff]   ;;  %v1846_v27 = vld [vmem:[%s4470_s0 + $0x68] sm:$0xff]   ;;  %v1860_v28 = vld [vmem:[%s4470_s0 + $0xf8] sm:$0xff]  }
  0x3d   :  { %v1848_v29 = vld [vmem:[%s4470_s0 + $0x70] sm:$0xff]   ;;  %v1861_v30 = vld [vmem:[%s4470_s0 + $0x100] sm:$0xff]   ;;  %v1850_v31 = vld [vmem:[%s4470_s0 + $0x78] sm:$0xff]  }
  0x3e   :  { %v1862_v32 = vld [vmem:[%s4470_s0 + $0x108] sm:$0xff]   ;;  %v1852_v33 = vld [vmem:[%s4470_s0 + $0x80] sm:$0xff]   ;;  %v1863_v34 = vld [vmem:[%s4470_s0 + $0x110] sm:$0xff]  }
  0x3f   :  { %v1854_v35 = vld [vmem:[%s4470_s0 + $0x88] sm:$0xff]   ;;  %v1864_v36 = vld [vmem:[%s4470_s0 + $0x118] sm:$0xff]   ;;  %v1856_v37 = vld [vmem:[%s4470_s0 + $0x90] sm:$0xff]  }
  0x40   :  { %v1865_v38 = vld [vmem:[%s4470_s0 + $0x120] ss:$0 sps:$4 sm:$0x11]  }
  0x41   :  { %1675 = vmatmul.mubr.msk.bf16.gmra.mxu0 %vm341_vm1, %v1830_v3  ;;  %1751 = vmatmul.mubr.msk.bf16.gmra.mxu1 %vm341_vm1, %v1841_v6 }
  0x42   :  { %1678 = vmatprep.mubr.msk.bf16.mxu0 %vm2107_vm0, %v2106_v0  ;;  %1754 = vmatprep.mubr.msk.bf16.mxu1 %vm2107_vm0, %v2106_v0 }
  0x49   :  { %1679 = vmatmul.mubr.msk.bf16.gmra.mxu0 %vm341_vm1, %v1831_v5  ;;  %1755 = vmatmul.mubr.msk.bf16.gmra.mxu1 %vm341_vm1, %v1843_v8 }
  0x4a   :  { %1682 = vmatprep.mubr.msk.bf16.mxu0 %vm2107_vm0, %v2106_v0  ;;  %1758 = vmatprep.mubr.msk.bf16.mxu1 %vm2107_vm0, %v2106_v0 }
  0x51   :  { %1683 = vmatmul.mubr.msk.bf16.gmra.mxu0 %vm341_vm1, %v1832_v7  ;;  %1759 = vmatmul.mubr.msk.bf16.gmra.mxu1 %vm341_vm1, %v1845_v10 }
  0x52   :  { %1686 = vmatprep.mubr.msk.bf16.mxu0 %vm2107_vm0, %v2106_v0  ;;  %1762 = vmatprep.mubr.msk.bf16.mxu1 %vm2107_vm0, %v2106_v0 }
  0x59   :  { %1687 = vmatmul.mubr.msk.bf16.gmra.mxu0 %vm341_vm1, %v1833_v9  ;;  %1763 = vmatmul.mubr.msk.bf16.gmra.mxu1 %vm341_vm1, %v1847_v12 }
  0x5a   :  { %1690 = vmatprep.mubr.msk.bf16.mxu0 %vm2107_vm0, %v2106_v0  ;;  %1766 = vmatprep.mubr.msk.bf16.mxu1 %vm2107_vm0, %v2106_v0 }
  0x61   :  { %1691 = vmatmul.mubr.msk.bf16.gmra.mxu0 %vm341_vm1, %v1834_v11  ;;  %1767 = vmatmul.mubr.msk.bf16.gmra.mxu1 %vm341_vm1, %v1849_v14 }
  0x62   :  { %1694 = vmatprep.mubr.msk.bf16.mxu0 %vm2107_vm0, %v2106_v0  ;;  %1770 = vmatprep.mubr.msk.bf16.mxu1 %vm2107_vm0, %v2106_v0 }
  0x69   :  { %1695 = vmatmul.mubr.msk.bf16.gmra.mxu0 %vm341_vm1, %v1835_v13  ;;  %1771 = vmatmul.mubr.msk.bf16.gmra.mxu1 %vm341_vm1, %v1851_v16 }
  0x6a   :  { %1698 = vmatprep.mubr.msk.bf16.mxu0 %vm2107_vm0, %v2106_v0  ;;  %1774 = vmatprep.mubr.msk.bf16.mxu1 %vm2107_vm0, %v2106_v0 }
  0x71   :  { %1699 = vmatmul.mubr.msk.bf16.gmra.mxu0 %vm341_vm1, %v1836_v15  ;;  %1775 = vmatmul.mubr.msk.bf16.gmra.mxu1 %vm341_vm1, %v1853_v18 }
  0x72   :  { %1702 = vmatprep.mubr.msk.bf16.mxu0 %vm2107_vm0, %v2106_v0  ;;  %1778 = vmatprep.mubr.msk.bf16.mxu1 %vm2107_vm0, %v2106_v0 }
  0x79   :  { %1703 = vmatmul.mubr.msk.bf16.gmra.mxu0 %vm341_vm1, %v1837_v17  ;;  %1779 = vmatmul.mubr.msk.bf16.gmra.mxu1 %vm341_vm1, %v1855_v20 }
  0x7a   :  { %1706 = vmatprep.mubr.msk.bf16.mxu0 %vm2107_vm0, %v2106_v0  ;;  %1782 = vmatprep.mubr.msk.bf16.mxu1 %vm2107_vm0, %v2106_v0 }
  0x81   :  { %1707 = vmatmul.mubr.msk.bf16.gmra.mxu0 %vm341_vm1, %v1838_v19  ;;  %1783 = vmatmul.mubr.msk.bf16.gmra.mxu1 %vm341_vm1, %v1857_v22 }
  0x82   :  { %1710 = vmatprep.mubr.msk.bf16.mxu0 %vm2107_vm0, %v2106_v0  ;;  %1786 = vmatprep.mubr.msk.bf16.mxu1 %vm2107_vm0, %v2106_v0 }
  0x89   :  { %1711 = vmatmul.mubr.msk.bf16.gmra.mxu0 %vm341_vm1, %v1840_v21  ;;  %1787 = vmatmul.mubr.msk.bf16.gmra.mxu1 %vm341_vm1, %v1858_v24 }
  0x8a   :  { %1714 = vmatprep.mubr.msk.bf16.mxu0 %vm2107_vm0, %v2106_v0  ;;  %1790 = vmatprep.mubr.msk.bf16.mxu1 %vm2107_vm0, %v2106_v0 }
  0x91   :  { %1715 = vmatmul.mubr.msk.bf16.gmra.mxu0 %vm341_vm1, %v1842_v23  ;;  %1791 = vmatmul.mubr.msk.bf16.gmra.mxu1 %vm341_vm1, %v1859_v26 }
  0x92   :  { %1718 = vmatprep.mubr.msk.bf16.mxu0 %vm2107_vm0, %v2106_v0  ;;  %1794 = vmatprep.mubr.msk.bf16.mxu1 %vm2107_vm0, %v2106_v0 }
  0x99   :  { %1719 = vmatmul.mubr.msk.bf16.gmra.mxu0 %vm341_vm1, %v1844_v25  ;;  %1795 = vmatmul.mubr.msk.bf16.gmra.mxu1 %vm341_vm1, %v1860_v28 }
  0x9a   :  { %1722 = vmatprep.mubr.msk.bf16.mxu0 %vm2107_vm0, %v2106_v0  ;;  %1798 = vmatprep.mubr.msk.bf16.mxu1 %vm2107_vm0, %v2106_v0 }
  0xa1   :  { %1723 = vmatmul.mubr.msk.bf16.gmra.mxu0 %vm341_vm1, %v1846_v27  ;;  %1799 = vmatmul.mubr.msk.bf16.gmra.mxu1 %vm341_vm1, %v1861_v30 }
  0xa2   :  { %1726 = vmatprep.mubr.msk.bf16.mxu0 %vm2107_vm0, %v2106_v0  ;;  %1802 = vmatprep.mubr.msk.bf16.mxu1 %vm2107_vm0, %v2106_v0 }
  0xa9   :  { %1727 = vmatmul.mubr.msk.bf16.gmra.mxu0 %vm341_vm1, %v1848_v29  ;;  %1803 = vmatmul.mubr.msk.bf16.gmra.mxu1 %vm341_vm1, %v1862_v32 }
  0xaa   :  { %1730 = vmatprep.mubr.msk.bf16.mxu0 %vm2107_vm0, %v2106_v0  ;;  %1806 = vmatprep.mubr.msk.bf16.mxu1 %vm2107_vm0, %v2106_v0 }
  0xb1   :  { %1731 = vmatmul.mubr.msk.bf16.gmra.mxu0 %vm341_vm1, %v1850_v31  ;;  %1807 = vmatmul.mubr.msk.bf16.gmra.mxu1 %vm341_vm1, %v1863_v34 }
  0xb2   :  { %1734 = vmatprep.mubr.msk.bf16.mxu0 %vm2107_vm0, %v2106_v0  ;;  %1810 = vmatprep.mubr.msk.bf16.mxu1 %vm2107_vm0, %v2106_v0 }
  0xb9   :  { %1735 = vmatmul.mubr.msk.bf16.gmra.mxu0 %vm341_vm1, %v1852_v33  ;;  %1811 = vmatmul.mubr.msk.bf16.gmra.mxu1 %vm341_vm1, %v1864_v36 }
  0xba   :  { %1738 = vmatprep.mubr.msk.bf16.mxu0 %vm2107_vm0, %v2106_v0  ;;  %1814 = vmatprep.mubr.msk.bf16.mxu1 %vm2107_vm0, %v2106_v0 }
  0xc1   :  { %1739 = vmatmul.mubr.msk.bf16.gmra.mxu0 %vm341_vm1, %v1854_v35  ;;  %1815 = vmatmul.mubr.msk.bf16.gmra.mxu1 %vm341_vm1, %v1865_v38 }
  0xc2   :  { %1742 = vmatprep.mubr.msk.bf16.mxu0 %vm2107_vm0, %v2106_v0 }
  0xc9   :  { %1743 = vmatmul.mubr.msk.bf16.gmra.mxu0 %vm341_vm1, %v1856_v37 }
  0xf9   :  { %v2374_v39 = vpop.f32.mrf.mxu0  ;;  %v2380_v44 = vpop.f32.mrf.mxu1 }
  0xfb   :  { %v1672_v40 = vpop.f32.mrf.mxu0  ;;  %v1748_v46 = vpop.f32.mrf.mxu1 }
  0xfc   :  { %v2438_v40 = vld [vmem:[#allocation4] ss:$0 sm:$0xff] }
  0xfd   :  { %v2376_v41 = vpop.f32.mrf.mxu0  ;;  %v2384_v48 = vpop.f32.mrf.mxu1 }
  0xfe   :  { %v491_v46 = vadd.f32 %v2438_v40, %v2376_v41 }
  0xff   :  { %v1673_v42 = vpop.f32.mrf.mxu0  ;;  %v1749_v50 = vpop.f32.mrf.mxu1 }
 0x100   :  { %1866 = vtanh.f32 %v491_v46 }
 0x101   :  { %v2378_v43 = vpop.f32.mrf.mxu0  ;;  %v2388_v52 = vpop.f32.mrf.mxu1 }
 0x103   :  { %v1676_v45 = vpop.f32.mrf.mxu0  ;;  %v1752_v54 = vpop.f32.mrf.mxu1 }
 0x104   :  { %v496_v54 = vadd.f32 %v2438_v40, %v2378_v43 }
 0x105   :  { %v2382_v47 = vpop.f32.mrf.mxu0  ;;  %v2392_v56 = vpop.f32.mrf.mxu1 }
 0x107   :  { %v1677_v49 = vpop.f32.mrf.mxu0  ;;  %v1753_v58 = vpop.f32.mrf.mxu1 }
 0x109   :  { %v2386_v51 = vpop.f32.mrf.mxu0  ;;  %v2396_v60 = vpop.f32.mrf.mxu1 }
 0x10a   :  { %v504_v41 = vadd.f32 %v2438_v40, %v2386_v51 }
 0x10b   :  { %v1680_v53 = vpop.f32.mrf.mxu0  ;;  %v1756_v62 = vpop.f32.mrf.mxu1 }
 0x10c   :  { %v488_v53 = vadd.f32 %v2438_v40, %v2374_v39 }
 0x10d   :  { %v2390_v55 = vpop.f32.mrf.mxu0  ;;  %v2400_v0 = vpop.f32.mrf.mxu1 }
 0x10e   :  { %1868 = vtanh.f32 %v488_v53  ;;  %v507_v43 = vadd.f32 %v2438_v40, %v2390_v55 }
 0x10f   :  { %v1681_v57 = vpop.f32.mrf.mxu0  ;;  %v1757_v2 = vpop.f32.mrf.mxu1  ;;  %1870 = vtanh.f32 %v496_v54 }
 0x111   :  { %v2394_v59 = vpop.f32.mrf.mxu0  ;;  %v2404_v4 = vpop.f32.mrf.mxu1 }
 0x113   :  { %v1684_v61 = vpop.f32.mrf.mxu0  ;;  %v1760_v6 = vpop.f32.mrf.mxu1 }
 0x114   :  { %v499_v61 = vadd.f32 %v2438_v40, %v2382_v47  ;;  %v512_v47 = vadd.f32 %v2438_v40, %v2394_v59 }
 0x115   :  { %v2398_v63 = vpop.f32.mrf.mxu0  ;;  %v2408_v8 = vpop.f32.mrf.mxu1 }
 0x116   :  { %1872 = vtanh.f32 %v499_v61  ;;  %v515_v51 = vadd.f32 %v2438_v40, %v2398_v63 }
 0x117   :  { %v1685_v1 = vpop.f32.mrf.mxu0  ;;  %v1761_v10 = vpop.f32.mrf.mxu1  ;;  %1874 = vtanh.f32 %v504_v41 }
 0x118   :  { %1876 = vtanh.f32 %v507_v43 }
 0x119   :  { %v2402_v3 = vpop.f32.mrf.mxu0  ;;  %v2412_v12 = vpop.f32.mrf.mxu1  ;;  %1878 = vtanh.f32 %v512_v47 }
 0x11a   :  { %v520_v55 = vadd.f32 %v2438_v40, %v2402_v3  ;;  %1880 = vtanh.f32 %v515_v51 }
 0x11b   :  { %v1688_v5 = vpop.f32.mrf.mxu0  ;;  %v1764_v14 = vpop.f32.mrf.mxu1 }
 0x11c   :  { %1882 = vtanh.f32 %v520_v55 }
 0x11d   :  { %v2406_v7 = vpop.f32.mrf.mxu0  ;;  %v2416_v16 = vpop.f32.mrf.mxu1 }
 0x11e   :  { %v523_v59 = vadd.f32 %v2438_v40, %v2406_v7 }
 0x11f   :  { %v1689_v9 = vpop.f32.mrf.mxu0  ;;  %v1765_v18 = vpop.f32.mrf.mxu1 }
 0x120   :  { %1884 = vtanh.f32 %v523_v59 }
 0x121   :  { %v2410_v11 = vpop.f32.mrf.mxu0  ;;  %v2420_v20 = vpop.f32.mrf.mxu1 }
 0x122   :  { %v528_v63 = vadd.f32 %v2438_v40, %v2410_v11 }
 0x123   :  { %v1692_v13 = vpop.f32.mrf.mxu0  ;;  %v1768_v22 = vpop.f32.mrf.mxu1 }
 0x124   :  { %1886 = vtanh.f32 %v528_v63 }
 0x125   :  { %v2414_v15 = vpop.f32.mrf.mxu0  ;;  %v2424_v24 = vpop.f32.mrf.mxu1 }
 0x126   :  { %v531_v7 = vadd.f32 %v2438_v40, %v2414_v15 }
 0x127   :  { %v1693_v17 = vpop.f32.mrf.mxu0  ;;  %v1769_v26 = vpop.f32.mrf.mxu1 }
 0x128   :  { %1888 = vtanh.f32 %v531_v7 }
 0x129   :  { %v2418_v19 = vpop.f32.mrf.mxu0  ;;  %v2428_v28 = vpop.f32.mrf.mxu1 }
 0x12b   :  { %v1696_v21 = vpop.f32.mrf.mxu0  ;;  %v1772_v30 = vpop.f32.mrf.mxu1 }
 0x12d   :  { %v2422_v23 = vpop.f32.mrf.mxu0  ;;  %v2432_v32 = vpop.f32.mrf.mxu1 }
 0x12f   :  { %v1697_v25 = vpop.f32.mrf.mxu0  ;;  %v1773_v34 = vpop.f32.mrf.mxu1 }
 0x130   :  { %v2480_v25 = vpop.eup %1866 }
 0x131   :  { %v2426_v27 = vpop.f32.mrf.mxu0  ;;  %v2436_v36 = vpop.f32.mrf.mxu1 }
 0x132   :  { %v2482_v26 = vpop.eup %1868  ;;  %v544_v51 = vadd.f32 %v2438_v40, %v2426_v27 }
 0x133   :  { %v1700_v29 = vpop.f32.mrf.mxu0  ;;  %v1776_v38 = vpop.f32.mrf.mxu1  ;;  %v935_v11 = vmul.f32 %v2482_v26, %v2482_v26  ;;  %v854_v15 = vadd.f32 %v2482_v26, %v2480_v25 }
 0x134   :  { %v2490_v30 = vpop.eup %1870 }
 0x135   :  { %v2430_v31 = vpop.f32.mrf.mxu0  ;;  %v2442_v45 = vpop.f32.mrf.mxu1  ;;  %v937_v46 = vmul.f32 %v2490_v30, %v2490_v30 }
 0x136   :  { %v2496_v38 = vpop.eup %1872 }
 0x137   :  { %v1701_v33 = vpop.f32.mrf.mxu0  ;;  %v1777_v50 = vpop.f32.mrf.mxu1 }
 0x138   :  { %v936_v33 = vmul.f32 %v2480_v25, %v2480_v25  ;;  %v2508_v54 = vpop.eup %1874 }
 0x139   :  { %v2434_v35 = vpop.f32.mrf.mxu0  ;;  %v2452_v58 = vpop.f32.mrf.mxu1  ;;  %v939_v47 = vmul.f32 %v2508_v54, %v2508_v54 }
 0x13a   :  { %v1008_v61 = vadd.f32 %v936_v33, %v935_v11  ;;  %v552_v11 = vadd.f32 %v2438_v40, %v2434_v35 }
 0x13b   :  { %v1704_v37 = vpop.f32.mrf.mxu0  ;;  %v1780_v1 = vpop.f32.mrf.mxu1 }
 0x13c   :  { %v539_v1 = vadd.f32 %v2438_v40, %v2422_v23 }
 0x13d   :  { %v2440_v42 = vpop.f32.mrf.mxu0  ;;  %v2460_v39 = vpop.f32.mrf.mxu1 }
 0x13f   :  { %v1705_v49 = vpop.f32.mrf.mxu0  ;;  %v1781_v6 = vpop.f32.mrf.mxu1 }
 0x140   :  { %v536_v49 = vadd.f32 %v2438_v40, %v2418_v19  ;;  %v2516_v19 = vpop.eup %1876  ;;  %v1009_v6 = vadd.f32 %v1008_v61, %v937_v46 }
 0x141   :  { %v2450_v57 = vpop.f32.mrf.mxu0  ;;  %v2468_v10 = vpop.f32.mrf.mxu1 }
 0x142   :  { %1890 = vtanh.f32 %v536_v49  ;;  %v2527_v55 = vpop.eup %1878 }
 0x143   :  { %v1708_v62 = vpop.f32.mrf.mxu0  ;;  %v1784_v14 = vpop.f32.mrf.mxu1  ;;  %1892 = vtanh.f32 %v539_v1  ;;  %v555_v1 = vadd.f32 %v2438_v40, %v2440_v42 }
 0x144   :  { %v938_v62 = vmul.f32 %v2496_v38, %v2496_v38  ;;  %v2534_v7 = vpop.eup %1880  ;;  %1894 = vtanh.f32 %v544_v51  ;;  %v560_v51 = vadd.f32 %v2438_v40, %v2450_v57 }
 0x145   :  { %v2458_v2 = vpop.f32.mrf.mxu0  ;;  %v2476_v18 = vpop.f32.mrf.mxu1 }
 0x146   :  { %v1010_v59 = vadd.f32 %v1009_v6, %v938_v62  ;;  %v942_v62 = vmul.f32 %v2534_v7, %v2534_v7 }
 0x147   :  { %v1709_v5 = vpop.f32.mrf.mxu0  ;;  %v1785_v22 = vpop.f32.mrf.mxu1 }
 0x148   :  { %v855_v5 = vadd.f32 %v2490_v30, %v854_v15  ;;  %v547_v22 = vadd.f32 %v2438_v40, %v2430_v31  ;;  %v2545_v15 = vpop.eup %1882 }
 0x149   :  { %v2466_v9 = vpop.f32.mrf.mxu0  ;;  %v2488_v3 = vpop.f32.mrf.mxu1  ;;  %4553 = vst [vmem:[#allocation12_spill] sm:$0xff] %v2545_v15 }
 0x14a   :  { %v856_v23 = vadd.f32 %v2496_v38, %v855_v5  ;;  %1896 = vtanh.f32 %v547_v22  ;;  %v2552_v5 = vpop.eup %1884 }
 0x14b   :  { %v1712_v13 = vpop.f32.mrf.mxu0  ;;  %v1788_v37 = vpop.f32.mrf.mxu1  ;;  %4554 = vst [vmem:[#allocation13_spill] sm:$0xff] %v2552_v5  ;;  %1898 = vtanh.f32 %v552_v11 }
 0x14c   :  { %v857_v27 = vadd.f32 %v2508_v54, %v856_v23  ;;  %v941_v37 = vmul.f32 %v2527_v55, %v2527_v55  ;;  %1900 = vtanh.f32 %v555_v1 }
 0x14d   :  { %v2474_v17 = vpop.f32.mrf.mxu0  ;;  %v2506_v53 = vpop.f32.mrf.mxu1  ;;  %1902 = vtanh.f32 %v560_v51 }
 0x14e   :  { %v858_v31 = vadd.f32 %v2516_v19, %v857_v27 }
 0x14f   :  { %v1713_v21 = vpop.f32.mrf.mxu0  ;;  %v1789_v43 = vpop.f32.mrf.mxu1 }
 0x150   :  { %v940_v21 = vmul.f32 %v2516_v19, %v2516_v19  ;;  %v859_v35 = vadd.f32 %v2527_v55, %v858_v31 }
 0x151   :  { %v2486_v29 = vpop.f32.mrf.mxu0  ;;  %v2525_v14 = vpop.f32.mrf.mxu1 }
 0x152   :  { %v860_v42 = vadd.f32 %v2534_v7, %v859_v35 }
 0x153   :  { %v1716_v34 = vpop.f32.mrf.mxu0  ;;  %v1792_v33 = vpop.f32.mrf.mxu1 }
 0x154   :  { %v1011_v34 = vadd.f32 %v1010_v59, %v939_v47  ;;  %v943_v47 = vmul.f32 %v2545_v15, %v2545_v15  ;;  %v563_v33 = vadd.f32 %v2438_v40, %v2458_v2  ;;  %v861_v57 = vadd.f32 %v2545_v15, %v860_v42 }
 0x155   :  { %v2504_v50 = vpop.f32.mrf.mxu0  ;;  %v2543_v49 = vpop.f32.mrf.mxu1 }
 0x156   :  { %v1012_v61 = vadd.f32 %v1011_v34, %v940_v21  ;;  %v2563_v21 = vpop.eup %1886  ;;  %v862_v2 = vadd.f32 %v2552_v5, %v861_v57  ;;  %1904 = vtanh.f32 %v563_v33 }
 0x157   :  { %v1717_v41 = vpop.f32.mrf.mxu0  ;;  %v1793_v43 = vpop.f32.mrf.mxu1  ;;  %4555 = vst [vmem:[#allocation14_spill] sm:$0xff] %v2563_v21  ;;  %v945_v31 = vmul.f32 %v2563_v21, %v2563_v21 }
 0x158   :  { %v1013_v6 = vadd.f32 %v1012_v61, %v941_v37  ;;  %v2570_v37 = vpop.eup %1888  ;;  %v568_v61 = vadd.f32 %v2438_v40, %v2466_v9  ;;  %v863_v9 = vadd.f32 %v2563_v21, %v862_v2 }
 0x159   :  { %v2523_v13 = vpop.f32.mrf.mxu0  ;;  %v2561_v59 = vpop.f32.mrf.mxu1  ;;  %4556 = vst [vmem:[#allocation15_spill] sm:$0xff] %v2570_v37  ;;  %v946_v35 = vmul.f32 %v2570_v37, %v2570_v37 }
 0x15a   :  { %v1014_v22 = vadd.f32 %v1013_v6, %v942_v62  ;;  %v2579_v1 = vpop.eup %1890  ;;  %v571_v6 = vadd.f32 %v2438_v40, %v2474_v17  ;;  %1906 = vtanh.f32 %v568_v61  ;;  %v864_v17 = vadd.f32 %v2570_v37, %v863_v9 }
 0x15b   :  { %v1720_v63 = vpop.f32.mrf.mxu0  ;;  %v1796_v34 = vpop.f32.mrf.mxu1  ;;  %4557 = vst [vmem:[#allocation16_spill] sm:$0xff] %v2579_v1 }
 0x15c   :  { %v944_v63 = vmul.f32 %v2552_v5, %v2552_v5  ;;  %v1015_v11 = vadd.f32 %v1014_v22, %v943_v47  ;;  %v2586_v42 = vpop.eup %1892  ;;  %1908 = vtanh.f32 %v571_v6 }
 0x15d   :  { %v2541_v46 = vpop.f32.mrf.mxu0  ;;  %4558 = vst [vmem:[#allocation17_spill] sm:$0xff] %v2586_v42  ;;  %v2595_v33 = vpop.eup %1894 }
 0x15e   :  { %v1016_v43 = vadd.f32 %v1015_v11, %v944_v63  ;;  %v576_v63 = vadd.f32 %v2438_v40, %v2486_v29  ;;  %4559 = vst [vmem:[#allocation18_spill] sm:$0xff] %v2595_v33  ;;  %v865_v29 = vadd.f32 %v2579_v1, %v864_v17  ;;  %v949_v21 = vmul.f32 %v2595_v33, %v2595_v33 }
 0x15f   :  { %v1721_v41 = vpop.f32.mrf.mxu0 }
 0x160   :  { %v2577_v41 = vpop.f32.mrf.mxu1  ;;  %v1017_v22 = vadd.f32 %v1016_v43, %v945_v31  ;;  %v579_v31 = vadd.f32 %v2438_v40, %v2504_v50  ;;  %v2602_v43 = vpop.eup %1896  ;;  %1910 = vtanh.f32 %v576_v63  ;;  %v866_v50 = vadd.f32 %v2586_v42, %v865_v29 }
 0x161   :  { %v2559_v23 = vpop.f32.mrf.mxu0  ;;  %4560 = vst [vmem:[#allocation19_spill] sm:$0xff] %v2602_v43  ;;  %v2611_v6 = vpop.eup %1898 }
 0x162   :  { %v1797_v51 = vpop.f32.mrf.mxu1  ;;  %v1018_v11 = vadd.f32 %v1017_v22, %v946_v35  ;;  %v584_v35 = vadd.f32 %v2438_v40, %v2523_v13  ;;  %4561 = vst [vmem:[#allocation20_spill] sm:$0xff] %v2611_v6  ;;  %1912 = vtanh.f32 %v579_v31  ;;  %v867_v63 = vadd.f32 %v2595_v33, %v866_v50 }
 0x163   :  { %v1724_v27 = vpop.f32.mrf.mxu0  ;;  %v587_v13 = vadd.f32 %v2438_v40, %v2541_v46  ;;  %v951_v37 = vmul.f32 %v2611_v6, %v2611_v6 }
 0x164   :  { %v947_v27 = vmul.f32 %v2579_v1, %v2579_v1  ;;  %v2593_v57 = vpop.f32.mrf.mxu1  ;;  %1914 = vtanh.f32 %v584_v35  ;;  %v868_v31 = vadd.f32 %v2602_v43, %v867_v63 }
 0x165   :  { %v594_v62 = vpop.f32.mrf.mxu0  ;;  %1916 = vtanh.f32 %v587_v13 }
 0x166   :  { %v1800_v61 = vpop.f32.mrf.mxu1  ;;  %v1019_v51 = vadd.f32 %v1018_v11, %v947_v27  ;;  %v2616_v11 = vpop.eup %1900  ;;  %v869_v35 = vadd.f32 %v2611_v6, %v868_v31  ;;  %v595_v33 = vadd.f32 %v2438_v40, %v594_v62 }
 0x167   :  { %v1725_v47 = vpop.f32.mrf.mxu0  ;;  %v950_v61 = vmul.f32 %v2602_v43, %v2602_v43  ;;  %4562 = vst [vmem:[#allocation21_spill] sm:$0xff] %v2616_v11  ;;  %v952_v50 = vmul.f32 %v2616_v11, %v2616_v11 }
 0x168   :  { %v948_v47 = vmul.f32 %v2586_v42, %v2586_v42  ;;  %v2609_v22 = vpop.f32.mrf.mxu1 }
 0x169   :  { %v599_v34 = vpop.f32.mrf.mxu0 }
 0x16a   :  { %v1801_v17 = vpop.f32.mrf.mxu1 }
 0x16b   :  { %v1728_v2 = vpop.f32.mrf.mxu0 }
 0x16c   :  { %v1020_v2 = vadd.f32 %v1019_v51, %v948_v47  ;;  %v2623_v47 = vpop.f32.mrf.mxu1  ;;  %v2625_v51 = vpop.eup %1902 }
 0x16d   :  { %v602_v9 = vpop.f32.mrf.mxu0  ;;  %4563 = vst [vmem:[#allocation22_spill] sm:$0xff] %v2625_v51  ;;  %v953_v63 = vmul.f32 %v2625_v51, %v2625_v51 }
 0x16e   :  { %v1021_v1 = vadd.f32 %v1020_v2, %v949_v21  ;;  %v1804_v21 = vpop.f32.mrf.mxu1  ;;  %v2632_v2 = vpop.eup %1904 }
 0x16f   :  { %v1729_v27 = vpop.f32.mrf.mxu0  ;;  %4564 = vst [vmem:[#allocation23_spill] sm:$0xff] %v2632_v2  ;;  %v954_v13 = vmul.f32 %v2632_v2, %v2632_v2  ;;  %v603_v21 = vadd.f32 %v2438_v40, %v602_v9 }
 0x170   :  { %v592_v27 = vadd.f32 %v2438_v40, %v2559_v23  ;;  %v1022_v17 = vadd.f32 %v1021_v1, %v950_v61  ;;  %v2638_v5 = vpop.f32.mrf.mxu1  ;;  %v2640_v23 = vpop.eup %1906  ;;  %v870_v1 = vadd.f32 %v2616_v11, %v869_v35  ;;  %v600_v61 = vadd.f32 %v2438_v40, %v599_v34 }
 0x171   :  { %v607_v29 = vpop.f32.mrf.mxu0  ;;  %4565 = vst [vmem:[#allocation24_spill] sm:$0xff] %v2640_v23  ;;  %v955_v35 = vmul.f32 %v2640_v23, %v2640_v23 }
 0x172   :  { %v1023_v42 = vadd.f32 %v1022_v17, %v951_v37  ;;  %1918 = vtanh.f32 %v592_v27  ;;  %v1805_v62 = vpop.f32.mrf.mxu1  ;;  %v2646_v37 = vpop.eup %1908  ;;  %v871_v17 = vadd.f32 %v2625_v51, %v870_v1 }
 0x173   :  { %v1732_v46 = vpop.f32.mrf.mxu0  ;;  %4566 = vst [vmem:[#allocation25_spill] sm:$0xff] %v2646_v37  ;;  %1920 = vtanh.f32 %v595_v33  ;;  %v956_v33 = vmul.f32 %v2646_v37, %v2646_v37 }
 0x174   :  { %v1024_v46 = vadd.f32 %v1023_v42, %v952_v50  ;;  %v2652_v11 = vpop.f32.mrf.mxu1  ;;  %v2654_v42 = vpop.eup %1910  ;;  %v872_v34 = vadd.f32 %v2632_v2, %v871_v17  ;;  %1922 = vtanh.f32 %v600_v61  ;;  %v608_v50 = vadd.f32 %v2438_v40, %v607_v29 }
 0x175   :  { %v610_v43 = vpop.f32.mrf.mxu0  ;;  %4567 = vst [vmem:[#allocation26_spill] sm:$0xff] %v2654_v42  ;;  %1924 = vtanh.f32 %v603_v21  ;;  %v957_v17 = vmul.f32 %v2654_v42, %v2654_v42 }
 0x176   :  { %v1025_v6 = vadd.f32 %v1024_v46, %v953_v63  ;;  %v1808_v9 = vpop.f32.mrf.mxu1  ;;  %v2660_v63 = vpop.eup %1912  ;;  %v873_v46 = vadd.f32 %v2640_v23, %v872_v34  ;;  %v611_v62 = vadd.f32 %v2438_v40, %v610_v43  ;;  %1926 = vtanh.f32 %v608_v50 }
 0x177   :  { %v1733_v31 = vpop.f32.mrf.mxu0  ;;  %4568 = vst [vmem:[#allocation27_spill] sm:$0xff] %v2660_v63  ;;  %v958_v21 = vmul.f32 %v2660_v63, %v2660_v63 }
 0x178   :  { %v1026_v31 = vadd.f32 %v1025_v6, %v954_v13  ;;  %v2666_v2 = vpop.f32.mrf.mxu1  ;;  %v2668_v6 = vpop.eup %1914  ;;  %v874_v29 = vadd.f32 %v2646_v37, %v873_v46  ;;  %1928 = vtanh.f32 %v611_v62 }
 0x179   :  { %v615_v27 = vpop.f32.mrf.mxu0  ;;  %4569 = vst [vmem:[#allocation28_spill] sm:$0xff] %v2668_v6  ;;  %v2676_v9 = vpop.eup %1916  ;;  %v959_v46 = vmul.f32 %v2668_v6, %v2668_v6 }
 0x17a   :  { %v1027_v51 = vadd.f32 %v1026_v31, %v955_v35  ;;  %v616_v13 = vadd.f32 %v2438_v40, %v615_v27  ;;  %v1809_v43 = vpop.f32.mrf.mxu1  ;;  %v875_v35 = vadd.f32 %v2654_v42, %v874_v29  ;;  %4570 = vst [vmem:[#allocation29_spill] sm:$0xff] %v2676_v9 }
 0x17b   :  { %v1736_v1 = vpop.f32.mrf.mxu0 }
 0x17c   :  { %v1028_v1 = vadd.f32 %v1027_v51, %v956_v33  ;;  %v2680_v37 = vpop.f32.mrf.mxu1  ;;  %v876_v51 = vadd.f32 %v2660_v63, %v875_v35  ;;  %1930 = vtanh.f32 %v616_v13 }
 0x17d   :  { %v618_v61 = vpop.f32.mrf.mxu0 }
 0x17e   :  { %v619_v31 = vadd.f32 %v2438_v40, %v618_v61  ;;  %v1029_v23 = vadd.f32 %v1028_v1, %v957_v17  ;;  %v877_v61 = vadd.f32 %v2668_v6, %v876_v51  ;;  %v960_v17 = vmul.f32 %v2676_v9, %v2676_v9 }
 0x17f   :  { %v1737_v34 = vpop.f32.mrf.mxu0  ;;  %v2684_v33 = vpop.eup %1918 }
 0x180   :  { %4571 = vst [vmem:[#allocation30_spill] sm:$0xff] %v2684_v33  ;;  %v1030_v29 = vadd.f32 %v1029_v23, %v958_v21  ;;  %v1812_v34 = vpop.f32.mrf.mxu1  ;;  %1932 = vtanh.f32 %v619_v31  ;;  %v2689_v1 = vpop.eup %1920  ;;  %v878_v13 = vadd.f32 %v2676_v9, %v877_v61  ;;  %v961_v35 = vmul.f32 %v2684_v33, %v2684_v33 }
 0x181   :  { %v623_v50 = vpop.f32.mrf.mxu0  ;;  %4572 = vst [vmem:[#allocation31_spill] sm:$0xff] %v2689_v1  ;;  %v2697_v21 = vpop.eup %1922 }
 0x182   :  { %v624_v27 = vadd.f32 %v2438_v40, %v623_v50  ;;  %v1031_v43 = vadd.f32 %v1030_v29, %v959_v46  ;;  %v2691_v15 = vpop.f32.mrf.mxu1  ;;  %v879_v31 = vadd.f32 %v2684_v33, %v878_v13  ;;  %v962_v46 = vmul.f32 %v2689_v1, %v2689_v1  ;;  %v2702_v29 = vpop.eup %1924 }
 0x183   :  { %v1740_v62 = vpop.f32.mrf.mxu0 }
 0x184   :  { %1934 = vtanh.f32 %v624_v27  ;;  %v1813_v51 = vpop.f32.mrf.mxu1  ;;  %v1032_v62 = vadd.f32 %v1031_v43, %v960_v17  ;;  %v880_v27 = vadd.f32 %v2689_v1, %v879_v31  ;;  %v2710_v17 = vpop.eup %1926  ;;  %v640_v43 = vadd.f32 %v2438_v40, %v2380_v44 }
 0x185   :  { %v626_v42 = vpop.f32.mrf.mxu0  ;;  %v643_v31 = vadd.f32 %v2438_v40, %v2384_v48  ;;  %v965_v44 = vmul.f32 %v2710_v17, %v2710_v17 }
 0x186   :  { %v627_v23 = vadd.f32 %v2438_v40, %v626_v42  ;;  %v2704_v61 = vpop.f32.mrf.mxu1  ;;  %v1033_v9 = vadd.f32 %v1032_v62, %v961_v35  ;;  %v963_v42 = vmul.f32 %v2697_v21, %v2697_v21  ;;  %v881_v33 = vadd.f32 %v2697_v21, %v880_v27  ;;  %v2717_v62 = vpop.eup %1928 }
 0x187   :  { %v1741_v50 = vpop.f32.mrf.mxu0  ;;  %v964_v35 = vmul.f32 %v2702_v29, %v2702_v29  ;;  %v648_v27 = vadd.f32 %v2438_v40, %v2388_v52 }
 0x188   :  { %1936 = vtanh.f32 %v627_v23  ;;  %v1816_v23 = vpop.f32.mrf.mxu1  ;;  %v1034_v51 = vadd.f32 %v1033_v9, %v962_v46  ;;  %v882_v63 = vadd.f32 %v2702_v29, %v881_v33 }
 0x189   :  { %v631_v34 = vpop.f32.mrf.mxu0  ;;  %v2725_v46 = vpop.eup %1930 }
 0x18a   :  { %v632_v50 = vadd.f32 %v2438_v40, %v631_v34  ;;  %v778_v1 = vpop.f32.mrf.mxu1  ;;  %v1035_v6 = vadd.f32 %v1034_v51, %v963_v42  ;;  %v883_v48 = vadd.f32 %v2710_v17, %v882_v63  ;;  %v651_v42 = vadd.f32 %v2438_v40, %v2392_v56 }
 0x18b   :  { %v1744_v13 = vpop.f32.mrf.mxu0  ;;  %v966_v1 = vmul.f32 %v2717_v62, %v2717_v62  ;;  %v967_v52 = vmul.f32 %v2725_v46, %v2725_v46  ;;  %v656_v63 = vadd.f32 %v2438_v40, %v2396_v60  ;;  %v659_v56 = vadd.f32 %v2438_v40, %v2400_v0 }
 0x18c   :  { %1938 = vtanh.f32 %v632_v50  ;;  %v1817_v13 = vpop.f32.mrf.mxu1  ;;  %v1036_v23 = vadd.f32 %v1035_v6, %v964_v35  ;;  %v664_v60 = vadd.f32 %v2438_v40, %v2404_v4  ;;  %v667_v0 = vadd.f32 %v2438_v40, %v2408_v8 }
 0x18d   :  { %v634_v34 = vpop.f32.mrf.mxu0  ;;  %1940 = vtanh.f32 %v640_v43  ;;  %v2732_v33 = vpop.eup %1932  ;;  %v884_v43 = vadd.f32 %v2717_v62, %v883_v48  ;;  %v672_v4 = vadd.f32 %v2438_v40, %v2412_v12  ;;  %v675_v8 = vadd.f32 %v2438_v40, %v2416_v16 }
 0x18e   :  { %v635_v9 = vadd.f32 %v2438_v40, %v634_v34  ;;  %v1037_v51 = vadd.f32 %v1036_v23, %v965_v44 }
 0x18f   :  { %v1745_v50 = vpop.f32.mrf.mxu0  ;;  %v885_v35 = vadd.f32 %v2725_v46, %v884_v43 }
 0x190   :  { %1942 = vtanh.f32 %v635_v9  ;;  %v1038_v6 = vadd.f32 %v1037_v51, %v966_v1 }
 0x191   :  { %1944 = vtanh.f32 %v643_v31  ;;  %v2739_v34 = vpop.eup %1934  ;;  %v968_v31 = vmul.f32 %v2732_v33, %v2732_v33  ;;  %v886_v50 = vadd.f32 %v2732_v33, %v885_v35 }
 0x192   :  { %1946 = vtanh.f32 %v648_v27  ;;  %v1039_v44 = vadd.f32 %v1038_v6, %v967_v52  ;;  %v969_v27 = vmul.f32 %v2739_v34, %v2739_v34 }
 0x193   :  { %1948 = vtanh.f32 %v651_v42  ;;  %v887_v23 = vadd.f32 %v2739_v34, %v886_v50 }
 0x194   :  { %1950 = vtanh.f32 %v656_v63  ;;  %v1040_v13 = vadd.f32 %v1039_v44, %v968_v31 }
 0x195   :  { %v2746_v9 = vpop.eup %1936  ;;  %1952 = vtanh.f32 %v659_v56 }
 0x196   :  { %v970_v48 = vmul.f32 %v2746_v9, %v2746_v9  ;;  %v1041_v42 = vadd.f32 %v1040_v13, %v969_v27  ;;  %v888_v51 = vadd.f32 %v2746_v9, %v887_v23  ;;  %1954 = vtanh.f32 %v664_v60 }
 0x197   :  { %1956 = vtanh.f32 %v667_v0  ;;  %v680_v60 = vadd.f32 %v2438_v40, %v2420_v20  ;;  %v683_v0 = vadd.f32 %v2438_v40, %v2424_v24  ;;  %v688_v20 = vadd.f32 %v2438_v40, %v2428_v28 }
 0x198   :  { %v1042_v63 = vadd.f32 %v1041_v42, %v970_v48  ;;  %1958 = vtanh.f32 %v672_v4  ;;  %v691_v24 = vadd.f32 %v2438_v40, %v2432_v32  ;;  %v696_v28 = vadd.f32 %v2438_v40, %v2436_v36 }
 0x199   :  { %v2758_v1 = vpop.eup %1938  ;;  %1960 = vtanh.f32 %v675_v8  ;;  %v699_v32 = vadd.f32 %v2438_v40, %v2442_v45  ;;  %v704_v36 = vadd.f32 %v2438_v40, %v2452_v58 }
 0x19a   :  { %v971_v43 = vmul.f32 %v2758_v1, %v2758_v1  ;;  %v2765_v52 = vpop.eup %1940  ;;  %v889_v6 = vadd.f32 %v2758_v1, %v888_v51  ;;  %1962 = vtanh.f32 %v680_v60 }
 0x19b   :  { %v973_v12 = vmul.f32 %v2765_v52, %v2765_v52  ;;  %1964 = vtanh.f32 %v683_v0 }
 0x19c   :  { %v1043_v56 = vadd.f32 %v1042_v63, %v971_v43  ;;  %1966 = vtanh.f32 %v688_v20 }
 0x19d   :  { %v2770_v35 = vpop.eup %1942  ;;  %1968 = vtanh.f32 %v691_v24 }
 0x19e   :  { %v2772_v31 = vpop.eup %1944  ;;  %v890_v44 = vadd.f32 %v2770_v35, %v889_v6  ;;  %v972_v50 = vmul.f32 %v2770_v35, %v2770_v35  ;;  %1970 = vtanh.f32 %v696_v28 }
 0x19f   :  { %v2781_v27 = vpop.eup %1946  ;;  %v974_v16 = vmul.f32 %v2772_v31, %v2772_v31  ;;  %1972 = vtanh.f32 %v699_v32 }
 0x1a0   :  { %v891_v13 = vadd.f32 %v2765_v52, %v890_v44  ;;  %v1044_v23 = vadd.f32 %v1043_v56, %v972_v50  ;;  %v2788_v48 = vpop.eup %1948  ;;  %v975_v43 = vmul.f32 %v2781_v27, %v2781_v27  ;;  %1974 = vtanh.f32 %v704_v36 }
 0x1a1   :  { %v2795_v4 = vpop.eup %1950  ;;  %v976_v8 = vmul.f32 %v2788_v48, %v2788_v48 }
 0x1a2   :  { %v892_v42 = vadd.f32 %v2772_v31, %v891_v13  ;;  %v1045_v51 = vadd.f32 %v1044_v23, %v973_v12  ;;  %v2802_v56 = vpop.eup %1952  ;;  %v977_v12 = vmul.f32 %v2795_v4, %v2795_v4 }
 0x1a3   :  { %v2812_v23 = vpop.eup %1954 }
 0x1a4   :  { %v893_v63 = vadd.f32 %v2781_v27, %v892_v42  ;;  %v1046_v6 = vadd.f32 %v1045_v51, %v974_v16  ;;  %v978_v16 = vmul.f32 %v2802_v56, %v2802_v56  ;;  %v2816_v0 = vpop.eup %1956 }
 0x1a5   :  { %v980_v45 = vmul.f32 %v2816_v0, %v2816_v0 }
 0x1a6   :  { %v894_v44 = vadd.f32 %v2788_v48, %v893_v63  ;;  %v1047_v50 = vadd.f32 %v1046_v6, %v975_v43  ;;  %v979_v43 = vmul.f32 %v2812_v23, %v2812_v23  ;;  %v2826_v6 = vpop.eup %1958 }
 0x1a7   :  { %v2833_v58 = vpop.eup %1960 }
 0x1a8   :  { %v895_v60 = vadd.f32 %v2795_v4, %v894_v44  ;;  %v1048_v13 = vadd.f32 %v1047_v50, %v976_v8  ;;  %v707_v8 = vadd.f32 %v2438_v40, %v2460_v39  ;;  %v712_v50 = vadd.f32 %v2438_v40, %v2468_v10  ;;  %v2840_v39 = vpop.eup %1962 }
 0x1a9   :  { %4573 = vst [vmem:[#allocation32_spill] sm:$0xff] %v2840_v39  ;;  %v720_v10 = vadd.f32 %v2438_v40, %v2488_v3  ;;  %v983_v36 = vmul.f32 %v2840_v39, %v2840_v39  ;;  %v728_v3 = vadd.f32 %v2438_v40, %v2525_v14 }
 0x1aa   :  { %v896_v42 = vadd.f32 %v2802_v56, %v895_v60  ;;  %v1049_v51 = vadd.f32 %v1048_v13, %v977_v12  ;;  %v981_v12 = vmul.f32 %v2826_v6, %v2826_v6  ;;  %1976 = vtanh.f32 %v707_v8 }
 0x1ab   :  { %v715_v13 = vadd.f32 %v2438_v40, %v2476_v18  ;;  %1978 = vtanh.f32 %v712_v50  ;;  %v723_v18 = vadd.f32 %v2438_v40, %v2506_v53  ;;  %v731_v53 = vadd.f32 %v2438_v40, %v2543_v49 }
 0x1ac   :  { %v897_v20 = vadd.f32 %v2812_v23, %v896_v42  ;;  %v1050_v63 = vadd.f32 %v1049_v51, %v978_v16  ;;  %v982_v16 = vmul.f32 %v2833_v58, %v2833_v58  ;;  %v2847_v51 = vpop.eup %1964  ;;  %v736_v49 = vadd.f32 %v2438_v40, %v2561_v59 }
 0x1ad   :  { %4574 = vst [vmem:[#allocation33_spill] sm:$0xff] %v2847_v51  ;;  %1980 = vtanh.f32 %v715_v13  ;;  %v984_v8 = vmul.f32 %v2847_v51, %v2847_v51 }
 0x1ae   :  { %v898_v24 = vadd.f32 %v2816_v0, %v897_v20  ;;  %v1051_v44 = vadd.f32 %v1050_v63, %v979_v43  ;;  %v2854_v63 = vpop.eup %1966  ;;  %1982 = vtanh.f32 %v720_v10 }
 0x1af   :  { %4575 = vst [vmem:[#allocation34_spill] sm:$0xff] %v2854_v63  ;;  %v985_v50 = vmul.f32 %v2854_v63, %v2854_v63  ;;  %1984 = vtanh.f32 %v723_v18 }
 0x1b0   :  { %v899_v28 = vadd.f32 %v2826_v6, %v898_v24  ;;  %v1052_v60 = vadd.f32 %v1051_v44, %v980_v45  ;;  %v2861_v44 = vpop.eup %1968  ;;  %1986 = vtanh.f32 %v728_v3 }
 0x1b1   :  { %4576 = vst [vmem:[#allocation35_spill] sm:$0xff] %v2861_v44  ;;  %v986_v13 = vmul.f32 %v2861_v44, %v2861_v44  ;;  %1988 = vtanh.f32 %v731_v53 }
 0x1b2   :  { %v1053_v32 = vadd.f32 %v1052_v60, %v981_v12  ;;  %v900_v42 = vadd.f32 %v2833_v58, %v899_v28  ;;  %v2868_v60 = vpop.eup %1970  ;;  %1990 = vtanh.f32 %v736_v49  ;;  %v752_v49 = vadd.f32 %v2438_v40, %v2623_v47 }
 0x1b3   :  { %4577 = vst [vmem:[#allocation36_spill] sm:$0xff] %v2868_v60  ;;  %v987_v10 = vmul.f32 %v2868_v60, %v2868_v60 }
 0x1b4   :  { %v901_v43 = vadd.f32 %v2840_v39, %v900_v42  ;;  %v1054_v20 = vadd.f32 %v1053_v32, %v982_v16  ;;  %v2875_v42 = vpop.eup %1972 }
 0x1b5   :  { %4578 = vst [vmem:[#allocation37_spill] sm:$0xff] %v2875_v42  ;;  %v2877_v14 = vpop.eup %1974  ;;  %v988_v18 = vmul.f32 %v2875_v42, %v2875_v42 }
 0x1b6   :  { %v902_v45 = vadd.f32 %v2847_v51, %v901_v43  ;;  %v1055_v24 = vadd.f32 %v1054_v20, %v983_v36  ;;  %4579 = vst [vmem:[#allocation38_spill] sm:$0xff] %v2877_v14  ;;  %v989_v3 = vmul.f32 %v2877_v14, %v2877_v14 }
 0x1b7   :  { %v2884_v20 = vpop.eup %1976 }
 0x1b8   :  { %v903_v12 = vadd.f32 %v2854_v63, %v902_v45  ;;  %v1056_v28 = vadd.f32 %v1055_v24, %v984_v8  ;;  %4580 = vst [vmem:[#allocation39_spill] sm:$0xff] %v2884_v20  ;;  %v739_v24 = vadd.f32 %v2438_v40, %v2577_v41  ;;  %v990_v53 = vmul.f32 %v2884_v20, %v2884_v20 }
 0x1ba   :  { %v904_v16 = vadd.f32 %v2861_v44, %v903_v12  ;;  %v1057_v32 = vadd.f32 %v1056_v28, %v985_v50  ;;  %v2893_v50 = vpop.eup %1978  ;;  %v744_v28 = vadd.f32 %v2438_v40, %v2593_v57  ;;  %1992 = vtanh.f32 %v739_v24 }
 0x1bb   :  { %4581 = vst [vmem:[#allocation40_spill] sm:$0xff] %v2893_v50  ;;  %v755_v24 = vadd.f32 %v2438_v40, %v2638_v5 }
 0x1bc   :  { %v905_v36 = vadd.f32 %v2868_v60, %v904_v16  ;;  %v1058_v43 = vadd.f32 %v1057_v32, %v986_v13  ;;  %v2900_v13 = vpop.eup %1980  ;;  %v747_v32 = vadd.f32 %v2438_v40, %v2609_v22  ;;  %1994 = vtanh.f32 %v744_v28 }
 0x1bd   :  { %4582 = vst [vmem:[#allocation41_spill] sm:$0xff] %v2900_v13  ;;  %v760_v28 = vadd.f32 %v2438_v40, %v2652_v11 }
 0x1be   :  { %v906_v8 = vadd.f32 %v2875_v42, %v905_v36  ;;  %v1059_v45 = vadd.f32 %v1058_v43, %v987_v10  ;;  %v991_v10 = vmul.f32 %v2893_v50, %v2893_v50  ;;  %v2907_v36 = vpop.eup %1982  ;;  %1996 = vtanh.f32 %v747_v32 }
 0x1bf   :  { %4583 = vst [vmem:[#allocation42_spill] sm:$0xff] %v2907_v36  ;;  %1998 = vtanh.f32 %v752_v49  ;;  %v763_v32 = vadd.f32 %v2438_v40, %v2666_v2  ;;  %v768_v49 = vadd.f32 %v2438_v40, %v2680_v37 }
 0x1c0   :  { %v907_v12 = vadd.f32 %v2877_v14, %v906_v8  ;;  %v1060_v59 = vadd.f32 %v1059_v45, %v988_v18  ;;  %v992_v18 = vmul.f32 %v2900_v13, %v2900_v13  ;;  %v2914_v8 = vpop.eup %1984  ;;  %2000 = vtanh.f32 %v755_v24 }
 0x1c1   :  { %4584 = vst [vmem:[#allocation43_spill] sm:$0xff] %v2914_v8  ;;  %2002 = vtanh.f32 %v760_v28  ;;  %v771_v24 = vadd.f32 %v2438_v40, %v2691_v15 }
 0x1c2   :  { %v908_v16 = vadd.f32 %v2884_v20, %v907_v12  ;;  %v1061_v41 = vadd.f32 %v1060_v59, %v989_v3  ;;  %v993_v3 = vmul.f32 %v2907_v36, %v2907_v36  ;;  %v2921_v12 = vpop.eup %1986  ;;  %2004 = vtanh.f32 %v763_v32 }
 0x1c3   :  { %4585 = vst [vmem:[#allocation44_spill] sm:$0xff] %v2921_v12 }
 0x1c4   :  { %v909_v43 = vadd.f32 %v2893_v50, %v908_v16  ;;  %v1062_v57 = vadd.f32 %v1061_v41, %v990_v53  ;;  %v994_v53 = vmul.f32 %v2914_v8, %v2914_v8  ;;  %v2928_v16 = vpop.eup %1988 }
 0x1c5   :  { %4586 = vst [vmem:[#allocation45_spill] sm:$0xff] %v2928_v16 }
 0x1c6   :  { %v910_v45 = vadd.f32 %v2900_v13, %v909_v43  ;;  %v1063_v22 = vadd.f32 %v1062_v57, %v991_v10  ;;  %v995_v10 = vmul.f32 %v2921_v12, %v2921_v12  ;;  %v776_v43 = vadd.f32 %v2438_v40, %v2704_v61 }
 0x1c8   :  { %v1064_v59 = vadd.f32 %v1063_v22, %v992_v18  ;;  %v911_v47 = vadd.f32 %v2907_v36, %v910_v45  ;;  %v2940_v18 = vpop.eup %1990  ;;  %v996_v45 = vmul.f32 %v2928_v16, %v2928_v16  ;;  %2006 = vtanh.f32 %v776_v43 }
 0x1c9   :  { %4587 = vst [vmem:[#allocation46_spill] sm:$0xff] %v2940_v18  ;;  %v2947_v61 = vpop.eup %1992  ;;  %v997_v37 = vmul.f32 %v2940_v18, %v2940_v18  ;;  %2008 = vtanh.f32 %v768_v49 }
 0x1ca   :  { %v1065_v41 = vadd.f32 %v1064_v59, %v993_v3  ;;  %v912_v5 = vadd.f32 %v2914_v8, %v911_v47  ;;  %4588 = vst [vmem:[#allocation47_spill] sm:$0xff] %v2947_v61  ;;  %v2952_v47 = vpop.eup %1994  ;;  %2010 = vtanh.f32 %v771_v24 }
 0x1cb   :  { %4589 = vst [vmem:[#allocation48_spill] sm:$0xff] %v2952_v47  ;;  %v2957_v40 = vpop.eup %1996  ;;  %v999_v32 = vmul.f32 %v2952_v47, %v2952_v47 }
 0x1cc   :  { %v1066_v57 = vadd.f32 %v1065_v41, %v994_v53  ;;  %v913_v11 = vadd.f32 %v2921_v12, %v912_v5  ;;  %v998_v41 = vmul.f32 %v2947_v61, %v2947_v61  ;;  %4590 = vst [vmem:[#allocation49_spill] sm:$0xff] %v2957_v40 }
 0x1ce   :  { %v1067_v22 = vadd.f32 %v1066_v57, %v995_v10  ;;  %v914_v2 = vadd.f32 %v2928_v16, %v913_v11  ;;  %v2962_v10 = vpop.eup %1998  ;;  %v1000_v11 = vmul.f32 %v2957_v40, %v2957_v40 }
 0x1cf   :  { %4591 = vst [vmem:[#allocation50_spill] sm:$0xff] %v2962_v10  ;;  %v2967_v49 = vpop.eup %2000 }
 0x1d0   :  { %v1068_v3 = vadd.f32 %v1067_v22, %v996_v45  ;;  %v915_v59 = vadd.f32 %v2940_v18, %v914_v2  ;;  %4592 = vst [vmem:[#allocation51_spill] sm:$0xff] %v2967_v49  ;;  %v1001_v2 = vmul.f32 %v2962_v10, %v2962_v10  ;;  %v2972_v24 = vpop.eup %2002 }
 0x1d1   :  { %4593 = vst [vmem:[#allocation52_spill] sm:$0xff] %v2972_v24  ;;  %v4626_v51 = vld [vmem:[#allocation47_spill] sm:$0xff] }
 0x1d2   :  { %v1069_v28 = vadd.f32 %v1068_v3, %v997_v37  ;;  %v916_v53 = vadd.f32 %v2947_v61, %v915_v59  ;;  %v1002_v37 = vmul.f32 %v2967_v49, %v2967_v49 }
 0x1d4   :  { %v1070_v15 = vadd.f32 %v1069_v28, %v998_v41  ;;  %v917_v5 = vadd.f32 %v2952_v47, %v916_v53  ;;  %v2977_v28 = vpop.eup %2004 }
 0x1d5   :  { %4594 = vst [vmem:[#allocation53_spill] sm:$0xff] %v2977_v28  ;;  %v2979_v53 = vpop.eup %2006 }
 0x1d6   :  { %v1071_v43 = vadd.f32 %v1070_v15, %v999_v32  ;;  %v918_v57 = vadd.f32 %v2957_v40, %v917_v5  ;;  %4595 = vst [vmem:[#allocation54_spill] sm:$0xff] %v2979_v53  ;;  %v1003_v5 = vmul.f32 %v2972_v24, %v2972_v24  ;;  %v2984_v32 = vpop.eup %2008 }
 0x1d7   :  { %4596 = vst [vmem:[#allocation55_spill] sm:$0xff] %v2984_v32 }
 0x1d8   :  { %v1072_v45 = vadd.f32 %v1071_v43, %v1000_v11  ;;  %v919_v22 = vadd.f32 %v2962_v10, %v918_v57  ;;  %v1004_v11 = vmul.f32 %v2977_v28, %v2977_v28 }
 0x1da   :  { %v1073_v3 = vadd.f32 %v1072_v45, %v1001_v2  ;;  %v920_v59 = vadd.f32 %v2967_v49, %v919_v22  ;;  %v2989_v45 = vpop.eup %2010  ;;  %v1007_v22 = vmul.f32 %v2979_v53, %v2979_v53  ;;  %v4625_v49 = vld [vmem:[#allocation46_spill] sm:$0xff] }
 0x1db   :  { %4597 = vst [vmem:[#allocation56_spill] sm:$0xff] %v2989_v45 }
 0x1dc   :  { %v1074_v41 = vadd.f32 %v1073_v3, %v1002_v37  ;;  %v921_v15 = vadd.f32 %v2972_v24, %v920_v59  ;;  %v1005_v59 = vmul.f32 %v2984_v32, %v2984_v32  ;;  %v926_v37 = vsel %vm925_vm2, %v2979_v53, 0.0  ;;  %v4628_v53 = vld [vmem:[#allocation49_spill] sm:$0xff] }
 0x1dd   :  { %v1079_v10 = vsel %vm925_vm2, %v1007_v22, 0.0 }
 0x1de   :  { %v1075_v43 = vadd.f32 %v1074_v41, %v1003_v5  ;;  %v922_v57 = vadd.f32 %v2977_v28, %v921_v15  ;;  %v1006_v5 = vmul.f32 %v2989_v45, %v2989_v45 }
 0x1e0   :  { %v1076_v2 = vadd.f32 %v1075_v43, %v1004_v11  ;;  %v923_v3 = vadd.f32 %v2984_v32, %v922_v57  ;;  %v4623_v32 = vld [vmem:[#allocation44_spill] sm:$0xff] }
 0x1e2   :  { %v1077_v41 = vadd.f32 %v1076_v2, %v1005_v59  ;;  %v924_v15 = vadd.f32 %v2989_v45, %v923_v3  ;;  %v4629_v45 = vld [vmem:[#allocation50_spill] sm:$0xff] }
 0x1e4   :  { %v1078_v40 = vadd.f32 %v1077_v41, %v1006_v5  ;;  %v927_v47 = vadd.f32 %v926_v37, %v924_v15  ;;  %v4610_v15 = vld [vmem:[#allocation24_spill] sm:$0xff] }
 0x1e5   :  { %v4619_v5 = vld [vmem:[#allocation40_spill] sm:$0xff] }
 0x1e6   :  { %v928_v61 = vrot.slane %v927_v47, 4  ;;  %v1080_v18 = vadd.f32 %v1079_v10, %v1078_v40  ;;  %v4601_v40 = vld [vmem:[#allocation15_spill] sm:$0xff]  ;;  %v4612_v10 = vld [vmem:[#allocation26_spill] sm:$0xff] }
 0x1e8   :  { %v929_v16 = vadd.f32 %v928_v61, %v927_v47  ;;  %v1081_v43 = vrot.slane %v1080_v18, 4  ;;  %v4608_v47 = vld [vmem:[#allocation22_spill] sm:$0xff]  ;;  %v4627_v61 = vld [vmem:[#allocation48_spill] sm:$0xff] }
 0x1ea   :  { %v930_v11 = vrot.slane %v929_v16, 2  ;;  %v1082_v57 = vadd.f32 %v1081_v43, %v1080_v18  ;;  %v4602_v18 = vld [vmem:[#allocation16_spill] sm:$0xff] }
 0x1ec   :  { %v931_v12 = vadd.f32 %v930_v11, %v929_v16  ;;  %v1083_v8 = vrot.slane %v1082_v57, 2  ;;  %v4598_v11 = vld [vmem:[#allocation12_spill] sm:$0xff]  ;;  %v4617_v16 = vld [vmem:[#allocation31_spill] sm:$0xff] }
 0x1ee   :  { %v932_v36 = vrot.slane %v931_v12, 1  ;;  %v1084_v13 = vadd.f32 %v1083_v8, %v1082_v57  ;;  %v4605_v57 = vld [vmem:[#allocation19_spill] sm:$0xff]  ;;  %v4616_v8 = vld [vmem:[#allocation30_spill] sm:$0xff] }
 0x1f0   :  { %v933_v50 = vadd.f32 %v932_v36, %v931_v12  ;;  %v1085_v2 = vrot.slane %v1084_v13, 1  ;;  %v4609_v12 = vld [vmem:[#allocation23_spill] sm:$0xff] }
 0x1f1   :  { %v4613_v36 = vld [vmem:[#allocation27_spill] sm:$0xff] }
 0x1f2   :  { %v3000_v59 = vmul.f32 0.0017301039, %v933_v50  ;;  %v1086_v3 = vadd.f32 %v1085_v2, %v1084_v13  ;;  %v4599_v2 = vld [vmem:[#allocation13_spill] sm:$0xff]  ;;  %v4614_v13 = vld [vmem:[#allocation28_spill] sm:$0xff] }
 0x1f3   :  { %v4615_v50 = vld [vmem:[#allocation29_spill] sm:$0xff] }
 0x1f4   :  { %v1087_v20 = vmul.f32 0.0017301039, %v1086_v3  ;;  %v1088_v22 = vmul.f32 %v3000_v59, %v3000_v59  ;;  %v4606_v3 = vld [vmem:[#allocation20_spill] sm:$0xff]  ;;  %v4630_v14 = vsub.f32 %v2482_v26, %v3000_v59  ;;  %v4631_v24 = vsub.f32 %v2480_v25, %v3000_v59 }
 0x1f5   :  { %v4632_v44 = vsub.f32 %v2490_v30, %v3000_v59  ;;  %v4633_v42 = vsub.f32 %v2496_v38, %v3000_v59 }
 0x1f6   :  { %v1089_v37 = vsub.f32 %v1087_v20, %v1088_v22  ;;  %v4600_v22 = vld [vmem:[#allocation14_spill] sm:$0xff]  ;;  %v4603_v20 = vld [vmem:[#allocation17_spill] sm:$0xff] }
 0x1f8   :  { %v1090_v41 = vmax.f32 %v1089_v37, 0.0  ;;  %v4607_v37 = vld [vmem:[#allocation21_spill] sm:$0xff] }
 0x1fa   :  { %v1164_v43 = vadd.f32 1e-05, %v1090_v41  ;;  %v4604_v41 = vld [vmem:[#allocation18_spill] sm:$0xff] }
 0x1fc   :  { %2012 = vrsqrt.f32 %v1164_v43  ;;  %v4611_v43 = vld [vmem:[#allocation25_spill] sm:$0xff] }
 0x209   :  { %v3142_v39 = vpop.eup %2012 }
 0x20a   :  { %v3156_v28 = vmul.f32 %v3142_v39, %v4630_v14  ;;  %v3162_v63 = vmul.f32 %v3142_v39, %v4631_v24  ;;  %v3168_v60 = vmul.f32 %v3142_v39, %v4632_v44  ;;  %v3174_v26 = vmul.f32 %v3142_v39, %v4633_v42 }
 0x20b   :  { %v4634_v14 = vsub.f32 %v2508_v54, %v3000_v59  ;;  %v4635_v24 = vsub.f32 %v2516_v19, %v3000_v59  ;;  %v4636_v44 = vsub.f32 %v2527_v55, %v3000_v59  ;;  %v4637_v42 = vsub.f32 %v2534_v7, %v3000_v59 }
 0x20d   :  { %v3180_v25 = vmul.f32 %v3142_v39, %v4634_v14  ;;  %v3186_v30 = vmul.f32 %v3142_v39, %v4635_v24  ;;  %v3192_v38 = vmul.f32 %v3142_v39, %v4636_v44  ;;  %v3198_v54 = vmul.f32 %v3142_v39, %v4637_v42 }
 0x20e   :  { %v4638_v14 = vsub.f32 %v4598_v11, %v3000_v59  ;;  %v4639_v24 = vsub.f32 %v4599_v2, %v3000_v59  ;;  %v4640_v44 = vsub.f32 %v4600_v22, %v3000_v59  ;;  %v4641_v42 = vsub.f32 %v4601_v40, %v3000_v59 }
 0x210   :  { %v3204_v19 = vmul.f32 %v3142_v39, %v4638_v14  ;;  %v3210_v55 = vmul.f32 %v3142_v39, %v4639_v24  ;;  %v3216_v7 = vmul.f32 %v3142_v39, %v4640_v44  ;;  %v3222_v11 = vmul.f32 %v3142_v39, %v4641_v42 }
 0x211   :  { %v4642_v14 = vsub.f32 %v4602_v18, %v3000_v59  ;;  %v4643_v24 = vsub.f32 %v4603_v20, %v3000_v59  ;;  %v4644_v44 = vsub.f32 %v4604_v41, %v3000_v59  ;;  %v4645_v42 = vsub.f32 %v4605_v57, %v3000_v59 }
 0x213   :  { %v3228_v2 = vmul.f32 %v3142_v39, %v4642_v14  ;;  %v3234_v22 = vmul.f32 %v3142_v39, %v4643_v24  ;;  %v3240_v40 = vmul.f32 %v3142_v39, %v4644_v44  ;;  %v3246_v18 = vmul.f32 %v3142_v39, %v4645_v42 }
 0x214   :  { %v4646_v14 = vsub.f32 %v4606_v3, %v3000_v59  ;;  %v4647_v24 = vsub.f32 %v4607_v37, %v3000_v59  ;;  %v4648_v44 = vsub.f32 %v4608_v47, %v3000_v59  ;;  %v4649_v42 = vsub.f32 %v4609_v12, %v3000_v59 }
 0x216   :  { %v3252_v20 = vmul.f32 %v3142_v39, %v4646_v14  ;;  %v3258_v41 = vmul.f32 %v3142_v39, %v4647_v24  ;;  %v3264_v57 = vmul.f32 %v3142_v39, %v4648_v44  ;;  %v3270_v3 = vmul.f32 %v3142_v39, %v4649_v42 }
 0x217   :  { %v4650_v14 = vsub.f32 %v4610_v15, %v3000_v59  ;;  %v4651_v24 = vsub.f32 %v4611_v43, %v3000_v59  ;;  %v4652_v44 = vsub.f32 %v4612_v10, %v3000_v59  ;;  %v4653_v42 = vsub.f32 %v4613_v36, %v3000_v59 }
 0x219   :  { %v3276_v37 = vmul.f32 %v3142_v39, %v4650_v14  ;;  %v3282_v47 = vmul.f32 %v3142_v39, %v4651_v24  ;;  %v3288_v12 = vmul.f32 %v3142_v39, %v4652_v44  ;;  %v3294_v15 = vmul.f32 %v3142_v39, %v4653_v42 }
 0x21a   :  { %v4654_v14 = vsub.f32 %v4614_v13, %v3000_v59  ;;  %v4655_v24 = vsub.f32 %v4615_v50, %v3000_v59  ;;  %v4656_v44 = vsub.f32 %v4616_v8, %v3000_v59  ;;  %v4657_v42 = vsub.f32 %v4617_v16, %v3000_v59 }
 0x21c   :  { %v3300_v43 = vmul.f32 %v3142_v39, %v4654_v14  ;;  %v3306_v10 = vmul.f32 %v3142_v39, %v4655_v24  ;;  %v3312_v36 = vmul.f32 %v3142_v39, %v4656_v44  ;;  %v3318_v13 = vmul.f32 %v3142_v39, %v4657_v42 }
 0x21d   :  { %v4658_v14 = vsub.f32 %v2697_v21, %v3000_v59  ;;  %v4659_v24 = vsub.f32 %v2702_v29, %v3000_v59  ;;  %v4660_v44 = vsub.f32 %v2710_v17, %v3000_v59  ;;  %v4661_v42 = vsub.f32 %v2717_v62, %v3000_v59 }
 0x21f   :  { %v3324_v50 = vmul.f32 %v3142_v39, %v4658_v14  ;;  %v3330_v8 = vmul.f32 %v3142_v39, %v4659_v24  ;;  %v3336_v16 = vmul.f32 %v3142_v39, %v4660_v44  ;;  %v3342_v21 = vmul.f32 %v3142_v39, %v4661_v42 }
 0x220   :  { %v4662_v14 = vsub.f32 %v2725_v46, %v3000_v59  ;;  %v4663_v24 = vsub.f32 %v2732_v33, %v3000_v59  ;;  %v4664_v44 = vsub.f32 %v2739_v34, %v3000_v59  ;;  %v4665_v42 = vsub.f32 %v2746_v9, %v3000_v59 }
 0x222   :  { %v3348_v29 = vmul.f32 %v3142_v39, %v4662_v14  ;;  %v3354_v17 = vmul.f32 %v3142_v39, %v4663_v24  ;;  %v3360_v62 = vmul.f32 %v3142_v39, %v4664_v44  ;;  %v3366_v46 = vmul.f32 %v3142_v39, %v4665_v42 }
 0x223   :  { %v4666_v14 = vsub.f32 %v2758_v1, %v3000_v59  ;;  %v4667_v24 = vsub.f32 %v2770_v35, %v3000_v59  ;;  %v4668_v44 = vsub.f32 %v2765_v52, %v3000_v59  ;;  %v4669_v42 = vsub.f32 %v2772_v31, %v3000_v59 }
 0x225   :  { %v3372_v33 = vmul.f32 %v3142_v39, %v4666_v14  ;;  %v3378_v34 = vmul.f32 %v3142_v39, %v4667_v24  ;;  %v3384_v9 = vmul.f32 %v3142_v39, %v4668_v44  ;;  %v3390_v1 = vmul.f32 %v3142_v39, %v4669_v42 }
 0x226   :  { %v4670_v14 = vsub.f32 %v2781_v27, %v3000_v59  ;;  %v4671_v24 = vsub.f32 %v2788_v48, %v3000_v59  ;;  %v4672_v44 = vsub.f32 %v2795_v4, %v3000_v59  ;;  %v4673_v42 = vsub.f32 %v2802_v56, %v3000_v59 }
 0x228   :  { %v3396_v35 = vmul.f32 %v3142_v39, %v4670_v14  ;;  %v3402_v52 = vmul.f32 %v3142_v39, %v4671_v24  ;;  %v3408_v31 = vmul.f32 %v3142_v39, %v4672_v44  ;;  %v3414_v27 = vmul.f32 %v3142_v39, %v4673_v42 }
 0x229   :  { %v4674_v14 = vsub.f32 %v2812_v23, %v3000_v59  ;;  %v4676_v24 = vsub.f32 %v2816_v0, %v3000_v59  ;;  %v4678_v44 = vsub.f32 %v2826_v6, %v3000_v59  ;;  %v4680_v42 = vsub.f32 %v2833_v58, %v3000_v59 }
 0x22b   :  { %v3420_v48 = vmul.f32 %v3142_v39, %v4674_v14  ;;  %v3426_v4 = vmul.f32 %v3142_v39, %v4676_v24  ;;  %v3432_v56 = vmul.f32 %v3142_v39, %v4678_v44  ;;  %v3438_v23 = vmul.f32 %v3142_v39, %v4680_v42  ;;  %v4682_v14 = vld [vmem:[#allocation32_spill] sm:$0xff]  ;;  %v4685_v24 = vld [vmem:[#allocation33_spill] sm:$0xff]  ;;  %v4688_v44 = vld [vmem:[#allocation34_spill] sm:$0xff] }
 0x22c   :  { %v4691_v42 = vld [vmem:[#allocation35_spill] sm:$0xff] }
 0x22d   :  { %4675 = vst [vmem:[#allocation12_spill] sm:$0xff] %v3420_v48  ;;  %4677 = vst [vmem:[#allocation13_spill] sm:$0xff] %v3426_v4  ;;  %v4683_v48 = vsub.f32 %v4682_v14, %v3000_v59  ;;  %v4686_v4 = vsub.f32 %v4685_v24, %v3000_v59 }
 0x22e   :  { %4679 = vst [vmem:[#allocation14_spill] sm:$0xff] %v3432_v56  ;;  %4681 = vst [vmem:[#allocation15_spill] sm:$0xff] %v3438_v23  ;;  %v4689_v56 = vsub.f32 %v4688_v44, %v3000_v59  ;;  %v4692_v23 = vsub.f32 %v4691_v42, %v3000_v59 }
 0x22f   :  { %v3444_v0 = vmul.f32 %v3142_v39, %v4683_v48  ;;  %v3450_v6 = vmul.f32 %v3142_v39, %v4686_v4  ;;  %v4694_v48 = vld [vmem:[#allocation36_spill] sm:$0xff]  ;;  %v4696_v4 = vld [vmem:[#allocation37_spill] sm:$0xff] }
 0x230   :  { %v3456_v58 = vmul.f32 %v3142_v39, %v4689_v56  ;;  %v3462_v14 = vmul.f32 %v3142_v39, %v4692_v23  ;;  %v4699_v56 = vld [vmem:[#allocation38_spill] sm:$0xff]  ;;  %v4702_v23 = vld [vmem:[#allocation39_spill] sm:$0xff] }
 0x231   :  { %4684 = vst [vmem:[#allocation16_spill] sm:$0xff] %v3444_v0  ;;  %4687 = vst [vmem:[#allocation17_spill] sm:$0xff] %v3450_v6  ;;  %v4695_v0 = vsub.f32 %v4694_v48, %v3000_v59  ;;  %v4697_v6 = vsub.f32 %v4696_v4, %v3000_v59 }
 0x232   :  { %4690 = vst [vmem:[#allocation18_spill] sm:$0xff] %v3456_v58  ;;  %4693 = vst [vmem:[#allocation19_spill] sm:$0xff] %v3462_v14  ;;  %v4700_v58 = vsub.f32 %v4699_v56, %v3000_v59  ;;  %v4703_v14 = vsub.f32 %v4702_v23, %v3000_v59 }
 0x233   :  { %v3468_v24 = vmul.f32 %v3142_v39, %v4695_v0  ;;  %v3474_v44 = vmul.f32 %v3142_v39, %v4697_v6  ;;  %v4705_v0 = vsub.f32 %v4619_v5, %v3000_v59  ;;  %v4706_v6 = vld [vmem:[#allocation41_spill] sm:$0xff] }
 0x234   :  { %v3480_v42 = vmul.f32 %v3142_v39, %v4700_v58  ;;  %v3486_v48 = vmul.f32 %v3142_v39, %v4703_v14  ;;  %v4709_v58 = vld [vmem:[#allocation42_spill] sm:$0xff]  ;;  %v4711_v14 = vld [vmem:[#allocation43_spill] sm:$0xff] }
 0x235   :  { %4698 = vst [vmem:[#allocation20_spill] sm:$0xff] %v3474_v44  ;;  %v3492_v4 = vmul.f32 %v3142_v39, %v4705_v0  ;;  %v4707_v44 = vsub.f32 %v4706_v6, %v3000_v59  ;;  %v4713_v0 = vsub.f32 %v4623_v32, %v3000_v59 }
 0x236   :  { %4701 = vst [vmem:[#allocation21_spill] sm:$0xff] %v3480_v42  ;;  %4704 = vst [vmem:[#allocation22_spill] sm:$0xff] %v3486_v48  ;;  %v4710_v42 = vsub.f32 %v4709_v58, %v3000_v59  ;;  %v4712_v48 = vsub.f32 %v4711_v14, %v3000_v59 }
 0x237   :  { %v3498_v56 = vmul.f32 %v3142_v39, %v4707_v44  ;;  %v3516_v6 = vmul.f32 %v3142_v39, %v4713_v0  ;;  %v4714_v44 = vld [vmem:[#allocation45_spill] sm:$0xff]  ;;  %v3536_v0 = vld [vmem:[#allocation6] ss:$0 sm:$0xff] }
 0x238   :  { %v3504_v23 = vmul.f32 %v3142_v39, %v4710_v42  ;;  %v3510_v5 = vmul.f32 %v3142_v39, %v4712_v48  ;;  %v4716_v42 = vsub.f32 %v4625_v49, %v3000_v59  ;;  %v4718_v48 = vsub.f32 %v4626_v51, %v3000_v59 }
 0x239   :  { %4708 = vst [vmem:[#allocation23_spill] sm:$0xff] %v3498_v56  ;;  %v4715_v56 = vsub.f32 %v4714_v44, %v3000_v59  ;;  %v4720_v44 = vsub.f32 %v4627_v61, %v3000_v59  ;;  %v4722_v49 = vsub.f32 %v4628_v53, %v3000_v59  ;;  %v4724_v51 = vsub.f32 %v4629_v45, %v3000_v59 }
 0x23a   :  { %v3528_v14 = vmul.f32 %v3142_v39, %v4716_v42  ;;  %v3534_v32 = vmul.f32 %v3142_v39, %v4718_v48 }
 0x23b   :  { %v3522_v58 = vmul.f32 %v3142_v39, %v4715_v56  ;;  %v3542_v56 = vmul.f32 %v3142_v39, %v4720_v44  ;;  %v3548_v42 = vmul.f32 %v3142_v39, %v4722_v49  ;;  %v3554_v48 = vmul.f32 %v3142_v39, %v4724_v51  ;;  %v4729_v44 = vld [vmem:[#allocation52_spill] sm:$0xff]  ;;  %v4732_v49 = vld [vmem:[#allocation53_spill] sm:$0xff]  ;;  %v4734_v51 = vld [vmem:[#allocation55_spill] sm:$0xff] }
 0x23c   :  { %4717 = vst [vmem:[#allocation24_spill] sm:$0xff] %v3528_v14  ;;  %4719 = vst [vmem:[#allocation25_spill] sm:$0xff] %v3534_v32  ;;  %v4726_v32 = vld [vmem:[#allocation51_spill] sm:$0xff] }
 0x23d   :  { %4721 = vst [vmem:[#allocation26_spill] sm:$0xff] %v3542_v56  ;;  %4723 = vst [vmem:[#allocation27_spill] sm:$0xff] %v3548_v42  ;;  %v4727_v14 = vsub.f32 %v4726_v32, %v3000_v59  ;;  %v4730_v56 = vsub.f32 %v4729_v44, %v3000_v59  ;;  %v4733_v42 = vsub.f32 %v4732_v49, %v3000_v59 }
 0x23e   :  { %4725 = vst [vmem:[#allocation28_spill] sm:$0xff] %v3554_v48  ;;  %v4735_v48 = vsub.f32 %v4734_v51, %v3000_v59  ;;  %v3602_v51 = vmul.f32 %v3536_v0, %v3168_v60  ;;  %v3622_v60 = vmul.f32 %v3536_v0, %v3198_v54  ;;  %v3646_v54 = vmul.f32 %v3536_v0, %v3234_v22 }
 0x23f   :  { %v3560_v61 = vmul.f32 %v3142_v39, %v4727_v14  ;;  %v3566_v53 = vmul.f32 %v3142_v39, %v4730_v56  ;;  %v3572_v45 = vmul.f32 %v3142_v39, %v4733_v42  ;;  %v4736_v14 = vld [vmem:[#allocation56_spill] sm:$0xff]  ;;  %v4738_v56 = vld [vmem:[#allocation54_spill] sm:$0xff]  ;;  %v3594_v42 = vmul.f32 %v3536_v0, %v3156_v28 }
 0x240   :  { %v3578_v32 = vmul.f32 %v3142_v39, %v4735_v48  ;;  %v3598_v48 = vmul.f32 %v3536_v0, %v3162_v63  ;;  %v3614_v28 = vmul.f32 %v3536_v0, %v3186_v30  ;;  %v3618_v63 = vmul.f32 %v3536_v0, %v3192_v38 }
 0x241   :  { %4728 = vst [vmem:[#allocation29_spill] sm:$0xff] %v3560_v61  ;;  %4731 = vst [vmem:[#allocation30_spill] sm:$0xff] %v3566_v53  ;;  %v4737_v61 = vsub.f32 %v4736_v14, %v3000_v59  ;;  %v4739_v53 = vsub.f32 %v4738_v56, %v3000_v59  ;;  %v3626_v59 = vmul.f32 %v3536_v0, %v3204_v19  ;;  %v4746_v14 = vld [vmem:[#allocation14_spill] sm:$0xff]  ;;  %v4747_v56 = vld [vmem:[#allocation15_spill] sm:$0xff] }
 0x242   :  { %v3638_v30 = vmul.f32 %v3536_v0, %v3222_v11  ;;  %v3642_v38 = vmul.f32 %v3536_v0, %v3228_v2  ;;  %v3650_v19 = vmul.f32 %v3536_v0, %v3240_v40  ;;  %v3662_v11 = vmul.f32 %v3536_v0, %v3258_v41 }
 0x243   :  { %v3584_v44 = vmul.f32 %v3142_v39, %v4737_v61  ;;  %v3590_v49 = vmul.f32 %v3142_v39, %v4739_v53  ;;  %v3606_v61 = vmul.f32 %v3536_v0, %v3174_v26  ;;  %v3610_v39 = vmul.f32 %v3536_v0, %v3180_v25  ;;  %v4744_v53 = vld [vmem:[#allocation13_spill] sm:$0xff] }
 0x244   :  { %v3630_v26 = vmul.f32 %v3536_v0, %v3210_v55  ;;  %v3634_v25 = vmul.f32 %v3536_v0, %v3216_v7  ;;  %v3654_v55 = vmul.f32 %v3536_v0, %v3246_v18  ;;  %v3658_v7 = vmul.f32 %v3536_v0, %v3252_v20 }
 0x245   :  { %v3666_v2 = vmul.f32 %v3536_v0, %v3264_v57  ;;  %v3670_v22 = vmul.f32 %v3536_v0, %v3270_v3  ;;  %v3674_v40 = vmul.f32 %v3536_v0, %v3276_v37  ;;  %v3678_v18 = vmul.f32 %v3536_v0, %v3282_v47 }
 0x246   :  { %v3682_v20 = vmul.f32 %v3536_v0, %v3288_v12  ;;  %v3686_v41 = vmul.f32 %v3536_v0, %v3294_v15  ;;  %v3690_v57 = vmul.f32 %v3536_v0, %v3300_v43  ;;  %v3694_v3 = vmul.f32 %v3536_v0, %v3306_v10 }
 0x247   :  { %v3698_v37 = vmul.f32 %v3536_v0, %v3312_v36  ;;  %v3702_v47 = vmul.f32 %v3536_v0, %v3318_v13  ;;  %v3706_v12 = vmul.f32 %v3536_v0, %v3324_v50  ;;  %v3710_v15 = vmul.f32 %v3536_v0, %v3330_v8 }
 0x248   :  { %v3714_v43 = vmul.f32 %v3536_v0, %v3336_v16  ;;  %v3718_v10 = vmul.f32 %v3536_v0, %v3342_v21  ;;  %v3722_v36 = vmul.f32 %v3536_v0, %v3348_v29  ;;  %v3726_v13 = vmul.f32 %v3536_v0, %v3354_v17 }
 0x249   :  { %v3730_v50 = vmul.f32 %v3536_v0, %v3360_v62  ;;  %v3734_v8 = vmul.f32 %v3536_v0, %v3366_v46  ;;  %v3738_v16 = vmul.f32 %v3536_v0, %v3372_v33  ;;  %v3742_v21 = vmul.f32 %v3536_v0, %v3378_v34 }
 0x24a   :  { %v3746_v29 = vmul.f32 %v3536_v0, %v3384_v9  ;;  %v3750_v17 = vmul.f32 %v3536_v0, %v3390_v1  ;;  %v3754_v62 = vmul.f32 %v3536_v0, %v3396_v35  ;;  %v3758_v46 = vmul.f32 %v3536_v0, %v3402_v52  ;;  %v4742_v9 = vld [vmem:[#allocation12_spill] sm:$0xff] }
 0x24b   :  { %v3762_v33 = vmul.f32 %v3536_v0, %v3408_v31  ;;  %v3766_v34 = vmul.f32 %v3536_v0, %v3414_v27  ;;  %v3770_v1 = vmul.f32 %v3536_v0, %v4742_v9  ;;  %v3774_v35 = vmul.f32 %v3536_v0, %v4744_v53 }
 0x24c   :  { %v3778_v52 = vmul.f32 %v3536_v0, %v4746_v14  ;;  %v3782_v31 = vmul.f32 %v3536_v0, %v4747_v56  ;;  %v3802_v56 = vmul.f32 %v3536_v0, %v3468_v24 }
 0x24d   :  { %4740 = vst [vmem:[#allocation31_spill] sm:$0xff] %v3762_v33  ;;  %4741 = vst [vmem:[#allocation40_spill] sm:$0xff] %v3766_v34  ;;  %v4749_v33 = vld [vmem:[#allocation16_spill] sm:$0xff]  ;;  %v4751_v34 = vld [vmem:[#allocation17_spill] sm:$0xff] }
 0x24e   :  { %4743 = vst [vmem:[#allocation44_spill] sm:$0xff] %v3770_v1  ;;  %4745 = vst [vmem:[#allocation46_spill] sm:$0xff] %v3774_v35  ;;  %v3786_v27 = vmul.f32 %v3536_v0, %v4749_v33  ;;  %v3790_v9 = vmul.f32 %v3536_v0, %v4751_v34  ;;  %v4753_v1 = vld [vmem:[#allocation18_spill] sm:$0xff]  ;;  %v4754_v35 = vld [vmem:[#allocation19_spill] sm:$0xff] }
 0x24f   :  { %4748 = vst [vmem:[#allocation47_spill] sm:$0xff] %v3782_v31  ;;  %v3794_v53 = vmul.f32 %v3536_v0, %v4753_v1  ;;  %v3798_v14 = vmul.f32 %v3536_v0, %v4754_v35  ;;  %v4756_v31 = vld [vmem:[#allocation20_spill] sm:$0xff]  ;;  %v3818_v35 = vmul.f32 %v3536_v0, %v3492_v4  ;;  %v3838_v4 = vmul.f32 %v3536_v0, %v3522_v58 }
 0x250   :  { %4750 = vst [vmem:[#allocation48_spill] sm:$0xff] %v3786_v27  ;;  %4752 = vst [vmem:[#allocation49_spill] sm:$0xff] %v3790_v9  ;;  %v3806_v33 = vmul.f32 %v3536_v0, %v4756_v31  ;;  %v4757_v27 = vld [vmem:[#allocation21_spill] sm:$0xff]  ;;  %v4758_v9 = vld [vmem:[#allocation22_spill] sm:$0xff]  ;;  %v3826_v31 = vmul.f32 %v3536_v0, %v3504_v23 }
 0x251   :  { %4755 = vst [vmem:[#allocation50_spill] sm:$0xff] %v3798_v14  ;;  %v3810_v34 = vmul.f32 %v3536_v0, %v4757_v27  ;;  %v3814_v1 = vmul.f32 %v3536_v0, %v4758_v9  ;;  %4760 = vst [vmem:[#allocation33_spill] sm:$0xff] %v3818_v35  ;;  %v4761_v14 = vld [vmem:[#allocation23_spill] sm:$0xff]  ;;  %v3830_v27 = vmul.f32 %v3536_v0, %v3510_v5  ;;  %v4767_v35 = vld [vmem:[#allocation24_spill] sm:$0xff] }
 0x252   :  { %v3822_v24 = vmul.f32 %v3536_v0, %v4761_v14  ;;  %4763 = vst [vmem:[#allocation35_spill] sm:$0xff] %v3826_v31  ;;  %v3834_v9 = vmul.f32 %v3536_v0, %v3516_v6  ;;  %4766 = vst [vmem:[#allocation38_spill] sm:$0xff] %v3838_v4  ;;  %v3842_v14 = vmul.f32 %v3536_v0, %v4767_v35  ;;  %v4769_v23 = vld [vmem:[#allocation25_spill] sm:$0xff]  ;;  %v4770_v5 = vld [vmem:[#allocation26_spill] sm:$0xff] }
 0x253   :  { %4759 = vst [vmem:[#allocation32_spill] sm:$0xff] %v3814_v1  ;;  %4764 = vst [vmem:[#allocation36_spill] sm:$0xff] %v3830_v27  ;;  %v3848_v31 = vmul.f32 %v3536_v0, %v4769_v23  ;;  %v3852_v27 = vmul.f32 %v3536_v0, %v4770_v5  ;;  %v4771_v6 = vld [vmem:[#allocation27_spill] sm:$0xff]  ;;  %v4772_v58 = vld [vmem:[#allocation28_spill] sm:$0xff]  ;;  %v3872_v5 = vmul.f32 %v3536_v0, %v3572_v45 }
 0x254   :  { %4762 = vst [vmem:[#allocation34_spill] sm:$0xff] %v3822_v24  ;;  %4765 = vst [vmem:[#allocation37_spill] sm:$0xff] %v3834_v9  ;;  %v3844_v24 = vld [vmem:[#allocation7] ss:$0 sm:$0xff]  ;;  %v3856_v9 = vmul.f32 %v3536_v0, %v4771_v6  ;;  %v3860_v4 = vmul.f32 %v3536_v0, %v4772_v58  ;;  %v4773_v35 = vld [vmem:[#allocation29_spill] sm:$0xff]  ;;  %v3876_v6 = vmul.f32 %v3536_v0, %v3578_v32 }
 0x255   :  { %4768 = vst [vmem:[#allocation39_spill] sm:$0xff] %v3842_v14  ;;  %v3864_v14 = vmul.f32 %v3536_v0, %v4773_v35  ;;  %v4774_v1 = vld [vmem:[#allocation30_spill] sm:$0xff]  ;;  %v3880_v58 = vmul.f32 %v3536_v0, %v3584_v44  ;;  %v3884_v35 = vmul.f32 %v3536_v0, %v3590_v49  ;;  %v3892_v45 = vadd.f32 %v3844_v24, %v3598_v48 }
 0x256   :  { %v3868_v23 = vmul.f32 %v3536_v0, %v4774_v1  ;;  %v3888_v1 = vadd.f32 %v3844_v24, %v3594_v42  ;;  %v3896_v32 = vadd.f32 %v3844_v24, %v3602_v51  ;;  %v3900_v44 = vadd.f32 %v3844_v24, %v3606_v61 }
 0x257   :  { %v3904_v0 = vadd.f32 %v3844_v24, %v3610_v39  ;;  %v3908_v49 = vadd.f32 %v3844_v24, %v3614_v28  ;;  %v3912_v42 = vadd.f32 %v3844_v24, %v3618_v63  ;;  %v3916_v48 = vadd.f32 %v3844_v24, %v3622_v60 }
 0x258   :  { %v3920_v51 = vadd.f32 %v3844_v24, %v3626_v59  ;;  %v3924_v61 = vadd.f32 %v3844_v24, %v3630_v26  ;;  %v3928_v39 = vadd.f32 %v3844_v24, %v3634_v25  ;;  %v3932_v28 = vadd.f32 %v3844_v24, %v3638_v30 }
 0x259   :  { %v3936_v63 = vadd.f32 %v3844_v24, %v3642_v38  ;;  %v3940_v60 = vadd.f32 %v3844_v24, %v3646_v54  ;;  %v3944_v59 = vadd.f32 %v3844_v24, %v3650_v19  ;;  %v3948_v26 = vadd.f32 %v3844_v24, %v3654_v55 }
 0x25a   :  { %v3952_v25 = vadd.f32 %v3844_v24, %v3658_v7  ;;  %v3956_v30 = vadd.f32 %v3844_v24, %v3662_v11  ;;  %v3960_v38 = vadd.f32 %v3844_v24, %v3666_v2  ;;  %v3964_v54 = vadd.f32 %v3844_v24, %v3670_v22 }
 0x25b   :  { %v3968_v19 = vadd.f32 %v3844_v24, %v3674_v40  ;;  %v3972_v55 = vadd.f32 %v3844_v24, %v3678_v18  ;;  %v3976_v7 = vadd.f32 %v3844_v24, %v3682_v20  ;;  %v3980_v11 = vadd.f32 %v3844_v24, %v3686_v41 }
 0x25c   :  { %v3984_v2 = vadd.f32 %v3844_v24, %v3690_v57  ;;  %v3988_v22 = vadd.f32 %v3844_v24, %v3694_v3  ;;  %v3992_v40 = vadd.f32 %v3844_v24, %v3698_v37  ;;  %v3996_v18 = vadd.f32 %v3844_v24, %v3702_v47 }
 0x25d   :  { %v4000_v20 = vadd.f32 %v3844_v24, %v3706_v12  ;;  %v4004_v41 = vadd.f32 %v3844_v24, %v3710_v15  ;;  %v4008_v57 = vadd.f32 %v3844_v24, %v3714_v43  ;;  %v4012_v3 = vadd.f32 %v3844_v24, %v3718_v10 }
 0x25e   :  { %v4016_v37 = vadd.f32 %v3844_v24, %v3722_v36  ;;  %v4020_v47 = vadd.f32 %v3844_v24, %v3726_v13  ;;  %v4024_v12 = vadd.f32 %v3844_v24, %v3730_v50  ;;  %v4028_v15 = vadd.f32 %v3844_v24, %v3734_v8 }
 0x25f   :  { %v4032_v43 = vadd.f32 %v3844_v24, %v3738_v16  ;;  %v4036_v10 = vadd.f32 %v3844_v24, %v3742_v21  ;;  %v4040_v36 = vadd.f32 %v3844_v24, %v3746_v29  ;;  %v4044_v13 = vadd.f32 %v3844_v24, %v3750_v17  ;;  %v4779_v16 = vld [vmem:[#allocation31_spill] sm:$0xff] }
 0x260   :  { %v4048_v50 = vadd.f32 %v3844_v24, %v3754_v62  ;;  %v4052_v8 = vadd.f32 %v3844_v24, %v3758_v46  ;;  %v4056_v21 = vadd.f32 %v3844_v24, %v4779_v16  ;;  %v4072_v46 = vadd.f32 %v3844_v24, %v3778_v52 }
 0x261   :  { %4775 = vst [vmem:[#allocation41_spill] sm:$0xff] %v4036_v10  ;;  %4776 = vst [vmem:[#allocation42_spill] sm:$0xff] %v4040_v36  ;;  %v4781_v10 = vld [vmem:[#allocation40_spill] sm:$0xff] }
 0x262   :  { %4777 = vst [vmem:[#allocation43_spill] sm:$0xff] %v4044_v13  ;;  %4778 = vst [vmem:[#allocation45_spill] sm:$0xff] %v4052_v8  ;;  %v4060_v29 = vadd.f32 %v3844_v24, %v4781_v10  ;;  %v4783_v36 = vld [vmem:[#allocation44_spill] sm:$0xff]  ;;  %v4784_v13 = vld [vmem:[#allocation46_spill] sm:$0xff] }
 0x263   :  { %4780 = vst [vmem:[#allocation51_spill] sm:$0xff] %v4056_v21  ;;  %v4064_v17 = vadd.f32 %v3844_v24, %v4783_v36  ;;  %v4068_v62 = vadd.f32 %v3844_v24, %v4784_v13  ;;  %v4786_v8 = vld [vmem:[#allocation47_spill] sm:$0xff]  ;;  %v4787_v21 = vld [vmem:[#allocation48_spill] sm:$0xff]  ;;  %v4088_v13 = vadd.f32 %v3844_v24, %v3794_v53 }
 0x264   :  { %4782 = vst [vmem:[#allocation52_spill] sm:$0xff] %v4060_v29  ;;  %v4076_v16 = vadd.f32 %v3844_v24, %v4786_v8  ;;  %v4080_v10 = vadd.f32 %v3844_v24, %v4787_v21  ;;  %v4788_v29 = vld [vmem:[#allocation49_spill] sm:$0xff]  ;;  %v4096_v8 = vadd.f32 %v3844_v24, %v3802_v56  ;;  %v4100_v21 = vadd.f32 %v3844_v24, %v3806_v33 }
 0x265   :  { %4785 = vst [vmem:[#allocation53_spill] sm:$0xff] %v4068_v62  ;;  %v4084_v36 = vadd.f32 %v3844_v24, %v4788_v29  ;;  %4790 = vst [vmem:[#allocation56_spill] sm:$0xff] %v4088_v13  ;;  %v4791_v62 = vld [vmem:[#allocation50_spill] sm:$0xff]  ;;  %v4104_v29 = vadd.f32 %v3844_v24, %v3810_v34  ;;  %v4798_v13 = vld [vmem:[#allocation33_spill] sm:$0xff] }
 0x266   :  { %v4092_v52 = vadd.f32 %v3844_v24, %v4791_v62  ;;  %4793 = vst [vmem:[#allocation12_spill] sm:$0xff] %v4096_v8  ;;  %4794 = vst [vmem:[#allocation13_spill] sm:$0xff] %v4100_v21  ;;  %v4112_v62 = vadd.f32 %v3844_v24, %v4798_v13  ;;  %v4801_v8 = vld [vmem:[#allocation35_spill] sm:$0xff]  ;;  %v4802_v21 = vld [vmem:[#allocation36_spill] sm:$0xff] }
 0x267   :  { %4789 = vst [vmem:[#allocation55_spill] sm:$0xff] %v4084_v36  ;;  %4795 = vst [vmem:[#allocation14_spill] sm:$0xff] %v4104_v29  ;;  %v4796_v36 = vld [vmem:[#allocation32_spill] sm:$0xff]  ;;  %v4120_v33 = vadd.f32 %v3844_v24, %v4801_v8  ;;  %v4124_v34 = vadd.f32 %v3844_v24, %v4802_v21  ;;  %v4803_v29 = vld [vmem:[#allocation37_spill] sm:$0xff]  ;;  %v4140_v8 = vadd.f32 %v3844_v24, %v3848_v31 }
 0x268   :  { %4792 = vst [vmem:[#allocation54_spill] sm:$0xff] %v4092_v52  ;;  %v4108_v53 = vadd.f32 %v3844_v24, %v4796_v36  ;;  %4799 = vst [vmem:[#allocation16_spill] sm:$0xff] %v4112_v62  ;;  %v4800_v52 = vld [vmem:[#allocation34_spill] sm:$0xff]  ;;  %v4128_v36 = vadd.f32 %v3844_v24, %v4803_v29  ;;  %v4805_v62 = vld [vmem:[#allocation39_spill] sm:$0xff]  ;;  %v4144_v21 = vadd.f32 %v3844_v24, %v3852_v27 }
 0x269   :  { %v4116_v56 = vadd.f32 %v3844_v24, %v4800_v52  ;;  %v4136_v52 = vadd.f32 %v3844_v24, %v4805_v62  ;;  %v4148_v29 = vadd.f32 %v3844_v24, %v3856_v9  ;;  %v4156_v62 = vadd.f32 %v3844_v24, %v3864_v14 }
 0x26a   :  { %4797 = vst [vmem:[#allocation15_spill] sm:$0xff] %v4108_v53  ;;  %v4804_v53 = vld [vmem:[#allocation38_spill] sm:$0xff]  ;;  %v4160_v31 = vadd.f32 %v3844_v24, %v3868_v23  ;;  %v4164_v27 = vadd.f32 %v3844_v24, %v3872_v5  ;;  %v4168_v9 = vadd.f32 %v3844_v24, %v3876_v6  ;;  %v4176_v14 = vadd.f32 %v3844_v24, %v3884_v35 }
 0x26b   :  { %v4132_v13 = vadd.f32 %v3844_v24, %v4804_v53  ;;  %v4152_v53 = vadd.f32 %v3844_v24, %v3860_v4  ;;  %4806 = vst [vmem:[#allocation17_spill] sm:$0xff] %v4156_v62  ;;  %v4172_v4 = vadd.f32 %v3844_v24, %v3880_v58  ;;  %v1399_v62 = vmax.f32 %v3888_v1, 0.0 }
 0x26c   :  { %4807 = vst [vmem:[#allocation18_spill] sm:$0xff] %v4160_v31  ;;  %4808 = vst [vmem:[#allocation19_spill] sm:$0xff] %v4164_v27  ;;  %v1400_v23 = vmax.f32 %v3892_v45, 0.0  ;;  %v1401_v31 = vmax.f32 %v3896_v32, 0.0  ;;  %v1402_v5 = vmax.f32 %v3900_v44, 0.0  ;;  %v1403_v27 = vmax.f32 %v3904_v0, 0.0 }
 0x26d   :  { %4809 = vst [vmem:[#allocation20_spill] sm:$0xff] %v4168_v9  ;;  %4810 = vst [vmem:[#allocation21_spill] sm:$0xff] %v4172_v4  ;;  %v1404_v6 = vmax.f32 %v3908_v49, 0.0  ;;  %v1405_v9 = vmax.f32 %v3912_v42, 0.0  ;;  %v1406_v58 = vmax.f32 %v3916_v48, 0.0  ;;  %v1407_v4 = vmax.f32 %v3920_v51, 0.0 }
 0x26e   :  { %1472 = vst [vmem:[%s4475_s5] sm:$0xff] %v1399_v62  ;;  %v1408_v24 = vmax.f32 %v3924_v61, 0.0  ;;  %v1409_v35 = vmax.f32 %v3928_v39, 0.0  ;;  %v1410_v1 = vmax.f32 %v3932_v28, 0.0  ;;  %v1411_v45 = vmax.f32 %v3936_v63, 0.0  ;;  %1473 = vst [vmem:[%s4475_s5 + $0x8] sm:$0xff] %v1400_v23 }
 0x26f   :  { %1474 = vst [vmem:[%s4475_s5 + $0x10] sm:$0xff] %v1401_v31  ;;  %1475 = vst [vmem:[%s4475_s5 + $0x18] sm:$0xff] %v1402_v5  ;;  %v1412_v32 = vmax.f32 %v3940_v60, 0.0  ;;  %v1413_v44 = vmax.f32 %v3944_v59, 0.0  ;;  %v1414_v0 = vmax.f32 %v3948_v26, 0.0  ;;  %v1415_v49 = vmax.f32 %v3952_v25, 0.0 }
 0x270   :  { %1476 = vst [vmem:[%s4475_s5 + $0x20] sm:$0xff] %v1403_v27  ;;  %1477 = vst [vmem:[%s4475_s5 + $0x28] sm:$0xff] %v1404_v6  ;;  %v1416_v42 = vmax.f32 %v3956_v30, 0.0  ;;  %v1417_v48 = vmax.f32 %v3960_v38, 0.0  ;;  %v1418_v51 = vmax.f32 %v3964_v54, 0.0  ;;  %v1419_v61 = vmax.f32 %v3968_v19, 0.0 }
 0x271   :  { %1478 = vst [vmem:[%s4475_s5 + $0x30] sm:$0xff] %v1405_v9  ;;  %1479 = vst [vmem:[%s4475_s5 + $0x38] sm:$0xff] %v1406_v58  ;;  %v1420_v39 = vmax.f32 %v3972_v55, 0.0  ;;  %v1421_v28 = vmax.f32 %v3976_v7, 0.0  ;;  %v1422_v63 = vmax.f32 %v3980_v11, 0.0  ;;  %v1423_v60 = vmax.f32 %v3984_v2, 0.0 }
 0x272   :  { %1480 = vst [vmem:[%s4475_s5 + $0x40] sm:$0xff] %v1407_v4  ;;  %1481 = vst [vmem:[%s4475_s5 + $0x48] sm:$0xff] %v1408_v24  ;;  %v1424_v59 = vmax.f32 %v3988_v22, 0.0  ;;  %v1425_v26 = vmax.f32 %v3992_v40, 0.0  ;;  %v1426_v25 = vmax.f32 %v3996_v18, 0.0  ;;  %v1427_v30 = vmax.f32 %v4000_v20, 0.0 }
 0x273   :  { %1482 = vst [vmem:[%s4475_s5 + $0x50] sm:$0xff] %v1409_v35  ;;  %1483 = vst [vmem:[%s4475_s5 + $0x58] sm:$0xff] %v1410_v1  ;;  %v1428_v38 = vmax.f32 %v4004_v41, 0.0  ;;  %v1429_v54 = vmax.f32 %v4008_v57, 0.0  ;;  %v1430_v19 = vmax.f32 %v4012_v3, 0.0  ;;  %v1431_v55 = vmax.f32 %v4016_v37, 0.0 }
 0x274   :  { %1484 = vst [vmem:[%s4475_s5 + $0x60] sm:$0xff] %v1411_v45  ;;  %1485 = vst [vmem:[%s4475_s5 + $0x68] sm:$0xff] %v1412_v32  ;;  %v1432_v7 = vmax.f32 %v4020_v47, 0.0  ;;  %v1433_v11 = vmax.f32 %v4024_v12, 0.0  ;;  %v1434_v2 = vmax.f32 %v4028_v15, 0.0  ;;  %v1435_v22 = vmax.f32 %v4032_v43, 0.0 }
 0x275   :  { %1486 = vst [vmem:[%s4475_s5 + $0x70] sm:$0xff] %v1413_v44  ;;  %1487 = vst [vmem:[%s4475_s5 + $0x78] sm:$0xff] %v1414_v0  ;;  %v4811_v40 = vld [vmem:[#allocation41_spill] sm:$0xff]  ;;  %v4812_v20 = vld [vmem:[#allocation42_spill] sm:$0xff]  ;;  %v1439_v37 = vmax.f32 %v4048_v50, 0.0  ;;  %v1443_v31 = vmax.f32 %v4064_v17, 0.0 }
 0x276   :  { %1488 = vst [vmem:[%s4475_s5 + $0x80] sm:$0xff] %v1415_v49  ;;  %1489 = vst [vmem:[%s4475_s5 + $0x88] sm:$0xff] %v1416_v42  ;;  %v1436_v18 = vmax.f32 %v4811_v40, 0.0  ;;  %v1437_v41 = vmax.f32 %v4812_v20, 0.0  ;;  %v4813_v57 = vld [vmem:[#allocation43_spill] sm:$0xff]  ;;  %v4814_v47 = vld [vmem:[#allocation45_spill] sm:$0xff] }
 0x277   :  { %1490 = vst [vmem:[%s4475_s5 + $0x90] sm:$0xff] %v1417_v48  ;;  %1491 = vst [vmem:[%s4475_s5 + $0x98] sm:$0xff] %v1418_v51  ;;  %v1438_v3 = vmax.f32 %v4813_v57, 0.0  ;;  %v1440_v12 = vmax.f32 %v4814_v47, 0.0  ;;  %v4815_v15 = vld [vmem:[#allocation51_spill] sm:$0xff]  ;;  %v4816_v50 = vld [vmem:[#allocation52_spill] sm:$0xff] }
 0x278   :  { %1492 = vst [vmem:[%s4475_s5 + $0xa0] sm:$0xff] %v1419_v61  ;;  %1493 = vst [vmem:[%s4475_s5 + $0xa8] sm:$0xff] %v1420_v39  ;;  %v1441_v43 = vmax.f32 %v4815_v15, 0.0  ;;  %v1442_v62 = vmax.f32 %v4816_v50, 0.0  ;;  %v4817_v27 = vld [vmem:[#allocation53_spill] sm:$0xff]  ;;  %v1445_v17 = vmax.f32 %v4072_v46, 0.0 }
 0x279   :  { %1494 = vst [vmem:[%s4475_s5 + $0xb0] sm:$0xff] %v1421_v28  ;;  %1495 = vst [vmem:[%s4475_s5 + $0xb8] sm:$0xff] %v1422_v63  ;;  %v1444_v9 = vmax.f32 %v4817_v27, 0.0  ;;  %v1446_v4 = vmax.f32 %v4076_v16, 0.0  ;;  %v1447_v23 = vmax.f32 %v4080_v10, 0.0  ;;  %v4818_v46 = vld [vmem:[#allocation55_spill] sm:$0xff] }
 0x27a   :  { %1496 = vst [vmem:[%s4475_s5 + $0xc0] sm:$0xff] %v1423_v60  ;;  %1497 = vst [vmem:[%s4475_s5 + $0xc8] sm:$0xff] %v1424_v59  ;;  %v1448_v16 = vmax.f32 %v4818_v46, 0.0  ;;  %v4819_v5 = vld [vmem:[#allocation56_spill] sm:$0xff]  ;;  %v4820_v6 = vld [vmem:[#allocation54_spill] sm:$0xff]  ;;  %v1456_v51 = vmax.f32 %v4116_v56, 0.0 }
 0x27b   :  { %1498 = vst [vmem:[%s4475_s5 + $0xd0] sm:$0xff] %v1425_v26  ;;  %1499 = vst [vmem:[%s4475_s5 + $0xd8] sm:$0xff] %v1426_v25  ;;  %v1449_v10 = vmax.f32 %v4819_v5, 0.0  ;;  %v1450_v58 = vmax.f32 %v4820_v6, 0.0  ;;  %v4821_v24 = vld [vmem:[#allocation12_spill] sm:$0xff]  ;;  %v4822_v1 = vld [vmem:[#allocation13_spill] sm:$0xff] }
 0x27c   :  { %1500 = vst [vmem:[%s4475_s5 + $0xe0] sm:$0xff] %v1427_v30  ;;  %1501 = vst [vmem:[%s4475_s5 + $0xe8] sm:$0xff] %v1428_v38  ;;  %v1451_v35 = vmax.f32 %v4821_v24, 0.0  ;;  %v1452_v45 = vmax.f32 %v4822_v1, 0.0  ;;  %v4823_v32 = vld [vmem:[#allocation14_spill] sm:$0xff]  ;;  %v4824_v0 = vld [vmem:[#allocation15_spill] sm:$0xff] }
 0x27d   :  { %1502 = vst [vmem:[%s4475_s5 + $0xf0] sm:$0xff] %v1429_v54  ;;  %1503 = vst [vmem:[%s4475_s5 + $0xf8] sm:$0xff] %v1430_v19  ;;  %v1453_v44 = vmax.f32 %v4823_v32, 0.0  ;;  %v1454_v49 = vmax.f32 %v4824_v0, 0.0  ;;  %v4825_v42 = vld [vmem:[#allocation16_spill] sm:$0xff]  ;;  %v1457_v61 = vmax.f32 %v4120_v33, 0.0 }
 0x27e   :  { %1504 = vst [vmem:[%s4475_s5 + $0x100] sm:$0xff] %v1431_v55  ;;  %1505 = vst [vmem:[%s4475_s5 + $0x108] sm:$0xff] %v1432_v7  ;;  %v1455_v48 = vmax.f32 %v4825_v42, 0.0  ;;  %v1458_v39 = vmax.f32 %v4124_v34, 0.0  ;;  %v1459_v28 = vmax.f32 %v4128_v36, 0.0  ;;  %v1460_v56 = vmax.f32 %v4132_v13, 0.0 }
 0x27f   :  { %1506 = vst [vmem:[%s4475_s5 + $0x110] sm:$0xff] %v1433_v11  ;;  %1507 = vst [vmem:[%s4475_s5 + $0x118] sm:$0xff] %v1434_v2  ;;  %v1461_v33 = vmax.f32 %v4136_v52, 0.0  ;;  %v1462_v34 = vmax.f32 %v4140_v8, 0.0  ;;  %v1463_v36 = vmax.f32 %v4144_v21, 0.0  ;;  %v1464_v13 = vmax.f32 %v4148_v29, 0.0 }
 0x280   :  { %1508 = vst [vmem:[%s4475_s5 + $0x120] sm:$0xff] %v1435_v22  ;;  %1509 = vst [vmem:[%s4475_s5 + $0x128] sm:$0xff] %v1436_v18  ;;  %v1465_v52 = vmax.f32 %v4152_v53, 0.0  ;;  %v4826_v8 = vld [vmem:[#allocation17_spill] sm:$0xff]  ;;  %v4827_v63 = vld [vmem:[#allocation18_spill] sm:$0xff]  ;;  %v1471_v38 = vmax.f32 %v4176_v14, 0.0 }
 0x281   :  { %1510 = vst [vmem:[%s4475_s5 + $0x130] sm:$0xff] %v1437_v41  ;;  %1511 = vst [vmem:[%s4475_s5 + $0x138] sm:$0xff] %v1438_v3  ;;  %v1466_v21 = vmax.f32 %v4826_v8, 0.0  ;;  %v1467_v60 = vmax.f32 %v4827_v63, 0.0  ;;  %v4828_v29 = vld [vmem:[#allocation19_spill] sm:$0xff]  ;;  %v4829_v59 = vld [vmem:[#allocation20_spill] sm:$0xff] }
 0x282   :  { %1512 = vst [vmem:[%s4475_s5 + $0x140] sm:$0xff] %v1439_v37  ;;  %1513 = vst [vmem:[%s4475_s5 + $0x148] sm:$0xff] %v1440_v12  ;;  %v1468_v53 = vmax.f32 %v4828_v29, 0.0  ;;  %v1469_v26 = vmax.f32 %v4829_v59, 0.0  ;;  %v4830_v25 = vld [vmem:[#allocation21_spill] sm:$0xff] }
 0x283   :  { %1514 = vst [vmem:[%s4475_s5 + $0x150] sm:$0xff] %v1441_v43  ;;  %1515 = vst [vmem:[%s4475_s5 + $0x158] sm:$0xff] %v1442_v62  ;;  %v1470_v30 = vmax.f32 %v4830_v25, 0.0 }
 0x284   :  { %1516 = vst [vmem:[%s4475_s5 + $0x160] sm:$0xff] %v1443_v31  ;;  %1517 = vst [vmem:[%s4475_s5 + $0x168] sm:$0xff] %v1444_v9 }
 0x285   :  { %1518 = vst [vmem:[%s4475_s5 + $0x170] sm:$0xff] %v1445_v17  ;;  %1519 = vst [vmem:[%s4475_s5 + $0x178] sm:$0xff] %v1446_v4 }
 0x286   :  { %1520 = vst [vmem:[%s4475_s5 + $0x180] sm:$0xff] %v1447_v23  ;;  %1521 = vst [vmem:[%s4475_s5 + $0x188] sm:$0xff] %v1448_v16 }
 0x287   :  { %1522 = vst [vmem:[%s4475_s5 + $0x190] sm:$0xff] %v1449_v10  ;;  %1523 = vst [vmem:[%s4475_s5 + $0x198] sm:$0xff] %v1450_v58 }
 0x288   :  { %1524 = vst [vmem:[%s4475_s5 + $0x1a0] sm:$0xff] %v1451_v35  ;;  %1525 = vst [vmem:[%s4475_s5 + $0x1a8] sm:$0xff] %v1452_v45 }
 0x289   :  { %1526 = vst [vmem:[%s4475_s5 + $0x1b0] sm:$0xff] %v1453_v44  ;;  %1527 = vst [vmem:[%s4475_s5 + $0x1b8] sm:$0xff] %v1454_v49 }
 0x28a   :  { %1528 = vst [vmem:[%s4475_s5 + $0x1c0] sm:$0xff] %v1455_v48  ;;  %1529 = vst [vmem:[%s4475_s5 + $0x1c8] sm:$0xff] %v1456_v51 }
 0x28b   :  { %1530 = vst [vmem:[%s4475_s5 + $0x1d0] sm:$0xff] %v1457_v61  ;;  %1531 = vst [vmem:[%s4475_s5 + $0x1d8] sm:$0xff] %v1458_v39 }
 0x28c   :  { %1532 = vst [vmem:[%s4475_s5 + $0x1e0] sm:$0xff] %v1459_v28  ;;  %1533 = vst [vmem:[%s4475_s5 + $0x1e8] sm:$0xff] %v1460_v56 }
 0x28d   :  { %1534 = vst [vmem:[%s4475_s5 + $0x1f0] sm:$0xff] %v1461_v33  ;;  %1535 = vst [vmem:[%s4475_s5 + $0x1f8] sm:$0xff] %v1462_v34 }
 0x28e   :  { %1536 = vst [vmem:[%s4475_s5 + $0x200] sm:$0xff] %v1463_v36  ;;  %1537 = vst [vmem:[%s4475_s5 + $0x208] sm:$0xff] %v1464_v13 }
 0x28f   :  { %1538 = vst [vmem:[%s4475_s5 + $0x210] sm:$0xff] %v1465_v52  ;;  %1539 = vst [vmem:[%s4475_s5 + $0x218] sm:$0xff] %v1466_v21 }
 0x290   :  { %1540 = vst [vmem:[%s4475_s5 + $0x220] sm:$0xff] %v1467_v60  ;;  %1541 = vst [vmem:[%s4475_s5 + $0x228] sm:$0xff] %v1468_v53 }
 0x291   :  { %1542 = vst [vmem:[%s4475_s5 + $0x230] sm:$0xff] %v1469_v26  ;;  %1543 = vst [vmem:[%s4475_s5 + $0x238] sm:$0xff] %v1470_v30 }
 0x292   :  { %1544 = vst [vmem:[%s4475_s5 + $0x240] sm:$0x3] %v1471_v38 }
 0x293   :  { %1549 = vsyncpa [#allocation3], 1 }
 0x294   :  { %1550 = vsyncpa [#allocation5], 1 }
 0x295   :  { %1551 = vsyncpa [#allocation8], 1 }

// kernel: my_model_forward.3
= control target key start
LH: loop header
LB: loop body
LE: loop exit
PB: predicated region body
PF: predicated region fallthrough
CT: control target
= control target key end

     0   :  { %s5221_s30 = smov 0   ;;  %s6090_s0 = inlined_call_operand.vmem [shape: bf16[5,32,512], index: 0, kind: input, shape index: {}]   ;;  %s6091_s1 = inlined_call_operand.vmem [shape: bf16[5,512,800], index: 1, kind: input, shape index: {}]   ;;  %s6092_s2 = inlined_call_operand.vmem [shape: f32[5,1,800], index: 2, kind: input, shape index: {}]   ;;  %s6093_s3 = inlined_call_operand.vmem [shape: f32[5,1,800], index: 3, kind: input, shape index: {}]   ;;  %s6094_s4 = inlined_call_operand.vmem [shape: f32[5,1,800], index: 4, kind: input, shape index: {}]   ;;  %s6095_s5 = inlined_call_operand.vmem [shape: bf16[5,800,256], index: 5, kind: input, shape index: {}]   ;;  %s6096_s6 = inlined_call_operand.vmem [shape: f32[5,1,256], index: 6, kind: input, shape index: {}]   ;;  %s6097_s7 = inlined_call_operand.vmem [shape: bf16[5,256,10], index: 7, kind: input, shape index: {}]   ;;  %s6098_s8 = inlined_call_operand.vmem [shape: f32[5,1,10], index: 8, kind: input, shape index: {}]   ;;  %s6099_s9 = inlined_call_operand.vmem [shape: f32[5,2,10], index: 9, kind: output, shape index: {}]  }
   0x1 LB: > { %s4118_s10 = sadd.s32 4294967295, %s5168_s30   ;;  %p4122_p0 = scmp.ge.s32.totalorder %s5168_s30, 1  ;;  %s5168_s30 = sphi %s5221_s30, %s19_s30  }
   0x2   : > { %p361_p1 = scmp.lt.s32.totalorder %s5168_s30, 6 }
   0x4   : > { %p362_p2 = pnand %p4122_p0, %p361_p1 }
   0x5   : > { %p430_p3 = scmp.lt.s32.totalorder (!%p362_p2), %s4118_s10, 4 }
   0x6   : > { %365 = sbr.rel (%p362_p2) target bundleno = 1268 (0x4f4), region = 56 }
   0xb   : > { %s6101_s10 = smov (!%p430_p3, %s4118_s10), 4  ;;  %vm2844_vm0 = vcmask 1042432   ;;  %vm2979_vm1 = vcmask 1040384   ;;  %vm2465_vm2 = vcmask 261120   ;;  %vm2887_vm3 = vcmask 256000  }
   0xc   : > { %s4563_s11 = smul.u32 1792, %s6101_s10  ;;  %s4483_s12 = sshll.u32 %s6101_s10, 6  ;;  %vm3959_vm4 = vcmask 74752  }
   0xd   : > { %s5236_s15 = scalar_lea.vmem %s6090_s0, %s4483_s12  ;;  %s4565_s19 = smul.u32 800, %s6101_s10 }
   0xe   : > { %s5241_s18 = scalar_lea.vmem %s6091_s1, %s4563_s11  ;;  %v5244_v0 = vld [vmem:[%s5236_s15 + $0x4] ss:$16 sps:$4 sm:$0xff]   ;;  %v5295_v48 = vld [vmem:[%s5236_s15 + $0xc] ss:$16 sps:$4 sm:$0xff]   ;;  %s5560_s23 = smul.u32 7, %s6101_s10 }
   0xf   : > { %v4575_v1 = vld [vmem:[%s5241_s18 + $0x18c] ss:$28 sps:$4 sm:$0xff]   ;;  %1999 = vmatprep.mubr.bf16.mxu0 %v5244_v0  ;;  %v4581_v5 = vld [vmem:[%s5241_s18 + $0x154] ss:$28 sps:$4 sm:$0xff]   ;;  %v4587_v9 = vld [vmem:[%s5241_s18 + $0x11c] ss:$28 sps:$4 sm:$0xff]   ;;  %2052 = vmatprep.mubr.bf16.mxu1 %v5295_v48  ;;  %s5464_s22 = scalar_lea.vmem %s6095_s5, %s4565_s19  ;;  %s468_s24 = scalar_lea.vmem %s6098_s8, %s6101_s10 }
  0x10   : > { %v4577_v2 = vld [vmem:[%s5241_s18 + $0x50c] ss:$28 sps:$4 sm:$0xff]   ;;  %1967 = vmatprep.subr.bf16.mxu0 %v4575_v1  ;;  %v4583_v6 = vld [vmem:[%s5241_s18 + $0x4d4] ss:$28 sps:$4 sm:$0xff]   ;;  %v4589_v10 = vld [vmem:[%s5241_s18 + $0x49c] ss:$28 sps:$4 sm:$0xff]   ;;  %s5573_s26 = scalar_lea.vmem %s6092_s2, %s5560_s23  ;;  %s5685_s29 = scalar_lea.vmem %s6093_s3, %s5560_s23 }
  0x11   : > { %v4579_v3 = vld [vmem:[%s5241_s18 + $0x188] ss:$28 sps:$4 sm:$0xff]   ;;  %2020 = vmatprep.subr.bf16.mxu1 %v4577_v2  ;;  %v4585_v7 = vld [vmem:[%s5241_s18 + $0x150] ss:$28 sps:$4 sm:$0xff]   ;;  %v4591_v11 = vld [vmem:[%s5241_s18 + $0x118] ss:$28 sps:$4 sm:$0xff]   ;;  %s5691_s13 = scalar_lea.vmem %s6094_s4, %s5560_s23 }
  0x12   : > { %v4580_v4 = vld [vmem:[%s5241_s18 + $0x508] ss:$28 sps:$4 sm:$0xff]   ;;  %1968 = vmatpush1.bf16.msra.mxu0 %v4579_v3  ;;  %v4586_v8 = vld [vmem:[%s5241_s18 + $0x4d0] ss:$28 sps:$4 sm:$0xff]   ;;  %v4592_v12 = vld [vmem:[%s5241_s18 + $0x498] ss:$28 sps:$4 sm:$0xff]  }
  0x13   : > { %2021 = vmatpush1.bf16.msra.mxu1 %v4580_v4  ;;  %1969 = vmatprep.subr.bf16.mxu0 %v4581_v5  ;;  %v4593_v13 = vld [vmem:[%s5241_s18 + $0xe4] ss:$28 sps:$4 sm:$0xff]   ;;  %v4599_v17 = vld [vmem:[%s5241_s18 + $0xac] ss:$28 sps:$4 sm:$0xff]   ;;  %v4605_v21 = vld [vmem:[%s5241_s18 + $0x74] ss:$28 sps:$4 sm:$0xff]  }
  0x14   : > { %2022 = vmatprep.subr.bf16.mxu1 %v4583_v6  ;;  %v4595_v14 = vld [vmem:[%s5241_s18 + $0x464] ss:$28 sps:$4 sm:$0xff]   ;;  %v4601_v18 = vld [vmem:[%s5241_s18 + $0x42c] ss:$28 sps:$4 sm:$0xff]   ;;  %v4607_v22 = vld [vmem:[%s5241_s18 + $0x3f4] ss:$28 sps:$4 sm:$0xff]  }
  0x15   : > { %v4597_v15 = vld [vmem:[%s5241_s18 + $0xe0] ss:$28 sps:$4 sm:$0xff]   ;;  %v4603_v19 = vld [vmem:[%s5241_s18 + $0xa8] ss:$28 sps:$4 sm:$0xff]   ;;  %v4609_v23 = vld [vmem:[%s5241_s18 + $0x70] ss:$28 sps:$4 sm:$0xff]  }
  0x16   : > { %1970 = vmatpush1.bf16.msra.mxu0 %v4585_v7  ;;  %v4598_v16 = vld [vmem:[%s5241_s18 + $0x460] ss:$28 sps:$4 sm:$0xff]   ;;  %v4604_v20 = vld [vmem:[%s5241_s18 + $0x428] ss:$28 sps:$4 sm:$0xff]   ;;  %v4610_v24 = vld [vmem:[%s5241_s18 + $0x3f0] ss:$28 sps:$4 sm:$0xff]  }
  0x17   : > { %2023 = vmatpush1.bf16.msra.mxu1 %v4586_v8  ;;  %1971 = vmatprep.subr.bf16.mxu0 %v4587_v9  ;;  %v4611_v25 = vld [vmem:[%s5241_s18 + $0x3c] ss:$28 sps:$4 sm:$0xff]   ;;  %v4617_v29 = vld [vmem:[%s5241_s18 + $0x4] ss:$28 sps:$4 sm:$0xff]   ;;  %v4623_v33 = vld [vmem:[%s5241_s18 + $0x34c] ss:$28 sps:$4 sm:$0xff]  }
  0x18   : > { %2024 = vmatprep.subr.bf16.mxu1 %v4589_v10  ;;  %v4613_v26 = vld [vmem:[%s5241_s18 + $0x3bc] ss:$28 sps:$4 sm:$0xff]   ;;  %v4619_v30 = vld [vmem:[%s5241_s18 + $0x384] ss:$28 sps:$4 sm:$0xff]   ;;  %v4625_v34 = vld [vmem:[%s5241_s18 + $0x6cc] ss:$28 sps:$4 sm:$0xff]  }
  0x19   : > { %v4615_v27 = vld [vmem:[%s5241_s18 + $0x38] ss:$28 sps:$4 sm:$0xff]   ;;  %v4621_v31 = vld [vmem:[%s5241_s18] ss:$28 sps:$4 sm:$0xff]   ;;  %v4627_v35 = vld [vmem:[%s5241_s18 + $0x348] ss:$28 sps:$4 sm:$0xff]  }
  0x1a   : > { %1972 = vmatpush1.bf16.msra.mxu0 %v4591_v11  ;;  %v4616_v28 = vld [vmem:[%s5241_s18 + $0x3b8] ss:$28 sps:$4 sm:$0xff]   ;;  %v4622_v32 = vld [vmem:[%s5241_s18 + $0x380] ss:$28 sps:$4 sm:$0xff]   ;;  %v4628_v36 = vld [vmem:[%s5241_s18 + $0x6c8] ss:$28 sps:$4 sm:$0xff]  }
  0x1b   : > { %2025 = vmatpush1.bf16.msra.mxu1 %v4592_v12  ;;  %1973 = vmatprep.subr.bf16.mxu0 %v4593_v13  ;;  %v4629_v37 = vld [vmem:[%s5241_s18 + $0x314] ss:$28 sps:$4 sm:$0xff]   ;;  %v4635_v41 = vld [vmem:[%s5241_s18 + $0x2dc] ss:$28 sps:$4 sm:$0xff]   ;;  %v4641_v45 = vld [vmem:[%s5241_s18 + $0x2a4] ss:$28 sps:$4 sm:$0xff]  }
  0x1c   : > { %2026 = vmatprep.subr.bf16.mxu1 %v4595_v14  ;;  %v4631_v38 = vld [vmem:[%s5241_s18 + $0x694] ss:$28 sps:$4 sm:$0xff]   ;;  %v4637_v42 = vld [vmem:[%s5241_s18 + $0x65c] ss:$28 sps:$4 sm:$0xff]   ;;  %v4643_v46 = vld [vmem:[%s5241_s18 + $0x624] ss:$28 sps:$4 sm:$0xff]  }
  0x1d   : > { %v4633_v39 = vld [vmem:[%s5241_s18 + $0x310] ss:$28 sps:$4 sm:$0xff]   ;;  %v4639_v43 = vld [vmem:[%s5241_s18 + $0x2d8] ss:$28 sps:$4 sm:$0xff]   ;;  %v4645_v47 = vld [vmem:[%s5241_s18 + $0x2a0] ss:$28 sps:$4 sm:$0xff]  }
  0x1e   : > { %1974 = vmatpush1.bf16.msra.mxu0 %v4597_v15  ;;  %v4634_v40 = vld [vmem:[%s5241_s18 + $0x690] ss:$28 sps:$4 sm:$0xff]   ;;  %v4640_v44 = vld [vmem:[%s5241_s18 + $0x658] ss:$28 sps:$4 sm:$0xff]   ;;  %v4646_v49 = vld [vmem:[%s5241_s18 + $0x620] ss:$28 sps:$4 sm:$0xff]  }
  0x1f   : > { %2027 = vmatpush1.bf16.msra.mxu1 %v4598_v16  ;;  %1975 = vmatprep.subr.bf16.mxu0 %v4599_v17  ;;  %v4647_v50 = vld [vmem:[%s5241_s18 + $0x26c] ss:$28 sps:$4 sm:$0xff]   ;;  %v4653_v54 = vld [vmem:[%s5241_s18 + $0x234] ss:$28 sps:$4 sm:$0xff]   ;;  %v4659_v58 = vld [vmem:[%s5241_s18 + $0x1fc] ss:$28 sps:$4 sm:$0xff]  }
  0x20   : > { %2028 = vmatprep.subr.bf16.mxu1 %v4601_v18  ;;  %v4649_v51 = vld [vmem:[%s5241_s18 + $0x5ec] ss:$28 sps:$4 sm:$0xff]   ;;  %v4655_v55 = vld [vmem:[%s5241_s18 + $0x5b4] ss:$28 sps:$4 sm:$0xff]   ;;  %v4661_v59 = vld [vmem:[%s5241_s18 + $0x57c] ss:$28 sps:$4 sm:$0xff]  }
  0x21   : > { %v4651_v52 = vld [vmem:[%s5241_s18 + $0x268] ss:$28 sps:$4 sm:$0xff]   ;;  %v4657_v56 = vld [vmem:[%s5241_s18 + $0x230] ss:$28 sps:$4 sm:$0xff]   ;;  %v4663_v60 = vld [vmem:[%s5241_s18 + $0x1f8] ss:$28 sps:$4 sm:$0xff]  }
  0x22   : > { %1976 = vmatpush1.bf16.msra.mxu0 %v4603_v19  ;;  %v4652_v53 = vld [vmem:[%s5241_s18 + $0x5e8] ss:$28 sps:$4 sm:$0xff]   ;;  %v4658_v57 = vld [vmem:[%s5241_s18 + $0x5b0] ss:$28 sps:$4 sm:$0xff]   ;;  %v4664_v61 = vld [vmem:[%s5241_s18 + $0x578] ss:$28 sps:$4 sm:$0xff]  }
  0x23   : > { %2029 = vmatpush1.bf16.msra.mxu1 %v4604_v20  ;;  %1977 = vmatprep.subr.bf16.mxu0 %v4605_v21  ;;  %v4665_v62 = vld [vmem:[%s5241_s18 + $0x1c4] ss:$28 sps:$4 sm:$0xff]   ;;  %v4679_v3 = vld [vmem:[%s5241_s18 + $0x194] ss:$28 sps:$4 sm:$0xff]   ;;  %v5321_v6 = vld [vmem:[%s5236_s15 + $0x8] ss:$16 sps:$4 sm:$0xff]  }
  0x24   : > { %2030 = vmatprep.subr.bf16.mxu1 %v4607_v22  ;;  %v4667_v63 = vld [vmem:[%s5241_s18 + $0x544] ss:$28 sps:$4 sm:$0xff]   ;;  %v4682_v4 = vld [vmem:[%s5241_s18 + $0x514] ss:$28 sps:$4 sm:$0xff]   ;;  %v4685_v9 = vld [vmem:[%s5241_s18 + $0x15c] ss:$28 sps:$4 sm:$0xff]  }
  0x25   : > { %v4669_v1 = vld [vmem:[%s5241_s18 + $0x1c0] ss:$28 sps:$4 sm:$0xff]   ;;  %v4677_v7 = vld [vmem:[%s5241_s18 + $0x190] ss:$28 sps:$4 sm:$0xff]   ;;  %v5328_v11 = vld [vmem:[%s5236_s15 + $0x24] ss:$16 sps:$4 sm:$0xff]  }
  0x26   : > { %1978 = vmatpush1.bf16.msra.mxu0 %v4609_v23  ;;  %v4670_v2 = vld [vmem:[%s5241_s18 + $0x540] ss:$28 sps:$4 sm:$0xff]   ;;  %v4680_v8 = vld [vmem:[%s5241_s18 + $0x510] ss:$28 sps:$4 sm:$0xff]   ;;  %v4683_v13 = vld [vmem:[%s5241_s18 + $0x158] ss:$28 sps:$4 sm:$0xff]  }
  0x27   : > { %2031 = vmatpush1.bf16.msra.mxu1 %v4610_v24  ;;  %1979 = vmatprep.subr.bf16.mxu0 %v4611_v25  ;;  %v5318_v5 = vld [vmem:[%s5236_s15] ss:$16 sps:$4 sm:$0xff]   ;;  %v4688_v10 = vld [vmem:[%s5241_s18 + $0x4dc] ss:$28 sps:$4 sm:$0xff]   ;;  %v4703_v21 = vld [vmem:[%s5241_s18 + $0xec] ss:$28 sps:$4 sm:$0xff]  }
  0x28   : > { %2032 = vmatprep.subr.bf16.mxu1 %v4613_v26  ;;  %v5331_v12 = vld [vmem:[%s5236_s15 + $0x2c] ss:$16 sps:$4 sm:$0xff]   ;;  %v4686_v14 = vld [vmem:[%s5241_s18 + $0x4d8] ss:$28 sps:$4 sm:$0xff]   ;;  %v4694_v15 = vld [vmem:[%s5241_s18 + $0x124] ss:$28 sps:$4 sm:$0xff]  }
  0x29   : > { %v4697_v16 = vld [vmem:[%s5241_s18 + $0x4a4] ss:$28 sps:$4 sm:$0xff]   ;;  %v5346_v19 = vld [vmem:[%s5236_s15 + $0x28] ss:$16 sps:$4 sm:$0xff]   ;;  %v4709_v25 = vld [vmem:[%s5241_s18 + $0xb4] ss:$28 sps:$4 sm:$0xff]  }
  0x2a   : > { %1980 = vmatpush1.bf16.msra.mxu0 %v4615_v27  ;;  %v5341_v17 = vld [vmem:[%s5236_s15 + $0x20] ss:$16 sps:$4 sm:$0xff]   ;;  %v4706_v22 = vld [vmem:[%s5241_s18 + $0x46c] ss:$28 sps:$4 sm:$0xff]   ;;  %s4484_s14 = sshll.u32 %s6101_s10, 7 }
  0x2b   : > { %2033 = vmatpush1.bf16.msra.mxu1 %v4616_v28  ;;  %1981 = vmatprep.subr.bf16.mxu0 %v4617_v29  ;;  %v4692_v18 = vld [vmem:[%s5241_s18 + $0x120] ss:$28 sps:$4 sm:$0xff]   ;;  %v4701_v23 = vld [vmem:[%s5241_s18 + $0xe8] ss:$28 sps:$4 sm:$0xff]   ;;  %v4712_v26 = vld [vmem:[%s5241_s18 + $0x434] ss:$28 sps:$4 sm:$0xff]   ;;  %s6049_s17 = scalar_lea.vmem %s6097_s7, %s4484_s14 }
  0x2c   : > { %2034 = vmatprep.subr.bf16.mxu1 %v4619_v30  ;;  %v4695_v20 = vld [vmem:[%s5241_s18 + $0x4a0] ss:$28 sps:$4 sm:$0xff]   ;;  %v4704_v24 = vld [vmem:[%s5241_s18 + $0x468] ss:$28 sps:$4 sm:$0xff]   ;;  %v4707_v27 = vld [vmem:[%s5241_s18 + $0xb0] ss:$28 sps:$4 sm:$0xff]  }
  0x2d   : > { %v4710_v28 = vld [vmem:[%s5241_s18 + $0x430] ss:$28 sps:$4 sm:$0xff]   ;;  %v4715_v29 = vld [vmem:[%s5241_s18 + $0x7c] ss:$28 sps:$4 sm:$0xff]  }
  0x2e   : > { %1982 = vmatpush1.bf16.msra.mxu0 %v4621_v31  ;;  %v4718_v30 = vld [vmem:[%s5241_s18 + $0x3fc] ss:$28 sps:$4 sm:$0xff]  }
  0x2f   : > { %2035 = vmatpush1.bf16.msra.mxu1 %v4622_v32  ;;  %1983 = vmatprep.subr.bf16.mxu0 %v4623_v33  ;;  %v4713_v31 = vld [vmem:[%s5241_s18 + $0x78] ss:$28 sps:$4 sm:$0xff]   ;;  %v4721_v32 = vld [vmem:[%s5241_s18 + $0x44] ss:$28 sps:$4 sm:$0xff]  }
  0x30   : > { %2036 = vmatprep.subr.bf16.mxu1 %v4625_v34  ;;  %v4724_v33 = vld [vmem:[%s5241_s18 + $0x3c4] ss:$28 sps:$4 sm:$0xff]  }
  0x31   : > { %v4719_v34 = vld [vmem:[%s5241_s18 + $0x40] ss:$28 sps:$4 sm:$0xff]  }
  0x32   : > { %1984 = vmatpush2.bf16.msra.mxu0 %v4627_v35  ;;  %v4722_v35 = vld [vmem:[%s5241_s18 + $0x3c0] ss:$28 sps:$4 sm:$0xff]  }
  0x33   : > { %2037 = vmatpush2.bf16.msra.mxu1 %v4628_v36  ;;  %1985 = vmatprep.subr.bf16.mxu0 %v4629_v37  ;;  %v4727_v36 = vld [vmem:[%s5241_s18 + $0xc] ss:$28 sps:$4 sm:$0xff]  }
  0x34   : > { %2038 = vmatprep.subr.bf16.mxu1 %v4631_v38  ;;  %v4730_v37 = vld [vmem:[%s5241_s18 + $0x38c] ss:$28 sps:$4 sm:$0xff]  }
  0x35   : > { %v4725_v38 = vld [vmem:[%s5241_s18 + $0x8] ss:$28 sps:$4 sm:$0xff]  }
  0x36   : > { %1986 = vmatpush2.bf16.msra.mxu0 %v4633_v39  ;;  %v4728_v39 = vld [vmem:[%s5241_s18 + $0x388] ss:$28 sps:$4 sm:$0xff]  }
  0x37   : > { %2039 = vmatpush2.bf16.msra.mxu1 %v4634_v40  ;;  %1987 = vmatprep.subr.bf16.mxu0 %v4635_v41  ;;  %v4733_v40 = vld [vmem:[%s5241_s18 + $0x354] ss:$28 sps:$4 sm:$0xff]  }
  0x38   : > { %2040 = vmatprep.subr.bf16.mxu1 %v4637_v42  ;;  %v4736_v41 = vld [vmem:[%s5241_s18 + $0x6d4] ss:$28 sps:$4 sm:$0xff]  }
  0x39   : > { %v4731_v42 = vld [vmem:[%s5241_s18 + $0x350] ss:$28 sps:$4 sm:$0xff]  }
  0x3a   : > { %1988 = vmatpush2.bf16.msra.mxu0 %v4639_v43  ;;  %v4734_v43 = vld [vmem:[%s5241_s18 + $0x6d0] ss:$28 sps:$4 sm:$0xff]  }
  0x3b   : > { %2041 = vmatpush2.bf16.msra.mxu1 %v4640_v44  ;;  %1989 = vmatprep.subr.bf16.mxu0 %v4641_v45  ;;  %v4739_v44 = vld [vmem:[%s5241_s18 + $0x31c] ss:$28 sps:$4 sm:$0xff]  }
  0x3c   : > { %2042 = vmatprep.subr.bf16.mxu1 %v4643_v46  ;;  %v4742_v45 = vld [vmem:[%s5241_s18 + $0x69c] ss:$28 sps:$4 sm:$0xff]  }
  0x3d   : > { %v4737_v46 = vld [vmem:[%s5241_s18 + $0x318] ss:$28 sps:$4 sm:$0xff]  }
  0x3e   : > { %1990 = vmatpush2.bf16.msra.mxu0 %v4645_v47  ;;  %v4740_v47 = vld [vmem:[%s5241_s18 + $0x698] ss:$28 sps:$4 sm:$0xff]  }
  0x3f   : > { %2043 = vmatpush2.bf16.msra.mxu1 %v4646_v49  ;;  %1991 = vmatprep.subr.bf16.mxu0 %v4647_v50  ;;  %v4745_v49 = vld [vmem:[%s5241_s18 + $0x2e4] ss:$28 sps:$4 sm:$0xff]  }
  0x40   : > { %2044 = vmatprep.subr.bf16.mxu1 %v4649_v51  ;;  %v4748_v50 = vld [vmem:[%s5241_s18 + $0x664] ss:$28 sps:$4 sm:$0xff]  }
  0x41   : > { %v4743_v51 = vld [vmem:[%s5241_s18 + $0x2e0] ss:$28 sps:$4 sm:$0xff]  }
  0x42   : > { %1992 = vmatpush2.bf16.msra.mxu0 %v4651_v52  ;;  %v4746_v52 = vld [vmem:[%s5241_s18 + $0x660] ss:$28 sps:$4 sm:$0xff]  }
  0x43   : > { %2045 = vmatpush2.bf16.msra.mxu1 %v4652_v53  ;;  %1993 = vmatprep.subr.bf16.mxu0 %v4653_v54  ;;  %v4751_v53 = vld [vmem:[%s5241_s18 + $0x2ac] ss:$28 sps:$4 sm:$0xff]  }
  0x44   : > { %2046 = vmatprep.subr.bf16.mxu1 %v4655_v55  ;;  %v4754_v54 = vld [vmem:[%s5241_s18 + $0x62c] ss:$28 sps:$4 sm:$0xff]  }
  0x45   : > { %v4749_v55 = vld [vmem:[%s5241_s18 + $0x2a8] ss:$28 sps:$4 sm:$0xff]  }
  0x46   : > { %1994 = vmatpush2.bf16.msra.mxu0 %v4657_v56  ;;  %v4752_v56 = vld [vmem:[%s5241_s18 + $0x628] ss:$28 sps:$4 sm:$0xff]  }
  0x47   : > { %2047 = vmatpush2.bf16.msra.mxu1 %v4658_v57  ;;  %1995 = vmatprep.subr.bf16.mxu0 %v4659_v58  ;;  %v4757_v57 = vld [vmem:[%s5241_s18 + $0x274] ss:$28 sps:$4 sm:$0xff]  }
  0x48   : > { %2048 = vmatprep.subr.bf16.mxu1 %v4661_v59  ;;  %v4760_v58 = vld [vmem:[%s5241_s18 + $0x5f4] ss:$28 sps:$4 sm:$0xff]  }
  0x49   : > { %v4755_v59 = vld [vmem:[%s5241_s18 + $0x270] ss:$28 sps:$4 sm:$0xff]  }
  0x4a   : > { %1996 = vmatpush2.bf16.msra.mxu0 %v4663_v60  ;;  %v4758_v60 = vld [vmem:[%s5241_s18 + $0x5f0] ss:$28 sps:$4 sm:$0xff]  }
  0x4b   : > { %2049 = vmatpush2.bf16.msra.mxu1 %v4664_v61  ;;  %1997 = vmatprep.subr.bf16.mxu0 %v4665_v62  ;;  %v4763_v61 = vld [vmem:[%s5241_s18 + $0x23c] ss:$28 sps:$4 sm:$0xff]  }
  0x4c   : > { %2050 = vmatprep.subr.bf16.mxu1 %v4667_v63  ;;  %v4766_v62 = vld [vmem:[%s5241_s18 + $0x5bc] ss:$28 sps:$4 sm:$0xff]  }
  0x4d   : > { %v4761_v63 = vld [vmem:[%s5241_s18 + $0x238] ss:$28 sps:$4 sm:$0xff]  }
  0x4e   : > { %1998 = vmatpush2.bf16.msra.mxu0 %v4669_v1  ;;  %v4764_v1 = vld [vmem:[%s5241_s18 + $0x5b8] ss:$28 sps:$4 sm:$0xff]  }
  0x4f   : > { %2051 = vmatpush2.bf16.msra.mxu1 %v4670_v2  ;;  %2073 = vmatprep.subr.bf16.mxu0 %v4679_v3  ;;  %v4769_v2 = vld [vmem:[%s5241_s18 + $0x204] ss:$28 sps:$4 sm:$0xff]  }
  0x50   : > { %2126 = vmatprep.subr.bf16.mxu1 %v4682_v4  ;;  %v4772_v3 = vld [vmem:[%s5241_s18 + $0x584] ss:$28 sps:$4 sm:$0xff]  }
  0x51   : > { %2000 = vmatmul.mubr.bf16.vlgmr.msra.gmra.mxu0 %v5318_v5  ;;  %v4767_v4 = vld [vmem:[%s5241_s18 + $0x200] ss:$28 sps:$4 sm:$0xff]  }
  0x52   : > { %2053 = vmatmul.mubr.bf16.vlgmr.msra.gmra.mxu1 %v5321_v6  ;;  %2074 = vmatpush1.bf16.msra.mxu0 %v4677_v7  ;;  %v4770_v7 = vld [vmem:[%s5241_s18 + $0x580] ss:$28 sps:$4 sm:$0xff]  }
  0x53   : > { %2127 = vmatpush1.bf16.msra.mxu1 %v4680_v8  ;;  %2075 = vmatprep.subr.bf16.mxu0 %v4685_v9  ;;  %v4775_v8 = vld [vmem:[%s5241_s18 + $0x1cc] ss:$28 sps:$4 sm:$0xff]  }
  0x54   : > { %2128 = vmatprep.subr.bf16.mxu1 %v4688_v10  ;;  %2009 = vmatprep.mubr.bf16.mxu0 %v5328_v11  ;;  %v4778_v9 = vld [vmem:[%s5241_s18 + $0x54c] ss:$28 sps:$4 sm:$0xff]  }
  0x55   : > { %2062 = vmatprep.mubr.bf16.mxu1 %v5331_v12  ;;  %v4773_v10 = vld [vmem:[%s5241_s18 + $0x1c8] ss:$28 sps:$4 sm:$0xff]  }
  0x56   : > { %2076 = vmatpush1.bf16.msra.mxu0 %v4683_v13  ;;  %v4776_v13 = vld [vmem:[%s5241_s18 + $0x548] ss:$28 sps:$4 sm:$0xff]  }
  0x57   : > { %2129 = vmatpush1.bf16.msra.mxu1 %v4686_v14  ;;  %2077 = vmatprep.subr.bf16.mxu0 %v4694_v15  ;;  %v4781_v14 = vld [vmem:[%s5241_s18 + $0x19c] ss:$28 sps:$4 sm:$0xff]  }
  0x58   : > { %2130 = vmatprep.subr.bf16.mxu1 %v4697_v16  ;;  %v4784_v15 = vld [vmem:[%s5241_s18 + $0x51c] ss:$28 sps:$4 sm:$0xff]  }
  0x59   : > { %2010 = vmatmul.mubr.bf16.gmra.mxu0 %v5341_v17  ;;  %v4779_v16 = vld [vmem:[%s5241_s18 + $0x198] ss:$28 sps:$4 sm:$0xff]  }
  0x5a   : > { %2063 = vmatmul.mubr.bf16.gmra.mxu1 %v5346_v19  ;;  %2078 = vmatpush1.bf16.msra.mxu0 %v4692_v18  ;;  %v4782_v18 = vld [vmem:[%s5241_s18 + $0x518] ss:$28 sps:$4 sm:$0xff]  }
  0x5b   : > { %2131 = vmatpush1.bf16.msra.mxu1 %v4695_v20  ;;  %2079 = vmatprep.subr.bf16.mxu0 %v4703_v21  ;;  %v4787_v20 = vld [vmem:[%s5241_s18 + $0x164] ss:$28 sps:$4 sm:$0xff]  }
  0x5c   : > { %2132 = vmatprep.subr.bf16.mxu1 %v4706_v22  ;;  %2105 = vmatprep.mubr.bf16.mxu0 %v5244_v0  ;;  %v4716_v0 = vld [vmem:[%s5241_s18 + $0x3f8] ss:$28 sps:$4 sm:$0xff]   ;;  %v4790_v21 = vld [vmem:[%s5241_s18 + $0x4e4] ss:$28 sps:$4 sm:$0xff]  }
  0x5d   : > { %2158 = vmatprep.mubr.bf16.mxu1 %v5295_v48  ;;  %v4785_v22 = vld [vmem:[%s5241_s18 + $0x160] ss:$28 sps:$4 sm:$0xff]  }
  0x5e   : > { %2080 = vmatpush1.bf16.msra.mxu0 %v4701_v23  ;;  %v4788_v23 = vld [vmem:[%s5241_s18 + $0x4e0] ss:$28 sps:$4 sm:$0xff]  }
  0x5f   : > { %2133 = vmatpush1.bf16.msra.mxu1 %v4704_v24  ;;  %2081 = vmatprep.subr.bf16.mxu0 %v4709_v25  ;;  %v4793_v24 = vld [vmem:[%s5241_s18 + $0x12c] ss:$28 sps:$4 sm:$0xff]  }
  0x60   : > { %2134 = vmatprep.subr.bf16.mxu1 %v4712_v26  ;;  %v4796_v25 = vld [vmem:[%s5241_s18 + $0x4ac] ss:$28 sps:$4 sm:$0xff]  }
  0x61   : > { %v4791_v26 = vld [vmem:[%s5241_s18 + $0x128] ss:$28 sps:$4 sm:$0xff]  }
  0x62   : > { %2082 = vmatpush1.bf16.msra.mxu0 %v4707_v27  ;;  %v4794_v27 = vld [vmem:[%s5241_s18 + $0x4a8] ss:$28 sps:$4 sm:$0xff]  }
  0x63   : > { %2135 = vmatpush1.bf16.msra.mxu1 %v4710_v28  ;;  %2083 = vmatprep.subr.bf16.mxu0 %v4715_v29  ;;  %v4797_v28 = vld [vmem:[%s5241_s18 + $0xf0] ss:$28 sps:$4 sm:$0xff]   ;;  %v4808_v29 = vld [vmem:[%s5241_s18 + $0x43c] ss:$28 sps:$4 sm:$0xff]  }
  0x64   : > { %2136 = vmatprep.subr.bf16.mxu1 %v4718_v30  ;;  %v4803_v30 = vld [vmem:[%s5241_s18 + $0xb8] ss:$28 sps:$4 sm:$0xff]  }
  0x66   : > { %2084 = vmatpush1.bf16.msra.mxu0 %v4713_v31  ;;  %v5431_v31 = vld [vmem:[%s5236_s15 + $0x4] ss:$16 sps:$4 sm:$0xff]  }
  0x67   : > { %2137 = vmatpush1.bf16.msra.mxu1 %v4716_v0  ;;  %2085 = vmatprep.subr.bf16.mxu0 %v4721_v32  ;;  %v4814_v0 = vld [vmem:[%s5241_s18 + $0x404] ss:$28 sps:$4 sm:$0xff]  }
  0x68   : > { %2138 = vmatprep.subr.bf16.mxu1 %v4724_v33  ;;  %v4809_v32 = vld [vmem:[%s5241_s18 + $0x80] ss:$28 sps:$4 sm:$0xff]  }
  0x69   : > { %v4812_v33 = vld [vmem:[%s5241_s18 + $0x400] ss:$28 sps:$4 sm:$0xff]  }
  0x6a   : > { %2086 = vmatpush1.bf16.msra.mxu0 %v4719_v34  ;;  %v4817_v34 = vld [vmem:[%s5241_s18 + $0x4c] ss:$28 sps:$4 sm:$0xff]  }
  0x6b   : > { %2139 = vmatpush1.bf16.msra.mxu1 %v4722_v35  ;;  %2087 = vmatprep.subr.bf16.mxu0 %v4727_v36  ;;  %v4815_v35 = vld [vmem:[%s5241_s18 + $0x48] ss:$28 sps:$4 sm:$0xff]  }
  0x6c   : > { %2140 = vmatprep.subr.bf16.mxu1 %v4730_v37  ;;  %v4818_v36 = vld [vmem:[%s5241_s18 + $0x3c8] ss:$28 sps:$4 sm:$0xff]   ;;  %v4823_v37 = vld [vmem:[%s5241_s18 + $0x14] ss:$28 sps:$4 sm:$0xff]  }
  0x6e   : > { %2088 = vmatpush1.bf16.msra.mxu0 %v4725_v38  ;;  %v4826_v38 = vld [vmem:[%s5241_s18 + $0x394] ss:$28 sps:$4 sm:$0xff]  }
  0x6f   : > { %2141 = vmatpush1.bf16.msra.mxu1 %v4728_v39  ;;  %2089 = vmatprep.subr.bf16.mxu0 %v4733_v40  ;;  %v4821_v39 = vld [vmem:[%s5241_s18 + $0x10] ss:$28 sps:$4 sm:$0xff]  }
  0x70   : > { %2142 = vmatprep.subr.bf16.mxu1 %v4736_v41  ;;  %v4824_v40 = vld [vmem:[%s5241_s18 + $0x390] ss:$28 sps:$4 sm:$0xff]   ;;  %v4829_v41 = vld [vmem:[%s5241_s18 + $0x35c] ss:$28 sps:$4 sm:$0xff]  }
  0x72   : > { %2090 = vmatpush2.bf16.msra.mxu0 %v4731_v42  ;;  %v4832_v42 = vld [vmem:[%s5241_s18 + $0x6dc] ss:$28 sps:$4 sm:$0xff]  }
  0x73   : > { %2143 = vmatpush2.bf16.msra.mxu1 %v4734_v43  ;;  %2091 = vmatprep.subr.bf16.mxu0 %v4739_v44  ;;  %v4827_v43 = vld [vmem:[%s5241_s18 + $0x358] ss:$28 sps:$4 sm:$0xff]  }
  0x74   : > { %2144 = vmatprep.subr.bf16.mxu1 %v4742_v45  ;;  %v4830_v44 = vld [vmem:[%s5241_s18 + $0x6d8] ss:$28 sps:$4 sm:$0xff]   ;;  %v4835_v45 = vld [vmem:[%s5241_s18 + $0x324] ss:$28 sps:$4 sm:$0xff]  }
  0x76   : > { %2092 = vmatpush2.bf16.msra.mxu0 %v4737_v46  ;;  %v4838_v46 = vld [vmem:[%s5241_s18 + $0x6a4] ss:$28 sps:$4 sm:$0xff]  }
  0x77   : > { %2145 = vmatpush2.bf16.msra.mxu1 %v4740_v47  ;;  %2093 = vmatprep.subr.bf16.mxu0 %v4745_v49  ;;  %v4833_v47 = vld [vmem:[%s5241_s18 + $0x320] ss:$28 sps:$4 sm:$0xff]  }
  0x78   : > { %2146 = vmatprep.subr.bf16.mxu1 %v4748_v50  ;;  %v4836_v49 = vld [vmem:[%s5241_s18 + $0x6a0] ss:$28 sps:$4 sm:$0xff]   ;;  %v4841_v50 = vld [vmem:[%s5241_s18 + $0x2ec] ss:$28 sps:$4 sm:$0xff]  }
  0x7a   : > { %2094 = vmatpush2.bf16.msra.mxu0 %v4743_v51  ;;  %v4844_v51 = vld [vmem:[%s5241_s18 + $0x66c] ss:$28 sps:$4 sm:$0xff]  }
  0x7b   : > { %2147 = vmatpush2.bf16.msra.mxu1 %v4746_v52  ;;  %2095 = vmatprep.subr.bf16.mxu0 %v4751_v53  ;;  %v4839_v52 = vld [vmem:[%s5241_s18 + $0x2e8] ss:$28 sps:$4 sm:$0xff]  }
  0x7c   : > { %2148 = vmatprep.subr.bf16.mxu1 %v4754_v54  ;;  %v4842_v53 = vld [vmem:[%s5241_s18 + $0x668] ss:$28 sps:$4 sm:$0xff]   ;;  %v4847_v54 = vld [vmem:[%s5241_s18 + $0x2b4] ss:$28 sps:$4 sm:$0xff]  }
  0x7e   : > { %2096 = vmatpush2.bf16.msra.mxu0 %v4749_v55  ;;  %v4850_v55 = vld [vmem:[%s5241_s18 + $0x634] ss:$28 sps:$4 sm:$0xff]  }
  0x7f   : > { %2149 = vmatpush2.bf16.msra.mxu1 %v4752_v56  ;;  %2097 = vmatprep.subr.bf16.mxu0 %v4757_v57  ;;  %v4845_v56 = vld [vmem:[%s5241_s18 + $0x2b0] ss:$28 sps:$4 sm:$0xff]  }
  0x80   : > { %2150 = vmatprep.subr.bf16.mxu1 %v4760_v58  ;;  %v4848_v57 = vld [vmem:[%s5241_s18 + $0x630] ss:$28 sps:$4 sm:$0xff]   ;;  %v4853_v58 = vld [vmem:[%s5241_s18 + $0x27c] ss:$28 sps:$4 sm:$0xff]  }
  0x82   : > { %2098 = vmatpush2.bf16.msra.mxu0 %v4755_v59  ;;  %v4856_v59 = vld [vmem:[%s5241_s18 + $0x5fc] ss:$28 sps:$4 sm:$0xff]  }
  0x83   : > { %2151 = vmatpush2.bf16.msra.mxu1 %v4758_v60  ;;  %2099 = vmatprep.subr.bf16.mxu0 %v4763_v61  ;;  %v4851_v60 = vld [vmem:[%s5241_s18 + $0x278] ss:$28 sps:$4 sm:$0xff]  }
  0x84   : > { %2152 = vmatprep.subr.bf16.mxu1 %v4766_v62  ;;  %v4854_v61 = vld [vmem:[%s5241_s18 + $0x5f8] ss:$28 sps:$4 sm:$0xff]   ;;  %v4859_v62 = vld [vmem:[%s5241_s18 + $0x244] ss:$28 sps:$4 sm:$0xff]  }
  0x86   : > { %2100 = vmatpush2.bf16.msra.mxu0 %v4761_v63  ;;  %v4862_v63 = vld [vmem:[%s5241_s18 + $0x5c4] ss:$28 sps:$4 sm:$0xff]  }
  0x87   : > { %2153 = vmatpush2.bf16.msra.mxu1 %v4764_v1  ;;  %2101 = vmatprep.subr.bf16.mxu0 %v4769_v2  ;;  %v4857_v1 = vld [vmem:[%s5241_s18 + $0x240] ss:$28 sps:$4 sm:$0xff]  }
  0x88   : > { %2154 = vmatprep.subr.bf16.mxu1 %v4772_v3  ;;  %v4860_v2 = vld [vmem:[%s5241_s18 + $0x5c0] ss:$28 sps:$4 sm:$0xff]   ;;  %v4865_v3 = vld [vmem:[%s5241_s18 + $0x20c] ss:$28 sps:$4 sm:$0xff]  }
  0x8a   : > { %2102 = vmatpush2.bf16.msra.mxu0 %v4767_v4  ;;  %v4868_v4 = vld [vmem:[%s5241_s18 + $0x58c] ss:$28 sps:$4 sm:$0xff]  }
  0x8b   : > { %2155 = vmatpush2.bf16.msra.mxu1 %v4770_v7  ;;  %2103 = vmatprep.subr.bf16.mxu0 %v4775_v8  ;;  %v4863_v7 = vld [vmem:[%s5241_s18 + $0x208] ss:$28 sps:$4 sm:$0xff]  }
  0x8c   : > { %2156 = vmatprep.subr.bf16.mxu1 %v4778_v9  ;;  %v4866_v8 = vld [vmem:[%s5241_s18 + $0x588] ss:$28 sps:$4 sm:$0xff]   ;;  %v4871_v9 = vld [vmem:[%s5241_s18 + $0x1d4] ss:$28 sps:$4 sm:$0xff]  }
  0x8e   : > { %2104 = vmatpush2.bf16.msra.mxu0 %v4773_v10  ;;  %v4874_v10 = vld [vmem:[%s5241_s18 + $0x554] ss:$28 sps:$4 sm:$0xff]  }
  0x8f   : > { %2157 = vmatpush2.bf16.msra.mxu1 %v4776_v13  ;;  %2179 = vmatprep.subr.bf16.mxu0 %v4781_v14  ;;  %v4869_v13 = vld [vmem:[%s5241_s18 + $0x1d0] ss:$28 sps:$4 sm:$0xff]  }
  0x90   : > { %2232 = vmatprep.subr.bf16.mxu1 %v4784_v15  ;;  %v4872_v14 = vld [vmem:[%s5241_s18 + $0x550] ss:$28 sps:$4 sm:$0xff]   ;;  %v4875_v15 = vld [vmem:[%s5241_s18 + $0x360] ss:$28 sps:$4 sm:$0xff]  }
  0x91   : > { %2106 = vmatmul.mubr.bf16.vlgmr.msra.gmra.mxu0 %v5318_v5  ;;  %v4799_v5 = vld [vmem:[%s5241_s18 + $0xf4] ss:$28 sps:$4 sm:$0xff]  }
  0x92   : > { %2159 = vmatmul.mubr.bf16.vlgmr.msra.gmra.mxu1 %v5321_v6  ;;  %2180 = vmatpush1.bf16.msra.mxu0 %v4779_v16  ;;  %v4802_v6 = vld [vmem:[%s5241_s18 + $0x474] ss:$28 sps:$4 sm:$0xff]   ;;  %v4876_v16 = vld [vmem:[%s5241_s18 + $0x6e0] ss:$28 sps:$4 sm:$0xff]  }
  0x93   : > { %2233 = vmatpush1.bf16.msra.mxu1 %v4782_v18  ;;  %2181 = vmatprep.subr.bf16.mxu0 %v4787_v20  ;;  %v4877_v18 = vld [vmem:[%s5241_s18 + $0x1a0] ss:$28 sps:$4 sm:$0xff]  }
  0x94   : > { %2234 = vmatprep.subr.bf16.mxu1 %v4790_v21  ;;  %2115 = vmatprep.mubr.bf16.mxu0 %v5328_v11  ;;  %v4800_v11 = vld [vmem:[%s5241_s18 + $0x470] ss:$28 sps:$4 sm:$0xff]   ;;  %v4878_v20 = vld [vmem:[%s5241_s18 + $0x520] ss:$28 sps:$4 sm:$0xff]   ;;  %v4879_v21 = vld [vmem:[%s5241_s18 + $0x328] ss:$28 sps:$4 sm:$0xff]  }
  0x95   : > { %2168 = vmatprep.mubr.bf16.mxu1 %v5331_v12  ;;  %v4805_v12 = vld [vmem:[%s5241_s18 + $0xbc] ss:$28 sps:$4 sm:$0xff]  }
  0x96   : > { %2182 = vmatpush1.bf16.msra.mxu0 %v4785_v22  ;;  %v4880_v22 = vld [vmem:[%s5241_s18 + $0x6a8] ss:$28 sps:$4 sm:$0xff]  }
  0x97   : > { %2235 = vmatpush1.bf16.msra.mxu1 %v4788_v23  ;;  %2183 = vmatprep.subr.bf16.mxu0 %v4793_v24  ;;  %v4881_v23 = vld [vmem:[%s5241_s18 + $0x168] ss:$28 sps:$4 sm:$0xff]  }
  0x98   : > { %2236 = vmatprep.subr.bf16.mxu1 %v4796_v25  ;;  %v4882_v24 = vld [vmem:[%s5241_s18 + $0x4e8] ss:$28 sps:$4 sm:$0xff]   ;;  %v5495_v25 = vld [vmem:[%s5236_s15] ss:$16 sps:$4 sm:$0xff]  }
  0x99   : > { %2116 = vmatmul.mubr.bf16.gmra.mxu0 %v5341_v17  ;;  %v4806_v17 = vld [vmem:[%s5241_s18 + $0x438] ss:$28 sps:$4 sm:$0xff]  }
  0x9a   : > { %2169 = vmatmul.mubr.bf16.gmra.mxu1 %v5346_v19  ;;  %2184 = vmatpush1.bf16.msra.mxu0 %v4791_v26  ;;  %v4811_v19 = vld [vmem:[%s5241_s18 + $0x84] ss:$28 sps:$4 sm:$0xff]   ;;  %v5499_v26 = vld [vmem:[%s5236_s15 + $0x8] ss:$16 sps:$4 sm:$0xff]  }
  0x9b   : > { %2237 = vmatpush1.bf16.msra.mxu1 %v4794_v27  ;;  %2185 = vmatprep.subr.bf16.mxu0 %v4799_v5  ;;  %v4883_v27 = vld [vmem:[%s5241_s18 + $0x2f0] ss:$28 sps:$4 sm:$0xff]  }
  0x9c   : > { %2238 = vmatprep.subr.bf16.mxu1 %v4802_v6  ;;  %2211 = vmatprep.mubr.bf16.mxu0 %v5431_v31  ;;  %v4884_v5 = vld [vmem:[%s5241_s18 + $0x670] ss:$28 sps:$4 sm:$0xff]   ;;  %v5505_v6 = vld [vmem:[%s5236_s15 + $0x24] ss:$16 sps:$4 sm:$0xff]  }
  0x9d   : > { %2264 = vmatprep.mubr.bf16.mxu1 %v5295_v48  ;;  %v4820_v48 = vld [vmem:[%s5241_s18 + $0x3cc] ss:$28 sps:$4 sm:$0xff]  }
  0x9e   : > { %2186 = vmatpush1.bf16.msra.mxu0 %v4797_v28  ;;  %v5509_v28 = vld [vmem:[%s5236_s15 + $0x2c] ss:$16 sps:$4 sm:$0xff]  }
  0x9f   : > { %2239 = vmatpush1.bf16.msra.mxu1 %v4800_v11  ;;  %2187 = vmatprep.subr.bf16.mxu0 %v4805_v12  ;;  %v4885_v11 = vld [vmem:[%s5241_s18 + $0x130] ss:$28 sps:$4 sm:$0xff]  }
  0xa0   : > { %2240 = vmatprep.subr.bf16.mxu1 %v4808_v29  ;;  %v4886_v12 = vld [vmem:[%s5241_s18 + $0x4b0] ss:$28 sps:$4 sm:$0xff]   ;;  %v4887_v29 = vld [vmem:[%s5241_s18 + $0x2b8] ss:$28 sps:$4 sm:$0xff]  }
  0xa2   : > { %2188 = vmatpush1.bf16.msra.mxu0 %v4803_v30  ;;  %v4888_v30 = vld [vmem:[%s5241_s18 + $0x638] ss:$28 sps:$4 sm:$0xff]  }
  0xa3   : > { %2241 = vmatpush1.bf16.msra.mxu1 %v4806_v17  ;;  %2189 = vmatprep.subr.bf16.mxu0 %v4811_v19  ;;  %v4889_v17 = vld [vmem:[%s5241_s18 + $0xf8] ss:$28 sps:$4 sm:$0xff]  }
  0xa4   : > { %2242 = vmatprep.subr.bf16.mxu1 %v4814_v0  ;;  %v4890_v19 = vld [vmem:[%s5241_s18 + $0x478] ss:$28 sps:$4 sm:$0xff]   ;;  %v5156_v0 = vld [vmem:[%s5236_s15 + $0x20] ss:$16 sps:$4 sm:$0xff]  }
  0xa6   : > { %2190 = vmatpush1.bf16.msra.mxu0 %v4809_v32  ;;  %v5157_v32 = vld [vmem:[%s5236_s15 + $0x28] ss:$16 sps:$4 sm:$0xff]  }
  0xa7   : > { %2243 = vmatpush1.bf16.msra.mxu1 %v4812_v33  ;;  %2191 = vmatprep.subr.bf16.mxu0 %v4817_v34  ;;  %v4891_v33 = vld [vmem:[%s5241_s18 + $0x280] ss:$28 sps:$4 sm:$0xff]  }
  0xa8   : > { %2244 = vmatprep.subr.bf16.mxu1 %v4820_v48  ;;  %v4892_v34 = vld [vmem:[%s5241_s18 + $0x600] ss:$28 sps:$4 sm:$0xff]  }
  0xa9   : > { %v5158_v48 = vld [vmem:[%s5236_s15 + $0xc] ss:$16 sps:$4 sm:$0xff]  }
  0xaa   : > { %2192 = vmatpush1.bf16.msra.mxu0 %v4815_v35  ;;  %v4893_v35 = vld [vmem:[%s5241_s18 + $0xc0] ss:$28 sps:$4 sm:$0xff]  }
  0xab   : > { %2245 = vmatpush1.bf16.msra.mxu1 %v4818_v36  ;;  %2193 = vmatprep.subr.bf16.mxu0 %v4823_v37  ;;  %v4894_v36 = vld [vmem:[%s5241_s18 + $0x440] ss:$28 sps:$4 sm:$0xff]   ;;  %v4895_v37 = vld [vmem:[%s5241_s18 + $0x248] ss:$28 sps:$4 sm:$0xff]  }
  0xac   : > { %2246 = vmatprep.subr.bf16.mxu1 %v4826_v38  ;;  %v4896_v38 = vld [vmem:[%s5241_s18 + $0x5c8] ss:$28 sps:$4 sm:$0xff]  }
  0xae   : > { %2194 = vmatpush1.bf16.msra.mxu0 %v4821_v39  ;;  %v4897_v39 = vld [vmem:[%s5241_s18 + $0x88] ss:$28 sps:$4 sm:$0xff]  }
  0xaf   : > { %2247 = vmatpush1.bf16.msra.mxu1 %v4824_v40  ;;  %2195 = vmatprep.subr.bf16.mxu0 %v4829_v41  ;;  %v4899_v40 = vld [vmem:[%s5241_s18 + $0x210] ss:$28 sps:$4 sm:$0xff]  }
  0xb0   : > { %2248 = vmatprep.subr.bf16.mxu1 %v4832_v42  ;;  %v4900_v41 = vld [vmem:[%s5241_s18 + $0x590] ss:$28 sps:$4 sm:$0xff]  }
  0xb1   : > { %v4901_v42 = vld [vmem:[%s5241_s18 + $0x50] ss:$28 sps:$4 sm:$0xff]  }
  0xb2   : > { %2196 = vmatpush2.bf16.msra.mxu0 %v4827_v43  ;;  %v4902_v43 = vld [vmem:[%s5241_s18 + $0x3d0] ss:$28 sps:$4 sm:$0xff]  }
  0xb3   : > { %2249 = vmatpush2.bf16.msra.mxu1 %v4830_v44  ;;  %2197 = vmatprep.subr.bf16.mxu0 %v4835_v45  ;;  %v4903_v44 = vld [vmem:[%s5241_s18 + $0x1d8] ss:$28 sps:$4 sm:$0xff]  }
  0xb4   : > { %2250 = vmatprep.subr.bf16.mxu1 %v4838_v46  ;;  %v4904_v45 = vld [vmem:[%s5241_s18 + $0x558] ss:$28 sps:$4 sm:$0xff]  }
  0xb5   : > { %v4905_v46 = vld [vmem:[%s5241_s18 + $0x18] ss:$28 sps:$4 sm:$0xff]  }
  0xb6   : > { %2198 = vmatpush2.bf16.msra.mxu0 %v4833_v47  ;;  %v4906_v47 = vld [vmem:[%s5241_s18 + $0x398] ss:$28 sps:$4 sm:$0xff]  }
  0xb7   : > { %2251 = vmatpush2.bf16.msra.mxu1 %v4836_v49  ;;  %2199 = vmatprep.subr.bf16.mxu0 %v4841_v50  ;;  %v4909_v49 = vld [vmem:[%s5464_s22 + $0x74] ss:$8 sps:$4 sm:$0xff]   ;;  %v4907_v50 = vld [vmem:[%s5464_s22 + $0x70] ss:$8 sps:$4 sm:$0xff]  }
  0xb8   : > { %2252 = vmatprep.subr.bf16.mxu1 %v4844_v51  ;;  %v4912_v51 = vld [vmem:[%s5464_s22 + $0x64] ss:$8 sps:$4 sm:$0xff]  }
  0xba   : > { %2200 = vmatpush2.bf16.msra.mxu0 %v4839_v52  ;;  %v4910_v52 = vld [vmem:[%s5464_s22 + $0x60] ss:$8 sps:$4 sm:$0xff]  }
  0xbb   : > { %2253 = vmatpush2.bf16.msra.mxu1 %v4842_v53  ;;  %2201 = vmatprep.subr.bf16.mxu0 %v4847_v54  ;;  %v4915_v53 = vld [vmem:[%s5464_s22 + $0x54] ss:$8 sps:$4 sm:$0xff]   ;;  %v4913_v54 = vld [vmem:[%s5464_s22 + $0x50] ss:$8 sps:$4 sm:$0xff]  }
  0xbc   : > { %2254 = vmatprep.subr.bf16.mxu1 %v4850_v55  ;;  %v4918_v55 = vld [vmem:[%s5464_s22 + $0x44] ss:$8 sps:$4 sm:$0xff]  }
  0xbe   : > { %2202 = vmatpush2.bf16.msra.mxu0 %v4845_v56  ;;  %v4916_v56 = vld [vmem:[%s5464_s22 + $0x40] ss:$8 sps:$4 sm:$0xff]  }
  0xbf   : > { %2255 = vmatpush2.bf16.msra.mxu1 %v4848_v57  ;;  %2203 = vmatprep.subr.bf16.mxu0 %v4853_v58  ;;  %v4921_v57 = vld [vmem:[%s5464_s22 + $0x34] ss:$8 sps:$4 sm:$0xff]  }
  0xc0   : > { %2256 = vmatprep.subr.bf16.mxu1 %v4856_v59  ;;  %v4957_v58 = vld [vmem:[%s5464_s22 + $0x174] ss:$8 sps:$4 sm:$0xff]   ;;  %v4919_v59 = vld [vmem:[%s5464_s22 + $0x30] ss:$8 sps:$4 sm:$0xff]  }
  0xc2   : > { %2204 = vmatpush2.bf16.msra.mxu0 %v4851_v60  ;;  %v4955_v60 = vld [vmem:[%s5464_s22 + $0x170] ss:$8 sps:$4 sm:$0xff]  }
  0xc3   : > { %2257 = vmatpush2.bf16.msra.mxu1 %v4854_v61  ;;  %2205 = vmatprep.subr.bf16.mxu0 %v4859_v62  ;;  %v4924_v61 = vld [vmem:[%s5464_s22 + $0x24] ss:$8 sps:$4 sm:$0xff]  }
  0xc4   : > { %2258 = vmatprep.subr.bf16.mxu1 %v4862_v63  ;;  %v4960_v62 = vld [vmem:[%s5464_s22 + $0x164] ss:$8 sps:$4 sm:$0xff]   ;;  %v740_v63 = vlaneseq }
  0xc6   : > { %2206 = vmatpush2.bf16.msra.mxu0 %v4857_v1  ;;  %v4922_v1 = vld [vmem:[%s5464_s22 + $0x20] ss:$8 sps:$4 sm:$0xff]  }
  0xc7   : > { %2259 = vmatpush2.bf16.msra.mxu1 %v4860_v2  ;;  %2207 = vmatprep.subr.bf16.mxu0 %v4865_v3  ;;  %v4958_v2 = vld [vmem:[%s5464_s22 + $0x160] ss:$8 sps:$4 sm:$0xff]   ;;  %v4927_v3 = vld [vmem:[%s5464_s22 + $0x14] ss:$8 sps:$4 sm:$0xff]  }
  0xc8   : > { %2260 = vmatprep.subr.bf16.mxu1 %v4868_v4  ;;  %v4963_v4 = vld [vmem:[%s5464_s22 + $0x154] ss:$8 sps:$4 sm:$0xff]  }
  0xca   : > { %2208 = vmatpush2.bf16.msra.mxu0 %v4863_v7  ;;  %v5563_v7 = vshrl.u32 %v740_v63, 7  ;;  %v4943_v63 = vld [vmem:[%s5464_s22 + $0xb0] ss:$8 sps:$4 sm:$0xff]  }
  0xcb   : > { %2261 = vmatpush2.bf16.msra.mxu1 %v4866_v8  ;;  %2209 = vmatprep.subr.bf16.mxu0 %v4871_v9  ;;  %v4925_v8 = vld [vmem:[%s5464_s22 + $0x10] ss:$8 sps:$4 sm:$0xff]  }
  0xcc   : > { %2262 = vmatprep.subr.bf16.mxu1 %v4874_v10  ;;  %v4961_v9 = vld [vmem:[%s5464_s22 + $0x150] ss:$8 sps:$4 sm:$0xff]   ;;  %v4930_v10 = vld [vmem:[%s5464_s22 + $0x4] ss:$8 sps:$4 sm:$0xff]  }
  0xce   : > { %2210 = vmatpush2.bf16.msra.mxu0 %v4869_v13  ;;  %v4966_v13 = vld [vmem:[%s5464_s22 + $0x144] ss:$8 sps:$4 sm:$0xff]  }
  0xcf   : > { %2263 = vmatpush2.bf16.msra.mxu1 %v4872_v14  ;;  %4485 = vmatprep.subr.bf16.mxu0 %v4875_v15  ;;  %v4964_v14 = vld [vmem:[%s5464_s22 + $0x140] ss:$8 sps:$4 sm:$0xff]   ;;  %v4969_v15 = vld [vmem:[%s5464_s22 + $0x134] ss:$8 sps:$4 sm:$0xff]  }
  0xd0   : > { %4513 = vmatprep.subr.bf16.mxu1 %v4876_v16  ;;  %v5578_v16 = vsub.s32 0, %v5563_v7 }
  0xd1   : > { %2212 = vmatmul.mubr.bf16.vlgmr.msra.gmra.mxu0 %v5495_v25 }
  0xd2   : > { %2265 = vmatmul.mubr.bf16.vlgmr.msra.gmra.mxu1 %v5499_v26  ;;  %4486 = vmatpush3.bf16.msra.mxu0 %v4877_v18  ;;  %v4928_v18 = vld [vmem:[%s5464_s22] ss:$8 sps:$4 sm:$0xff]  }
  0xd3   : > { %4514 = vmatpush3.bf16.msra.mxu1 %v4878_v20  ;;  %4487 = vmatprep.subr.bf16.mxu0 %v4879_v21  ;;  %v5582_v20 = vld [vmem:[%s5573_s26] sm:$0x7f]  ;;  %v4933_v21 = vld [vmem:[%s5464_s22 + $0xf4] ss:$8 sps:$4 sm:$0xff]  }
  0xd4   : > { %4515 = vmatprep.subr.bf16.mxu1 %v4880_v22  ;;  %2221 = vmatprep.mubr.bf16.mxu0 %v5505_v6  ;;  %v5586_v22 = vsub.s32 1, %v5563_v7 }
  0xd5   : > { %2274 = vmatprep.mubr.bf16.mxu1 %v5509_v28 }
  0xd6   : > { %4488 = vmatpush3.bf16.msra.mxu0 %v4881_v23  ;;  %v4967_v23 = vld [vmem:[%s5464_s22 + $0x130] ss:$8 sps:$4 sm:$0xff]  }
  0xd7   : > { %4516 = vmatpush3.bf16.msra.mxu1 %v4882_v24  ;;  %4489 = vmatprep.subr.bf16.mxu0 %v4883_v27  ;;  %v4972_v24 = vld [vmem:[%s5464_s22 + $0x124] ss:$8 sps:$4 sm:$0xff]  }
  0xd8   : > { %4517 = vmatprep.subr.bf16.mxu1 %v4884_v5  ;;  %v4936_v27 = vld [vmem:[%s5464_s22 + $0xe4] ss:$8 sps:$4 sm:$0xff]  }
  0xd9   : > { %2222 = vmatmul.mubr.bf16.gmra.mxu0 %v5156_v0 }
  0xda   : > { %2275 = vmatmul.mubr.bf16.gmra.mxu1 %v5157_v32  ;;  %4490 = vmatpush3.bf16.msra.mxu0 %v4885_v11  ;;  %v4970_v11 = vld [vmem:[%s5464_s22 + $0x120] ss:$8 sps:$4 sm:$0xff]  }
  0xdb   : > { %4518 = vmatpush3.bf16.msra.mxu1 %v4886_v12  ;;  %4491 = vmatprep.subr.bf16.mxu0 %v4887_v29  ;;  %v4975_v12 = vld [vmem:[%s5464_s22 + $0x114] ss:$8 sps:$4 sm:$0xff]  }
  0xdc   : > { %4519 = vmatprep.subr.bf16.mxu1 %v4888_v30  ;;  %2317 = vmatprep.mubr.bf16.mxu0 %v5431_v31  ;;  %v4898_v31 = vld [vmem:[%s5241_s18 + $0x408] ss:$28 sps:$4 sm:$0xff]   ;;  %s4127_s18 = sshll.u32 %s6101_s10, 1 }
  0xdd   : > { %2366 = vmatprep.mubr.bf16.mxu1 %v5158_v48  ;;  %v4973_v48 = vld [vmem:[%s5464_s22 + $0x110] ss:$8 sps:$4 sm:$0xff]   ;;  %s460_s21 = scalar_lea.vmem %s6096_s6, %s4127_s18  ;;  %s472_s27 = scalar_lea.vmem %s6099_s9, %s4127_s18 }
  0xde   : > { %4492 = vmatpush3.bf16.msra.mxu0 %v4889_v17 }
  0xdf   : > { %4520 = vmatpush3.bf16.msra.mxu1 %v4890_v19  ;;  %4493 = vmatprep.subr.bf16.mxu0 %v4891_v33  ;;  %v4934_v19 = vld [vmem:[%s5464_s22 + $0xe0] ss:$8 sps:$4 sm:$0xff]  }
  0xe0   : > { %4521 = vmatprep.subr.bf16.mxu1 %v4892_v34 }
  0xe2   : > { %4494 = vmatpush3.bf16.msra.mxu0 %v4893_v35 }
  0xe3   : > { %4522 = vmatpush3.bf16.msra.mxu1 %v4894_v36  ;;  %4495 = vmatprep.subr.bf16.mxu0 %v4895_v37 }
  0xe4   : > { %4523 = vmatprep.subr.bf16.mxu1 %v4896_v38 }
  0xe6   : > { %4496 = vmatpush3.bf16.msra.mxu0 %v4897_v39  ;;  %v4937_v39 = vld [vmem:[%s5464_s22 + $0xd0] ss:$8 sps:$4 sm:$0xff]  }
  0xe7   : > { %4524 = vmatpush3.bf16.msra.mxu1 %v4898_v31  ;;  %4497 = vmatprep.subr.bf16.mxu0 %v4899_v40 }
  0xe8   : > { %4525 = vmatprep.subr.bf16.mxu1 %v4900_v41  ;;  %v4942_v41 = vld [vmem:[%s5464_s22 + $0xc4] ss:$8 sps:$4 sm:$0xff]  }
  0xea   : > { %4498 = vmatpush3.bf16.msra.mxu0 %v4901_v42 }
  0xeb   : > { %4526 = vmatpush3.bf16.msra.mxu1 %v4902_v43  ;;  %4499 = vmatprep.subr.bf16.mxu0 %v4903_v44 }
  0xec   : > { %4527 = vmatprep.subr.bf16.mxu1 %v4904_v45 }
  0xee   : > { %4500 = vmatpush3.bf16.msra.mxu0 %v4905_v46 }
  0xef   : > { %4528 = vmatpush3.bf16.msra.mxu1 %v4906_v47  ;;  %3616 = vmatprep.subr.bf16.mxu0 %v4909_v49  ;;  %v4978_v47 = vld [vmem:[%s5464_s22 + $0x104] ss:$8 sps:$4 sm:$0xff]  }
  0xf0   : > { %3657 = vmatprep.subr.bf16.mxu1 %v4957_v58 }
  0xf1   : > { %2318 = vmatmul.mubr.bf16.vlgmr.msra.gmra.mxu0 %v5495_v25  ;;  %v743_v25 = vrot.slane %v5582_v20, %v5578_v16 }
  0xf2   : > { %2367 = vmatmul.mubr.bf16.vlgmr.msra.gmra.mxu1 %v5499_v26  ;;  %2325 = vmatprep.mubr.bf16.mxu0 %v5505_v6  ;;  %v4931_v26 = vld [vmem:[%s5464_s22 + $0xf0] ss:$8 sps:$4 sm:$0xff]  }
  0xf3   : > { %2374 = vmatprep.mubr.bf16.mxu1 %v5509_v28  ;;  %3617 = vmatpush1.bf16.msra.mxu0 %v4907_v50  ;;  %v747_v28 = vrot.slane %v5582_v20, %v5586_v22 }
  0xf4   : > { %3618 = vmatprep.subr.bf16.mxu0 %v4912_v51  ;;  %3658 = vmatpush1.bf16.msra.mxu1 %v4955_v60  ;;  %v4940_v51 = vld [vmem:[%s5464_s22 + $0xc0] ss:$8 sps:$4 sm:$0xff]   ;;  %v4981_v60 = vld [vmem:[%s5464_s22 + $0x1f4] ss:$8 sps:$4 sm:$0xff]  }
  0xf5   : > { %3659 = vmatprep.subr.bf16.mxu1 %v4960_v62 }
  0xf7   : > { %3619 = vmatpush1.bf16.msra.mxu0 %v4910_v52  ;;  %v4976_v52 = vld [vmem:[%s5464_s22 + $0x100] ss:$8 sps:$4 sm:$0xff]  }
  0xf8   : > { %3620 = vmatprep.subr.bf16.mxu0 %v4915_v53  ;;  %3660 = vmatpush1.bf16.msra.mxu1 %v4958_v2 }
  0xf9   : > { %2326 = vmatmul.mubr.bf16.gmra.mxu0 %v5156_v0  ;;  %3661 = vmatprep.subr.bf16.mxu1 %v4963_v4  ;;  %v4939_v0 = vld [vmem:[%s5464_s22 + $0xd4] ss:$8 sps:$4 sm:$0xff]   ;;  %v4948_v4 = vld [vmem:[%s5464_s22 + $0xa4] ss:$8 sps:$4 sm:$0xff]  }
  0xfa   : > { %2375 = vmatmul.mubr.bf16.gmra.mxu1 %v5157_v32 }
  0xfb   : > { %3621 = vmatpush1.bf16.msra.mxu0 %v4913_v54 }
  0xfc   : > { %3622 = vmatprep.subr.bf16.mxu0 %v4918_v55  ;;  %3662 = vmatpush1.bf16.msra.mxu1 %v4961_v9  ;;  %v4945_v55 = vld [vmem:[%s5464_s22 + $0xb4] ss:$8 sps:$4 sm:$0xff]   ;;  %v4984_v9 = vld [vmem:[%s5464_s22 + $0x1e4] ss:$8 sps:$4 sm:$0xff]  }
  0xfd   : > { %3663 = vmatprep.subr.bf16.mxu1 %v4966_v13  ;;  %v4982_v13 = vld [vmem:[%s5464_s22 + $0x1e0] ss:$8 sps:$4 sm:$0xff]  }
  0xff   : > { %3623 = vmatpush1.bf16.msra.mxu0 %v4916_v56 }
 0x100   : > { %3624 = vmatprep.subr.bf16.mxu0 %v4921_v57  ;;  %3664 = vmatpush1.bf16.msra.mxu1 %v4964_v14  ;;  %v4951_v14 = vld [vmem:[%s5464_s22 + $0x94] ss:$8 sps:$4 sm:$0xff]  }
 0x101   : > { %3665 = vmatprep.subr.bf16.mxu1 %v4969_v15  ;;  %v4987_v15 = vld [vmem:[%s5464_s22 + $0x1d4] ss:$8 sps:$4 sm:$0xff]  }
 0x103   : > { %3625 = vmatpush1.bf16.msra.mxu0 %v4919_v59 }
 0x104   : > { %3626 = vmatprep.subr.bf16.mxu0 %v4924_v61  ;;  %3666 = vmatpush1.bf16.msra.mxu1 %v4967_v23  ;;  %v4985_v23 = vld [vmem:[%s5464_s22 + $0x1d0] ss:$8 sps:$4 sm:$0xff]  }
 0x105   : > { %3667 = vmatprep.subr.bf16.mxu1 %v4972_v24 }
 0x107   : > { %3627 = vmatpush1.bf16.msra.mxu0 %v4922_v1  ;;  %v4979_v1 = vld [vmem:[%s5464_s22 + $0x1f0] ss:$8 sps:$4 sm:$0xff]  }
 0x108   : > { %3628 = vmatprep.subr.bf16.mxu0 %v4927_v3  ;;  %3668 = vmatpush1.bf16.msra.mxu1 %v4970_v11 }
 0x109   : > { %3669 = vmatprep.subr.bf16.mxu1 %v4975_v12  ;;  %v4952_v12 = vld [vmem:[%s5464_s22 + $0x80] ss:$8 sps:$4 sm:$0xff]  }
 0x10b   : > { %3629 = vmatpush1.bf16.msra.mxu0 %v4925_v8 }
 0x10c   : > { %3630 = vmatprep.subr.bf16.mxu0 %v4930_v10  ;;  %3670 = vmatpush1.bf16.msra.mxu1 %v4973_v48  ;;  %v4946_v10 = vld [vmem:[%s5464_s22 + $0xa0] ss:$8 sps:$4 sm:$0xff]  }
 0x10d   : > { %3671 = vmatprep.subr.bf16.mxu1 %v4978_v47 }
 0x10f   : > { %3631 = vmatpush1.bf16.msra.mxu0 %v4928_v18 }
 0x110   : > { %3632 = vmatprep.subr.bf16.mxu0 %v4933_v21  ;;  %3672 = vmatpush1.bf16.msra.mxu1 %v4976_v52  ;;  %v4949_v21 = vld [vmem:[%s5464_s22 + $0x90] ss:$8 sps:$4 sm:$0xff]  }
 0x111   : > { %v2001_v5 = vpop.f32.mrf.mxu0  ;;  %3673 = vmatprep.subr.bf16.mxu1 %v4981_v60  ;;  %v4999_v60 = vld [vmem:[%s5464_s22 + $0x194] ss:$8 sps:$4 sm:$0xff]  }
 0x112   : > { %v2054_v6 = vpop.f32.mrf.mxu1  ;;  %v2002_v29 = vadd.f32 %v2001_v5, %v743_v25 }
 0x113   : > { %v2003_v30 = vpop.f32.mrf.mxu0  ;;  %3633 = vmatpush2.bf16.msra.mxu0 %v4931_v26 }
 0x114   : > { %v2056_v17 = vpop.f32.mrf.mxu1  ;;  %3634 = vmatprep.subr.bf16.mxu0 %v4936_v27  ;;  %v2004_v32 = vadd.f32 %v2003_v30, %v747_v28  ;;  %v2055_v36 = vadd.f32 %v2054_v6, %v2002_v29  ;;  %3674 = vmatpush2.bf16.msra.mxu1 %v4979_v1  ;;  %v4990_v6 = vld [vmem:[%s5464_s22 + $0x1c4] ss:$8 sps:$4 sm:$0xff]   ;;  %v4988_v29 = vld [vmem:[%s5464_s22 + $0x1c0] ss:$8 sps:$4 sm:$0xff]  }
 0x115   : > { %v2005_v33 = vpop.f32.mrf.mxu0  ;;  %3675 = vmatprep.subr.bf16.mxu1 %v4984_v9 }
 0x116   : > { %v2058_v34 = vpop.f32.mrf.mxu1  ;;  %v2006_v35 = vadd.f32 %v2005_v33, %v743_v25  ;;  %v2057_v42 = vadd.f32 %v2056_v17, %v2004_v32 }
 0x117   : > { %v2007_v37 = vpop.f32.mrf.mxu0  ;;  %3635 = vmatpush2.bf16.msra.mxu0 %v4934_v19 }
 0x118   : > { %v2060_v38 = vpop.f32.mrf.mxu1  ;;  %v2059_v31 = vadd.f32 %v2058_v34, %v2006_v35  ;;  %v2008_v40 = vadd.f32 %v2007_v37, %v747_v28  ;;  %3636 = vmatprep.subr.bf16.mxu0 %v4939_v0  ;;  %3676 = vmatpush2.bf16.msra.mxu1 %v4982_v13  ;;  %v5000_v13 = vld [vmem:[%s5464_s22 + $0x180] ss:$8 sps:$4 sm:$0xff]  }
 0x119   : > { %v2011_v43 = vpop.f32.mrf.mxu0  ;;  %3677 = vmatprep.subr.bf16.mxu1 %v4987_v15 }
 0x11a   : > { %v2064_v44 = vpop.f32.mrf.mxu1  ;;  %5073 = vtanh.f32 %v2059_v31  ;;  %v2061_v45 = vadd.f32 %v2060_v38, %v2008_v40  ;;  %v2012_v46 = vadd.f32 %v2011_v43, %v743_v25 }
 0x11b   : > { %5075 = vtanh.f32 %v2055_v36  ;;  %v2013_v49 = vpop.f32.mrf.mxu0  ;;  %3637 = vmatpush2.bf16.msra.mxu0 %v4937_v39  ;;  %v4993_v36 = vld [vmem:[%s5464_s22 + $0x1b4] ss:$8 sps:$4 sm:$0xff]   ;;  %v4991_v39 = vld [vmem:[%s5464_s22 + $0x1b0] ss:$8 sps:$4 sm:$0xff]  }
 0x11c   : > { %v2066_v50 = vpop.f32.mrf.mxu1  ;;  %5077 = vtanh.f32 %v2061_v45  ;;  %v2014_v53 = vadd.f32 %v2013_v49, %v747_v28  ;;  %v2065_v54 = vadd.f32 %v2064_v44, %v2012_v46  ;;  %3638 = vmatprep.subr.bf16.mxu0 %v4942_v41  ;;  %3678 = vmatpush2.bf16.msra.mxu1 %v4985_v23 }
 0x11d   : > { %5079 = vtanh.f32 %v2057_v42  ;;  %v2015_v56 = vpop.f32.mrf.mxu0  ;;  %3679 = vmatprep.subr.bf16.mxu1 %v4990_v6 }
 0x11e   : > { %v2068_v57 = vpop.f32.mrf.mxu1  ;;  %5081 = vtanh.f32 %v2065_v54  ;;  %v2016_v58 = vadd.f32 %v2015_v56, %v743_v25  ;;  %v2067_v59 = vadd.f32 %v2066_v50, %v2014_v53  ;;  %v4954_v25 = vld [vmem:[%s5464_s22 + $0x84] ss:$8 sps:$4 sm:$0xff]  }
 0x11f   : > { %v2017_v61 = vpop.f32.mrf.mxu0  ;;  %3639 = vmatpush2.bf16.msra.mxu0 %v4940_v51  ;;  %v4996_v50 = vld [vmem:[%s5464_s22 + $0x1a4] ss:$8 sps:$4 sm:$0xff]   ;;  %v4994_v51 = vld [vmem:[%s5464_s22 + $0x1a0] ss:$8 sps:$4 sm:$0xff]  }
 0x120   : > { %v2070_v62 = vpop.f32.mrf.mxu1  ;;  %5083 = vtanh.f32 %v2067_v59  ;;  %v2018_v2 = vadd.f32 %v2017_v61, %v747_v28  ;;  %v2069_v3 = vadd.f32 %v2068_v57, %v2016_v58  ;;  %3640 = vmatprep.subr.bf16.mxu0 %v4945_v55  ;;  %3680 = vmatpush2.bf16.msra.mxu1 %v4988_v29  ;;  %v4997_v61 = vld [vmem:[%s5464_s22 + $0x190] ss:$8 sps:$4 sm:$0xff]  }
 0x121   : > { %3681 = vmatprep.subr.bf16.mxu1 %v4993_v36 }
 0x122   : > { %5085 = vtanh.f32 %v2069_v3  ;;  %v2071_v8 = vadd.f32 %v2070_v62, %v2018_v2 }
 0x123   : > { %3641 = vmatpush2.bf16.msra.mxu0 %v4943_v63 }
 0x124   : > { %5087 = vtanh.f32 %v2071_v8  ;;  %3642 = vmatprep.subr.bf16.mxu0 %v4948_v4  ;;  %3682 = vmatpush2.bf16.msra.mxu1 %v4991_v39 }
 0x125   : > { %3683 = vmatprep.subr.bf16.mxu1 %v4996_v50 }
 0x127   : > { %v5616_v18 = vpop.eup %5073  ;;  %3643 = vmatpush2.bf16.msra.mxu0 %v4946_v10  ;;  %v5002_v10 = vld [vmem:[%s5464_s22 + $0x184] ss:$8 sps:$4 sm:$0xff]  }
 0x128   : > { %v5620_v24 = vpop.eup %5075  ;;  %3644 = vmatprep.subr.bf16.mxu0 %v4951_v14  ;;  %v2493_v5 = vmul.f32 %v5616_v18, %v5616_v18  ;;  %3684 = vmatpush2.bf16.msra.mxu1 %v4994_v51 }
 0x129   : > { %v5623_v26 = vpop.eup %5077  ;;  %v2486_v30 = vmul.f32 %v5620_v24, %v5620_v24  ;;  %v2411_v17 = vadd.f32 %v5620_v24, %v5616_v18  ;;  %3685 = vmatprep.subr.bf16.mxu1 %v4999_v60 }
 0x12a   : > { %v5625_v27 = vpop.eup %5079  ;;  %v2494_v11 = vmul.f32 %v5623_v26, %v5623_v26 }
 0x12b   : > { %v5630_v28 = vpop.eup %5081  ;;  %3645 = vmatpush2.bf16.msra.mxu0 %v4949_v21  ;;  %v2487_v32 = vmul.f32 %v5625_v27, %v5625_v27  ;;  %v2514_v33 = vadd.f32 %v2493_v5, %v2486_v30  ;;  %v2420_v34 = vadd.f32 %v5625_v27, %v5623_v26 }
 0x12c   : > { %v2500_v19 = vmul.f32 %v5630_v28, %v5630_v28  ;;  %3646 = vmatprep.subr.bf16.mxu0 %v4954_v25  ;;  %v2412_v48 = vadd.f32 %v5630_v28, %v2411_v17  ;;  %3686 = vmatpush2.bf16.msra.mxu1 %v4997_v61 }
 0x12d   : > { %v5642_v0 = vpop.eup %5083  ;;  %v2523_v38 = vadd.f32 %v2494_v11, %v2487_v32  ;;  %3687 = vmatprep.subr.bf16.mxu1 %v5002_v10 }
 0x12e   : > { %v2501_v35 = vmul.f32 %v5642_v0, %v5642_v0  ;;  %v2515_v31 = vadd.f32 %v2514_v33, %v2500_v19  ;;  %v2421_v40 = vadd.f32 %v5642_v0, %v2420_v34 }
 0x12f   : > { %v5652_v37 = vpop.eup %5085  ;;  %3647 = vmatpush2.bf16.msra.mxu0 %v4952_v12  ;;  %v5005_v12 = vld [vmem:[%s5464_s22 + $0x274] ss:$8 sps:$4 sm:$0xff]  }
 0x130   : > { %v2413_v41 = vadd.f32 %v5652_v37, %v2412_v48  ;;  %v2507_v42 = vmul.f32 %v5652_v37, %v5652_v37  ;;  %v2524_v44 = vadd.f32 %v2523_v38, %v2501_v35  ;;  %3688 = vmatpush2.bf16.msra.mxu1 %v5000_v13  ;;  %3698 = vmatprep.subr.bf16.mxu0 %v5005_v12 }
 0x131   : > { %v5659_v43 = vpop.eup %5087 }
 0x132   : > { %v2414_v45 = vrot.slane %v2413_v41, 4  ;;  %v2516_v46 = vadd.f32 %v2515_v31, %v2507_v42  ;;  %v2422_v47 = vadd.f32 %v5659_v43, %v2421_v40  ;;  %v2508_v49 = vmul.f32 %v5659_v43, %v5659_v43  ;;  %v5698_v42 = vld [vmem:[%s5685_s29] sm:$0x7f] }
 0x133   : > { %v5676_v31 = vsub.s32 2, %v5563_v7  ;;  %v5679_v40 = vsub.s32 3, %v5563_v7  ;;  %v5710_v50 = vrot.slane %v5698_v42, %v5578_v16 }
 0x134   : > { %v2415_v52 = vadd.f32 %v2414_v45, %v2413_v41  ;;  %v2517_v53 = vrot.slane %v2516_v46, 4  ;;  %v2423_v54 = vrot.slane %v2422_v47, 4  ;;  %v2525_v55 = vadd.f32 %v2524_v44, %v2508_v49  ;;  %v5701_v44 = vld [vmem:[%s5691_s13] sm:$0x7f] }
 0x135   : > { %v5695_v41 = vrot.slane %v5582_v20, %v5676_v31  ;;  %v5705_v45 = vrot.slane %v5582_v20, %v5679_v40  ;;  %v5714_v51 = vrot.slane %v5701_v44, %v5578_v16 }
 0x136   : > { %v2416_v56 = vrot.slane %v2415_v52, 2  ;;  %v2518_v57 = vadd.f32 %v2517_v53, %v2516_v46  ;;  %v2424_v58 = vadd.f32 %v2423_v54, %v2422_v47  ;;  %v2526_v59 = vrot.slane %v2525_v55, 4 }
 0x138   : > { %v2417_v62 = vadd.f32 %v2416_v56, %v2415_v52  ;;  %v2519_v63 = vrot.slane %v2518_v57, 2  ;;  %v2425_v1 = vrot.slane %v2424_v58, 2  ;;  %v2527_v2 = vadd.f32 %v2526_v59, %v2525_v55 }
 0x139   : > { %v2688_v52 = vrot.slane %v5698_v42, %v5586_v22  ;;  %v5720_v55 = vrot.slane %v5701_v44, %v5586_v22 }
 0x13a   : > { %v2418_v3 = vrot.slane %v2417_v62, 1  ;;  %v2520_v4 = vadd.f32 %v2519_v63, %v2518_v57  ;;  %v2426_v8 = vadd.f32 %v2425_v1, %v2424_v58  ;;  %v2528_v9 = vrot.slane %v2527_v2, 2 }
 0x13c   : > { %v2419_v14 = vadd.f32 %v2418_v3, %v2417_v62  ;;  %v2521_v15 = vrot.slane %v2520_v4, 1  ;;  %v2427_v21 = vrot.slane %v2426_v8, 1  ;;  %v2529_v23 = vadd.f32 %v2528_v9, %v2527_v2 }
 0x13e   : > { %v5670_v25 = vmul.f32 0.03125, %v2419_v14  ;;  %v2522_v5 = vadd.f32 %v2521_v15, %v2520_v4  ;;  %v2530_v6 = vrot.slane %v2529_v23, 1  ;;  %v2428_v11 = vadd.f32 %v2427_v21, %v2426_v8 }
 0x140   : > { %v2581_v29 = vmul.f32 0.03125, %v2522_v5  ;;  %v2588_v30 = vmul.f32 %v5670_v25, %v5670_v25  ;;  %v2531_v17 = vadd.f32 %v2530_v6, %v2529_v23  ;;  %v2480_v19 = vmul.f32 0.03125, %v2428_v11 }
 0x141   : > { %v2609_v58 = vsub.f32 %v5620_v24, %v5670_v25  ;;  %v2616_v63 = vsub.f32 %v5616_v18, %v5670_v25  ;;  %v2623_v1 = vsub.f32 %v5630_v28, %v5670_v25  ;;  %v2630_v2 = vsub.f32 %v5652_v37, %v5670_v25 }
 0x142   : > { %v2595_v32 = vsub.f32 %v2581_v29, %v2588_v30  ;;  %v2582_v33 = vmul.f32 0.03125, %v2531_v17  ;;  %v2589_v34 = vmul.f32 %v2480_v19, %v2480_v19  ;;  %v2610_v62 = vsub.f32 %v5625_v27, %v2480_v19 }
 0x143   : > { %v2617_v4 = vsub.f32 %v5623_v26, %v2480_v19  ;;  %v2624_v24 = vsub.f32 %v5642_v0, %v2480_v19  ;;  %v2631_v8 = vsub.f32 %v5659_v43, %v2480_v19 }
 0x144   : > { %v2602_v48 = vmax.f32 %v2595_v32, 0.0  ;;  %v2596_v35 = vsub.f32 %v2582_v33, %v2589_v34 }
 0x146   : > { %v2637_v36 = vadd.f32 1e-05, %v2602_v48  ;;  %v2603_v38 = vmax.f32 %v2596_v35, 0.0 }
 0x148   : > { %5089 = vrsqrt.f32 %v2637_v36  ;;  %v2638_v39 = vadd.f32 1e-05, %v2603_v38 }
 0x14a   : > { %5091 = vrsqrt.f32 %v2638_v39 }
 0x151   : > { %v2107_v46 = vpop.f32.mrf.mxu0 }
 0x152   : > { %v2160_v47 = vpop.f32.mrf.mxu1  ;;  %v2108_v49 = vadd.f32 %v2107_v46, %v5695_v41 }
 0x153   : > { %v2109_v53 = vpop.f32.mrf.mxu0 }
 0x154   : > { %v2162_v54 = vpop.f32.mrf.mxu1  ;;  %v2161_v56 = vadd.f32 %v2160_v47, %v2108_v49  ;;  %v2110_v57 = vadd.f32 %v2109_v53, %v5705_v45 }
 0x155   : > { %v5090_v59 = vpop.eup %5089  ;;  %v2111_v60 = vpop.f32.mrf.mxu0 }
 0x156   : > { %v2164_v61 = vpop.f32.mrf.mxu1  ;;  %v2112_v3 = vadd.f32 %v2111_v60, %v5695_v41  ;;  %5093 = vtanh.f32 %v2161_v56  ;;  %v2163_v27 = vadd.f32 %v2162_v54, %v2110_v57  ;;  %v2651_v18 = vmul.f32 %v5090_v59, %v2609_v58 }
 0x157   : > { %v5092_v9 = vpop.eup %5091  ;;  %v2113_v10 = vpop.f32.mrf.mxu0  ;;  %v2658_v14 = vmul.f32 %v5090_v59, %v2616_v63  ;;  %v2665_v37 = vmul.f32 %v5090_v59, %v2623_v1  ;;  %v2672_v0 = vmul.f32 %v5090_v59, %v2630_v2 }
 0x158   : > { %v2166_v13 = vpop.f32.mrf.mxu1  ;;  %v2165_v15 = vadd.f32 %v2164_v61, %v2112_v3  ;;  %v2114_v28 = vadd.f32 %v2113_v10, %v5705_v45  ;;  %v2652_v21 = vmul.f32 %v5092_v9, %v2610_v62  ;;  %v2659_v5 = vmul.f32 %v5092_v9, %v2617_v4 }
 0x159   : > { %v2117_v23 = vpop.f32.mrf.mxu0  ;;  %v2666_v26 = vmul.f32 %v5092_v9, %v2624_v24  ;;  %v2673_v6 = vmul.f32 %v5092_v9, %v2631_v8  ;;  %v2716_v32 = vmul.f32 %v5710_v50, %v2651_v18  ;;  %v2723_v46 = vmul.f32 %v5710_v50, %v2658_v14 }
 0x15a   : > { %v2170_v25 = vpop.f32.mrf.mxu1  ;;  %5095 = vtanh.f32 %v2165_v15  ;;  %v2167_v43 = vadd.f32 %v2166_v13, %v2114_v28  ;;  %v2118_v11 = vadd.f32 %v2117_v23, %v5695_v41  ;;  %v2717_v12 = vmul.f32 %v2688_v52, %v2652_v21 }
 0x15b   : > { %5097 = vtanh.f32 %v2163_v27  ;;  %v2119_v29 = vpop.f32.mrf.mxu0  ;;  %v2724_v17 = vmul.f32 %v2688_v52, %v2659_v5  ;;  %v2731_v19 = vmul.f32 %v2688_v52, %v2666_v26  ;;  %v2738_v38 = vmul.f32 %v2688_v52, %v2673_v6 }
 0x15c   : > { %v2172_v30 = vpop.f32.mrf.mxu1  ;;  %5099 = vtanh.f32 %v2167_v43  ;;  %v2120_v33 = vadd.f32 %v2119_v29, %v5705_v45  ;;  %v2171_v34 = vadd.f32 %v2170_v25, %v2118_v11  ;;  %v2782_v48 = vadd.f32 %v5720_v55, %v2717_v12 }
 0x15d   : > { %v2121_v35 = vpop.f32.mrf.mxu0  ;;  %v2796_v39 = vadd.f32 %v5720_v55, %v2731_v19  ;;  %v2730_v47 = vmul.f32 %v5710_v50, %v2665_v37  ;;  %v2789_v58 = vadd.f32 %v5720_v55, %v2724_v17  ;;  %v2737_v60 = vmul.f32 %v5710_v50, %v2672_v0 }
 0x15e   : > { %v2174_v36 = vpop.f32.mrf.mxu1  ;;  %5101 = vtanh.f32 %v2171_v34  ;;  %v2122_v49 = vadd.f32 %v2121_v35, %v5695_v41  ;;  %v2173_v53 = vadd.f32 %v2172_v30, %v2120_v33  ;;  %v2817_v54 = vrot.slane %v2782_v48, 4 }
 0x15f   : > { %v2123_v56 = vpop.f32.mrf.mxu0  ;;  %v2903_v59 = vrot.slane %v2796_v39, 4  ;;  %v2781_v52 = vadd.f32 %v5714_v51, %v2716_v32  ;;  %v2803_v1 = vadd.f32 %v5720_v55, %v2738_v38  ;;  %v2795_v41 = vadd.f32 %v5714_v51, %v2730_v47 }
 0x160   : > { %v2176_v57 = vpop.f32.mrf.mxu1  ;;  %5103 = vtanh.f32 %v2173_v53  ;;  %v2124_v61 = vadd.f32 %v2123_v56, %v5705_v45  ;;  %v2175_v62 = vadd.f32 %v2174_v36, %v2122_v49  ;;  %v2831_v63 = vmax.f32 %v2782_v48, %v2817_v54 }
 0x161   : > { %v2917_v2 = vmax.f32 %v2796_v39, %v2903_v59  ;;  %v2816_v3 = vrot.slane %v2781_v52, 4  ;;  %v2788_v50 = vadd.f32 %v5714_v51, %v2723_v46  ;;  %v2902_v27 = vrot.slane %v2795_v41, 4 }
 0x162   : > { %5105 = vtanh.f32 %v2175_v62  ;;  %v2177_v4 = vadd.f32 %v2176_v57, %v2124_v61  ;;  %v2838_v24 = vmax.f32 %v2831_v63, %v2789_v58  ;;  %v2802_v55 = vadd.f32 %v5714_v51, %v2737_v60 }
 0x163   : > { %v2924_v8 = vmax.f32 %v2917_v2, %v2803_v1  ;;  %v2830_v9 = vmax.f32 %v2781_v52, %v2816_v3  ;;  %v5752_v10 = vpop.eup %5093  ;;  %v2916_v15 = vmax.f32 %v2795_v41, %v2902_v27 }
 0x164   : > { %5107 = vtanh.f32 %v2177_v4  ;;  %v2852_v45 = vsel %vm2844_vm0, %v2838_v24, -inf  ;;  %v2488_v12 = vmul.f32 %v5752_v10, %v5752_v10 }
 0x165   : > { %v2853_v13 = vrot.slane %v2852_v45, 4  ;;  %v2937_v18 = vsel %vm2844_vm0, %v2924_v8, -inf  ;;  %v2837_v14 = vmax.f32 %v2830_v9, %v2788_v50  ;;  %v2923_v25 = vmax.f32 %v2916_v15, %v2802_v55 }
 0x166   : > { %v2938_v28 = vrot.slane %v2937_v18, 4 }
 0x167   : > { %v5757_v21 = vpop.eup %5095  ;;  %v2854_v37 = vmax.f32 %v2852_v45, %v2853_v13  ;;  %v2845_v23 = vsel %vm2844_vm0, %v2837_v14, -inf  ;;  %v2930_v11 = vsel %vm2844_vm0, %v2923_v25, -inf }
 0x168   : > { %v5760_v5 = vpop.eup %5097  ;;  %v2495_v26 = vmul.f32 %v5757_v21, %v5757_v21  ;;  %v2939_v6 = vmax.f32 %v2937_v18, %v2938_v28  ;;  %v2846_v0 = vrot.slane %v2845_v23, 4  ;;  %v2931_v34 = vrot.slane %v2930_v11, 4 }
 0x169   : > { %v5764_v51 = vpop.eup %5099  ;;  %v2855_v43 = vrot.slane %v2854_v37, 2  ;;  %v2489_v19 = vmul.f32 %v5760_v5, %v5760_v5  ;;  %v2429_v48 = vadd.f32 %v5757_v21, %v5752_v10 }
 0x16a   : > { %v2496_v29 = vmul.f32 %v5764_v51, %v5764_v51  ;;  %v2940_v30 = vrot.slane %v2939_v6, 2  ;;  %v2847_v33 = vmax.f32 %v2845_v23, %v2846_v0  ;;  %v2532_v35 = vadd.f32 %v2495_v26, %v2488_v12 }
 0x16b   : > { %v5771_v17 = vpop.eup %5101  ;;  %v2856_v32 = vmax.f32 %v2854_v37, %v2855_v43  ;;  %v2438_v46 = vadd.f32 %v5764_v51, %v5760_v5  ;;  %v2932_v53 = vmax.f32 %v2930_v11, %v2931_v34 }
 0x16c   : > { %v2502_v36 = vmul.f32 %v5771_v17, %v5771_v17  ;;  %v2941_v38 = vmax.f32 %v2939_v6, %v2940_v30  ;;  %v2848_v49 = vrot.slane %v2847_v33, 2  ;;  %v2541_v54 = vadd.f32 %v2496_v29, %v2489_v19 }
 0x16d   : > { %v5779_v39 = vpop.eup %5103  ;;  %v2857_v47 = vrot.slane %v2856_v32, 1  ;;  %v2430_v56 = vadd.f32 %v5771_v17, %v2429_v48  ;;  %v2933_v62 = vrot.slane %v2932_v53, 2 }
 0x16e   : > { %v2503_v57 = vmul.f32 %v5779_v39, %v5779_v39  ;;  %v2942_v58 = vrot.slane %v2941_v38, 1  ;;  %v2533_v60 = vadd.f32 %v2532_v35, %v2502_v36  ;;  %v2849_v61 = vmax.f32 %v2847_v33, %v2848_v49  ;;  %v5053_v33 = vld [vmem:[%s5464_s22 + $0x314] ss:$8 sps:$4 sm:$0xff]   ;;  %v5008_v49 = vld [vmem:[%s5464_s22 + $0x264] ss:$8 sps:$4 sm:$0xff]  }
 0x16f   : > { %v5786_v59 = vpop.eup %5105  ;;  %v2858_v52 = vmax.f32 %v2856_v32, %v2857_v47  ;;  %v2439_v63 = vadd.f32 %v5779_v39, %v2438_v46  ;;  %v2934_v8 = vmax.f32 %v2932_v53, %v2933_v62  ;;  %v5003_v46 = vld [vmem:[%s5464_s22 + $0x270] ss:$8 sps:$4 sm:$0xff]   ;;  %3751 = vmatprep.subr.bf16.mxu1 %v5053_v33  ;;  %v5006_v62 = vld [vmem:[%s5464_s22 + $0x260] ss:$8 sps:$4 sm:$0xff]   ;;  %v5842_v33 = vrot.slane %v5701_v44, %v5676_v31 }
 0x170   : > { %v2431_v1 = vadd.f32 %v5786_v59, %v2430_v56  ;;  %v2509_v2 = vmul.f32 %v5786_v59, %v5786_v59  ;;  %v2943_v41 = vmax.f32 %v2941_v38, %v2942_v58  ;;  %v2542_v4 = vadd.f32 %v2541_v54, %v2503_v57 }
 0x171   : > { %v5792_v3 = vpop.eup %5107  ;;  %v2850_v24 = vrot.slane %v2849_v61, 1  ;;  %v2935_v18 = vrot.slane %v2934_v8, 1 }
 0x172   : > { %v2432_v50 = vrot.slane %v2431_v1, 4  ;;  %v2534_v9 = vadd.f32 %v2533_v60, %v2509_v2  ;;  %v2440_v27 = vadd.f32 %v5792_v3, %v2439_v63  ;;  %v2510_v45 = vmul.f32 %v5792_v3, %v5792_v3  ;;  %v5011_v63 = vld [vmem:[%s5464_s22 + $0x254] ss:$8 sps:$4 sm:$0xff]  }
 0x173   : > { %v2981_v55 = vsel %vm2979_vm1, %v2858_v52, %v2943_v41  ;;  %v2851_v13 = vmax.f32 %v2849_v61, %v2850_v24  ;;  %v2936_v25 = vmax.f32 %v2934_v8, %v2935_v18 }
 0x174   : > { %v2433_v14 = vadd.f32 %v2432_v50, %v2431_v1  ;;  %v2535_v15 = vrot.slane %v2534_v9, 4  ;;  %v2441_v28 = vrot.slane %v2440_v27, 4  ;;  %v2543_v37 = vadd.f32 %v2542_v4, %v2510_v45 }
 0x175   : > { %v2988_v23 = vmax.f32 %v2981_v55, 0.0  ;;  %v2980_v12 = vsel %vm2979_vm1, %v2851_v13, %v2936_v25  ;;  %v5020_v25 = vld [vmem:[%s5464_s22 + $0x224] ss:$8 sps:$4 sm:$0xff]  }
 0x176   : > { %v2434_v26 = vrot.slane %v2433_v14, 2  ;;  %v2536_v6 = vadd.f32 %v2535_v15, %v2534_v9  ;;  %v2442_v0 = vadd.f32 %v2441_v28, %v2440_v27  ;;  %v2544_v43 = vrot.slane %v2543_v37, 4  ;;  %v5009_v9 = vld [vmem:[%s5464_s22 + $0x250] ss:$8 sps:$4 sm:$0xff]   ;;  %v5014_v27 = vld [vmem:[%s5464_s22 + $0x244] ss:$8 sps:$4 sm:$0xff]  }
 0x177   : > { %v2995_v11 = vpack.c.bf16 %v2988_v23, %v2988_v23  ;;  %v2987_v34 = vmax.f32 %v2980_v12, 0.0  ;;  %v5017_v15 = vld [vmem:[%s5464_s22 + $0x234] ss:$8 sps:$4 sm:$0xff]   ;;  %v5015_v23 = vld [vmem:[%s5464_s22 + $0x230] ss:$8 sps:$4 sm:$0xff]  }
 0x178   : > { %v2435_v29 = vadd.f32 %v2434_v26, %v2433_v14  ;;  %v2537_v30 = vrot.slane %v2536_v6, 2  ;;  %v2443_v19 = vrot.slane %v2442_v0, 2  ;;  %v2545_v32 = vadd.f32 %v2544_v43, %v2543_v37  ;;  %v5012_v14 = vld [vmem:[%s5464_s22 + $0x240] ss:$8 sps:$4 sm:$0xff]   ;;  %v5023_v43 = vld [vmem:[%s5464_s22 + $0x214] ss:$8 sps:$4 sm:$0xff]  }
 0x179   : > { %3648 = vmatprep.mubr.bf16.mxu0 %v2995_v11  ;;  %v2994_v47 = vpack.c.bf16 %v2987_v34, %v2987_v34  ;;  %v5817_v37 = vsub.s32 4, %v5563_v7  ;;  %v5822_v26 = vsub.s32 5, %v5563_v7  ;;  %v2696_v34 = vrot.slane %v5698_v42, %v5679_v40 }
 0x17a   : > { %v2436_v48 = vrot.slane %v2435_v29, 1  ;;  %v2538_v35 = vadd.f32 %v2537_v30, %v2536_v6  ;;  %v2444_v36 = vadd.f32 %v2443_v19, %v2442_v0  ;;  %v2546_v38 = vrot.slane %v2545_v32, 2  ;;  %v5018_v0 = vld [vmem:[%s5464_s22 + $0x220] ss:$8 sps:$4 sm:$0xff]   ;;  %v5021_v19 = vld [vmem:[%s5464_s22 + $0x210] ss:$8 sps:$4 sm:$0xff]  }
 0x17b   : > { %3649 = vmatmul.mubr.bf16.vlgmr.msra.gmra.mxu0 %v2994_v47  ;;  %v5826_v6 = vrot.slane %v5582_v20, %v5817_v37  ;;  %v5832_v11 = vrot.slane %v5582_v20, %v5822_v26 }
 0x17c   : > { %v2437_v53 = vadd.f32 %v2436_v48, %v2435_v29  ;;  %v2539_v54 = vrot.slane %v2538_v35, 1  ;;  %v2445_v56 = vrot.slane %v2444_v36, 1  ;;  %v2547_v57 = vadd.f32 %v2546_v38, %v2545_v32  ;;  %3699 = vmatpush1.bf16.msra.mxu0 %v5003_v46 }
 0x17d   : > { %3700 = vmatprep.subr.bf16.mxu0 %v5008_v49  ;;  %v5838_v32 = vrot.slane %v5698_v42, %v5676_v31 }
 0x17e   : > { %v5802_v58 = vmul.f32 0.03125, %v2437_v53  ;;  %v2540_v60 = vadd.f32 %v2539_v54, %v2538_v35  ;;  %v2548_v52 = vrot.slane %v2547_v57, 1  ;;  %v2446_v61 = vadd.f32 %v2445_v56, %v2444_v36  ;;  %v5026_v35 = vld [vmem:[%s5464_s22 + $0x204] ss:$8 sps:$4 sm:$0xff]  }
 0x17f   : > { %v5849_v36 = vrot.slane %v5701_v44, %v5679_v40 }
 0x180   : > { %v2583_v1 = vmul.f32 0.03125, %v2540_v60  ;;  %v2590_v2 = vmul.f32 %v5802_v58, %v5802_v58  ;;  %v2549_v41 = vadd.f32 %v2548_v52, %v2547_v57  ;;  %v5808_v4 = vmul.f32 0.03125, %v2446_v61  ;;  %3701 = vmatpush1.bf16.msra.mxu0 %v5006_v62 }
 0x181   : > { %3702 = vmatprep.subr.bf16.mxu0 %v5011_v63  ;;  %v2611_v47 = vsub.f32 %v5752_v10, %v5802_v58  ;;  %v2618_v56 = vsub.f32 %v5757_v21, %v5802_v58  ;;  %v2625_v40 = vsub.f32 %v5771_v17, %v5802_v58  ;;  %v2632_v57 = vsub.f32 %v5786_v59, %v5802_v58  ;;  %v5024_v21 = vld [vmem:[%s5464_s22 + $0x200] ss:$8 sps:$4 sm:$0xff]   ;;  %v5029_v58 = vld [vmem:[%s5464_s22 + $0x2f4] ss:$8 sps:$4 sm:$0xff]  }
 0x182   : > { %v2597_v24 = vsub.f32 %v2583_v1, %v2590_v2  ;;  %v2584_v8 = vmul.f32 0.03125, %v2549_v41  ;;  %v2591_v50 = vmul.f32 %v5808_v4, %v5808_v4  ;;  %v2612_v54 = vsub.f32 %v5760_v5, %v5808_v4 }
 0x183   : > { %v2619_v10 = vsub.f32 %v5764_v51, %v5808_v4  ;;  %v2626_v52 = vsub.f32 %v5779_v39, %v5808_v4  ;;  %v2633_v5 = vsub.f32 %v5792_v3, %v5808_v4 }
 0x184   : > { %v2604_v45 = vmax.f32 %v2597_v24, 0.0  ;;  %v2598_v55 = vsub.f32 %v2584_v8, %v2591_v50  ;;  %3703 = vmatpush1.bf16.msra.mxu0 %v5009_v9 }
 0x185   : > { %3704 = vmatprep.subr.bf16.mxu0 %v5014_v27 }
 0x186   : > { %v2639_v13 = vadd.f32 1e-05, %v2604_v45  ;;  %v2605_v18 = vmax.f32 %v2598_v55, 0.0 }
 0x188   : > { %5109 = vrsqrt.f32 %v2639_v13  ;;  %v2640_v28 = vadd.f32 1e-05, %v2605_v18  ;;  %3705 = vmatpush1.bf16.msra.mxu0 %v5012_v14  ;;  %v5027_v13 = vld [vmem:[%s5464_s22 + $0x2f0] ss:$8 sps:$4 sm:$0xff]  }
 0x189   : > { %3706 = vmatprep.subr.bf16.mxu0 %v5017_v15 }
 0x18a   : > { %5111 = vrsqrt.f32 %v2640_v28 }
 0x18c   : > { %3707 = vmatpush1.bf16.msra.mxu0 %v5015_v23 }
 0x18d   : > { %3708 = vmatprep.subr.bf16.mxu0 %v5020_v25  ;;  %v5032_v25 = vld [vmem:[%s5464_s22 + $0x2e4] ss:$8 sps:$4 sm:$0xff]  }
 0x190   : > { %3709 = vmatpush1.bf16.msra.mxu0 %v5018_v0 }
 0x191   : > { %v2213_v12 = vpop.f32.mrf.mxu0  ;;  %3710 = vmatprep.subr.bf16.mxu0 %v5023_v43 }
 0x192   : > { %v2266_v29 = vpop.f32.mrf.mxu1  ;;  %v2214_v30 = vadd.f32 %v2213_v12, %v5826_v6 }
 0x193   : > { %v2215_v48 = vpop.f32.mrf.mxu0 }
 0x194   : > { %v2268_v20 = vpop.f32.mrf.mxu1  ;;  %v2267_v38 = vadd.f32 %v2266_v29, %v2214_v30  ;;  %v2216_v46 = vadd.f32 %v2215_v48, %v5832_v11  ;;  %3711 = vmatpush1.bf16.msra.mxu0 %v5021_v19 }
 0x195   : > { %v5110_v31 = vpop.eup %5109  ;;  %v2217_v49 = vpop.f32.mrf.mxu0  ;;  %3712 = vmatprep.subr.bf16.mxu0 %v5026_v35 }
 0x196   : > { %v2270_v53 = vpop.f32.mrf.mxu1  ;;  %v2218_v60 = vadd.f32 %v2217_v49, %v5826_v6  ;;  %5113 = vtanh.f32 %v2267_v38  ;;  %v2269_v17 = vadd.f32 %v2268_v20, %v2216_v46  ;;  %v2653_v1 = vmul.f32 %v5110_v31, %v2611_v47 }
 0x197   : > { %v5112_v61 = vpop.eup %5111  ;;  %v2219_v62 = vpop.f32.mrf.mxu0  ;;  %v2660_v59 = vmul.f32 %v5110_v31, %v2618_v56  ;;  %v2667_v39 = vmul.f32 %v5110_v31, %v2625_v40  ;;  %v2674_v9 = vmul.f32 %v5110_v31, %v2632_v57  ;;  %v5030_v31 = vld [vmem:[%s5464_s22 + $0x2e0] ss:$8 sps:$4 sm:$0xff]   ;;  %v5035_v57 = vld [vmem:[%s5464_s22 + $0x2d4] ss:$8 sps:$4 sm:$0xff]  }
 0x198   : > { %v2272_v63 = vpop.f32.mrf.mxu1  ;;  %v2271_v2 = vadd.f32 %v2270_v53, %v2218_v60  ;;  %v2220_v51 = vadd.f32 %v2219_v62, %v5832_v11  ;;  %v2654_v41 = vmul.f32 %v5112_v61, %v2612_v54  ;;  %v2661_v3 = vmul.f32 %v5112_v61, %v2619_v10  ;;  %3713 = vmatpush1.bf16.msra.mxu0 %v5024_v21  ;;  %v5033_v62 = vld [vmem:[%s5464_s22 + $0x2d0] ss:$8 sps:$4 sm:$0xff]  }
 0x199   : > { %v2223_v24 = vpop.f32.mrf.mxu0  ;;  %v2668_v4 = vmul.f32 %v5112_v61, %v2626_v52  ;;  %v2675_v50 = vmul.f32 %v5112_v61, %v2633_v5  ;;  %v2718_v23 = vmul.f32 %v5838_v32, %v2653_v1  ;;  %3714 = vmatprep.subr.bf16.mxu0 %v5029_v58  ;;  %v2725_v20 = vmul.f32 %v5838_v32, %v2660_v59  ;;  %v5038_v58 = vld [vmem:[%s5464_s22 + $0x2c4] ss:$8 sps:$4 sm:$0xff]  }
 0x19a   : > { %v2276_v8 = vpop.f32.mrf.mxu1  ;;  %5115 = vtanh.f32 %v2271_v2  ;;  %v2273_v27 = vadd.f32 %v2272_v63, %v2220_v51  ;;  %v2224_v45 = vadd.f32 %v2223_v24, %v5826_v6  ;;  %v2719_v55 = vmul.f32 %v2696_v34, %v2654_v41 }
 0x19b   : > { %5117 = vtanh.f32 %v2269_v17  ;;  %v2225_v18 = vpop.f32.mrf.mxu0  ;;  %v2726_v15 = vmul.f32 %v2696_v34, %v2661_v3  ;;  %v2733_v28 = vmul.f32 %v2696_v34, %v2668_v4  ;;  %v2740_v19 = vmul.f32 %v2696_v34, %v2675_v50  ;;  %v5036_v4 = vld [vmem:[%s5464_s22 + $0x2c0] ss:$8 sps:$4 sm:$0xff]  }
 0x19c   : > { %v2278_v14 = vpop.f32.mrf.mxu1  ;;  %5119 = vtanh.f32 %v2273_v27  ;;  %v2226_v0 = vadd.f32 %v2225_v18, %v5832_v11  ;;  %v2277_v43 = vadd.f32 %v2276_v8, %v2224_v45  ;;  %v2784_v12 = vadd.f32 %v5849_v36, %v2719_v55  ;;  %3715 = vmatpush2.bf16.msra.mxu0 %v5027_v13  ;;  %v5041_v55 = vld [vmem:[%s5464_s22 + $0x2b4] ss:$8 sps:$4 sm:$0xff]  }
 0x19d   : > { %v2227_v29 = vpop.f32.mrf.mxu0  ;;  %v2798_v48 = vadd.f32 %v5849_v36, %v2733_v28  ;;  %v2732_v35 = vmul.f32 %v5838_v32, %v2667_v39  ;;  %v2791_v54 = vadd.f32 %v5849_v36, %v2726_v15  ;;  %v2739_v34 = vmul.f32 %v5838_v32, %v2674_v9  ;;  %3716 = vmatprep.subr.bf16.mxu0 %v5032_v25 }
 0x19e   : > { %v2280_v30 = vpop.f32.mrf.mxu1  ;;  %5121 = vtanh.f32 %v2277_v43  ;;  %v2228_v38 = vadd.f32 %v2227_v29, %v5826_v6  ;;  %v2279_v46 = vadd.f32 %v2278_v14, %v2226_v0  ;;  %v2819_v47 = vrot.slane %v2784_v12, 4  ;;  %v5039_v29 = vld [vmem:[%s5464_s22 + $0x2b0] ss:$8 sps:$4 sm:$0xff]  }
 0x19f   : > { %v2229_v49 = vpop.f32.mrf.mxu0  ;;  %v2905_v56 = vrot.slane %v2798_v48, 4  ;;  %v2783_v40 = vadd.f32 %v5842_v33, %v2718_v23  ;;  %v2805_v52 = vadd.f32 %v5849_v36, %v2740_v19  ;;  %v2797_v21 = vadd.f32 %v5842_v33, %v2732_v35 }
 0x1a0   : > { %v2282_v53 = vpop.f32.mrf.mxu1  ;;  %5123 = vtanh.f32 %v2279_v46  ;;  %v2230_v60 = vadd.f32 %v2229_v49, %v5832_v11  ;;  %v2281_v6 = vadd.f32 %v2280_v30, %v2228_v38  ;;  %v2833_v10 = vmax.f32 %v2784_v12, %v2819_v47  ;;  %3717 = vmatpush2.bf16.msra.mxu0 %v5030_v31  ;;  %v5044_v38 = vld [vmem:[%s5464_s22 + $0x2a4] ss:$8 sps:$4 sm:$0xff]  }
 0x1a1   : > { %v2919_v5 = vmax.f32 %v2798_v48, %v2905_v56  ;;  %v2818_v61 = vrot.slane %v2783_v40, 4  ;;  %v2790_v1 = vadd.f32 %v5842_v33, %v2725_v20  ;;  %v2904_v11 = vrot.slane %v2797_v21, 4  ;;  %3718 = vmatprep.subr.bf16.mxu0 %v5035_v57 }
 0x1a2   : > { %5125 = vtanh.f32 %v2281_v6  ;;  %v2283_v17 = vadd.f32 %v2282_v53, %v2230_v60  ;;  %v2840_v32 = vmax.f32 %v2833_v10, %v2791_v54  ;;  %v2804_v51 = vadd.f32 %v5842_v33, %v2739_v34  ;;  %v5042_v10 = vld [vmem:[%s5464_s22 + $0x2a0] ss:$8 sps:$4 sm:$0xff]  }
 0x1a3   : > { %v2926_v63 = vmax.f32 %v2919_v5, %v2805_v52  ;;  %v2832_v59 = vmax.f32 %v2783_v40, %v2818_v61  ;;  %v5893_v2 = vpop.eup %5113  ;;  %v2918_v8 = vmax.f32 %v2797_v21, %v2904_v11  ;;  %v5915_v43 = vsub.s32 6, %v5563_v7 }
 0x1a4   : > { %5127 = vtanh.f32 %v2283_v17  ;;  %v2866_v36 = vsel %vm2844_vm0, %v2840_v32, -inf  ;;  %3719 = vmatpush2.bf16.msra.mxu0 %v5033_v62  ;;  %v2490_v25 = vmul.f32 %v5893_v2, %v5893_v2  ;;  %v5047_v32 = vld [vmem:[%s5464_s22 + $0x294] ss:$8 sps:$4 sm:$0xff]  }
 0x1a5   : > { %v2867_v41 = vrot.slane %v2866_v36, 4  ;;  %v2951_v39 = vsel %vm2844_vm0, %v2926_v63, -inf  ;;  %v2839_v24 = vmax.f32 %v2832_v59, %v2790_v1  ;;  %v2925_v45 = vmax.f32 %v2918_v8, %v2804_v51  ;;  %3720 = vmatprep.subr.bf16.mxu0 %v5038_v58 }
 0x1a6   : > { %v2952_v3 = vrot.slane %v2951_v39, 4 }
 0x1a7   : > { %v5899_v50 = vpop.eup %5115  ;;  %v2868_v9 = vmax.f32 %v2866_v36, %v2867_v41  ;;  %v2859_v27 = vsel %vm2844_vm0, %v2839_v24, -inf  ;;  %v2944_v23 = vsel %vm2844_vm0, %v2925_v45, -inf }
 0x1a8   : > { %v5903_v13 = vpop.eup %5117  ;;  %v2497_v33 = vmul.f32 %v5899_v50, %v5899_v50  ;;  %v2953_v18 = vmax.f32 %v2951_v39, %v2952_v3  ;;  %v2860_v14 = vrot.slane %v2859_v27, 4  ;;  %3721 = vmatpush2.bf16.msra.mxu0 %v5036_v4  ;;  %v2945_v35 = vrot.slane %v2944_v23, 4 }
 0x1a9   : > { %v5907_v15 = vpop.eup %5119  ;;  %v2869_v28 = vrot.slane %v2868_v9, 2  ;;  %v2491_v19 = vmul.f32 %v5903_v13, %v5903_v13  ;;  %3722 = vmatprep.subr.bf16.mxu0 %v5041_v55  ;;  %v2447_v46 = vadd.f32 %v5899_v50, %v5893_v2 }
 0x1aa   : > { %v2498_v0 = vmul.f32 %v5907_v15, %v5907_v15  ;;  %v2954_v12 = vrot.slane %v2953_v18, 2  ;;  %v2861_v20 = vmax.f32 %v2859_v27, %v2860_v14  ;;  %v2550_v47 = vadd.f32 %v2497_v33, %v2490_v25  ;;  %v5159_v27 = vld [vmem:[%s5573_s26] sm:$0x7f] }
 0x1ab   : > { %v5918_v30 = vpop.eup %5121  ;;  %v2870_v48 = vmax.f32 %v2868_v9, %v2869_v28  ;;  %v2456_v53 = vadd.f32 %v5907_v15, %v5903_v13  ;;  %v2946_v34 = vmax.f32 %v2944_v23, %v2945_v35  ;;  %v5045_v9 = vld [vmem:[%s5464_s22 + $0x290] ss:$8 sps:$4 sm:$0xff]   ;;  %v5950_v45 = vrot.slane %v5159_v27, %v5915_v43  ;;  %v5050_v23 = vld [vmem:[%s5464_s22 + $0x284] ss:$8 sps:$4 sm:$0xff]  }
 0x1ac   : > { %v2504_v7 = vmul.f32 %v5918_v30, %v5918_v30  ;;  %v2955_v31 = vmax.f32 %v2953_v18, %v2954_v12  ;;  %v2862_v56 = vrot.slane %v2861_v20, 2  ;;  %v2559_v40 = vadd.f32 %v2498_v0, %v2491_v19  ;;  %3723 = vmatpush2.bf16.msra.mxu0 %v5039_v29 }
 0x1ad   : > { %v5927_v49 = vpop.eup %5123  ;;  %v2871_v54 = vrot.slane %v2870_v48, 1  ;;  %v2448_v57 = vadd.f32 %v5918_v30, %v2447_v46  ;;  %v2947_v17 = vrot.slane %v2946_v34, 2  ;;  %3724 = vmatprep.subr.bf16.mxu0 %v5044_v38 }
 0x1ae   : > { %v2505_v60 = vmul.f32 %v5927_v49, %v5927_v49  ;;  %v2956_v6 = vrot.slane %v2955_v31, 1  ;;  %v2551_v5 = vadd.f32 %v2550_v47, %v2504_v7  ;;  %v2863_v61 = vmax.f32 %v2861_v20, %v2862_v56 }
 0x1af   : > { %v5935_v52 = vpop.eup %5125  ;;  %v2872_v21 = vmax.f32 %v2870_v48, %v2871_v54  ;;  %v2457_v62 = vadd.f32 %v5927_v49, %v2456_v53  ;;  %v2948_v39 = vmax.f32 %v2946_v34, %v2947_v17  ;;  %v5048_v53 = vld [vmem:[%s5464_s22 + $0x280] ss:$8 sps:$4 sm:$0xff]  }
 0x1b0   : > { %v2449_v63 = vadd.f32 %v5935_v52, %v2448_v57  ;;  %v2511_v1 = vmul.f32 %v5935_v52, %v5935_v52  ;;  %v2957_v59 = vmax.f32 %v2955_v31, %v2956_v6  ;;  %v2560_v58 = vadd.f32 %v2559_v40, %v2505_v60  ;;  %3725 = vmatpush2.bf16.msra.mxu0 %v5042_v10 }
 0x1b1   : > { %v5942_v11 = vpop.eup %5127  ;;  %v4501_v36 = vpop.f32.mrf.mxu0  ;;  %v2864_v41 = vrot.slane %v2863_v61, 1  ;;  %v2949_v28 = vrot.slane %v2948_v39, 1  ;;  %3726 = vmatprep.subr.bf16.mxu0 %v5047_v32 }
 0x1b2   : > { %v4529_v51 = vpop.f32.mrf.mxu1  ;;  %v2450_v24 = vrot.slane %v2449_v63, 4  ;;  %v2552_v8 = vadd.f32 %v2551_v5, %v2511_v1  ;;  %v2458_v3 = vadd.f32 %v5942_v11, %v2457_v62  ;;  %v2512_v4 = vmul.f32 %v5942_v11, %v5942_v11 }
 0x1b3   : > { %v4502_v55 = vpop.f32.mrf.mxu0  ;;  %v2983_v18 = vsel %vm2979_vm1, %v2872_v21, %v2957_v59  ;;  %v2865_v14 = vmax.f32 %v2863_v61, %v2864_v41  ;;  %v2950_v38 = vmax.f32 %v2948_v39, %v2949_v28 }
 0x1b4   : > { %v4530_v33 = vpop.f32.mrf.mxu1  ;;  %v2451_v25 = vadd.f32 %v2450_v24, %v2449_v63  ;;  %v2553_v0 = vrot.slane %v2552_v8, 4  ;;  %v2459_v12 = vrot.slane %v2458_v3, 4  ;;  %v2561_v29 = vadd.f32 %v2560_v58, %v2512_v4  ;;  %3727 = vmatpush2.bf16.msra.mxu0 %v5045_v9  ;;  %v5056_v4 = vld [vmem:[%s5464_s22 + $0x304] ss:$8 sps:$4 sm:$0xff]  }
 0x1b5   : > { %v4503_v19 = vadd.f32 %v4502_v55, %v4501_v36  ;;  %v4504_v48 = vpop.f32.mrf.mxu0  ;;  %v2990_v35 = vmax.f32 %v2983_v18, 0.0  ;;  %v4531_v56 = vadd.f32 %v4530_v33, %v4529_v51  ;;  %v2982_v60 = vsel %vm2979_vm1, %v2865_v14, %v2950_v38  ;;  %3728 = vmatprep.subr.bf16.mxu0 %v5050_v23  ;;  %v5051_v51 = vld [vmem:[%s5464_s22 + $0x310] ss:$8 sps:$4 sm:$0xff]  }
 0x1b6   : > { %v4532_v20 = vpop.f32.mrf.mxu1  ;;  %v2452_v46 = vrot.slane %v2451_v25, 2  ;;  %v2554_v47 = vadd.f32 %v2553_v0, %v2552_v8  ;;  %v2460_v7 = vadd.f32 %v2459_v12, %v2458_v3  ;;  %v2562_v31 = vrot.slane %v2561_v29, 4 }
 0x1b7   : > { %v2320_v54 = vadd.f32 %v4503_v19, %v5950_v45  ;;  %v2997_v34 = vpack.c.bf16 %v2990_v35, %v2990_v35  ;;  %v4505_v40 = vpop.f32.mrf.mxu0  ;;  %v2989_v32 = vmax.f32 %v2982_v60, 0.0  ;;  %v5054_v19 = vld [vmem:[%s5464_s22 + $0x300] ss:$8 sps:$4 sm:$0xff]  }
 0x1b8   : > { %v4533_v57 = vpop.f32.mrf.mxu1  ;;  %v2453_v6 = vadd.f32 %v2452_v46, %v2451_v25  ;;  %v2555_v10 = vrot.slane %v2554_v47, 2  ;;  %v2461_v5 = vrot.slane %v2460_v7, 2  ;;  %v2563_v21 = vadd.f32 %v2562_v31, %v2561_v29  ;;  %3729 = vmatpush2.bf16.msra.mxu0 %v5048_v53 }
 0x1b9   : > { %v2369_v61 = vadd.f32 %v4531_v56, %v2320_v54  ;;  %3689 = vmatprep.mubr.bf16.mxu1 %v2997_v34  ;;  %v4506_v17 = vadd.f32 %v4505_v40, %v4504_v48  ;;  %v4507_v62 = vpop.f32.mrf.mxu0  ;;  %v4534_v39 = vadd.f32 %v4533_v57, %v4532_v20  ;;  %v2996_v24 = vpack.c.bf16 %v2989_v32, %v2989_v32 }
 0x1ba   : > { %v4535_v63 = vpop.f32.mrf.mxu1  ;;  %v2454_v1 = vrot.slane %v2453_v6, 1  ;;  %v2556_v59 = vadd.f32 %v2555_v10, %v2554_v47  ;;  %v2462_v58 = vadd.f32 %v2461_v5, %v2460_v7  ;;  %v2564_v36 = vrot.slane %v2563_v21, 2 }
 0x1bb   : > { %v2323_v41 = vadd.f32 %v4506_v17, %v5950_v45  ;;  %v4508_v8 = vpop.f32.mrf.mxu0  ;;  %5129 = vtanh.f32 %v2369_v61  ;;  %3690 = vmatmul.mubr.bf16.vlgmr.msra.gmra.mxu1 %v2996_v24  ;;  %v5170_v48 = vmov 0  }
 0x1bc   : > { %v4536_v3 = vpop.f32.mrf.mxu1  ;;  %v2455_v9 = vadd.f32 %v2454_v1, %v2453_v6  ;;  %v2557_v27 = vrot.slane %v2556_v59, 1  ;;  %v2463_v55 = vrot.slane %v2462_v58, 1  ;;  %v2565_v33 = vadd.f32 %v2564_v36, %v2563_v21  ;;  %3752 = vmatpush1.bf16.msra.mxu1 %v5051_v51  ;;  %3771 = vmatprep.mubr.bf16.mxu1 %v5170_v48 }
 0x1bd   : > { %v2372_v18 = vadd.f32 %v4534_v39, %v2323_v41  ;;  %v4509_v14 = vadd.f32 %v4508_v8, %v4507_v62  ;;  %v4510_v28 = vpop.f32.mrf.mxu0  ;;  %v4537_v35 = vadd.f32 %v4536_v3, %v4535_v63  ;;  %3753 = vmatprep.subr.bf16.mxu1 %v5056_v4  ;;  %v5988_v41 = vld [vmem:[%s5685_s29] sm:$0x7f] }
 0x1be   : > { %v4538_v23 = vpop.f32.mrf.mxu1  ;;  %v5960_v25 = vmul.f32 0.03125, %v2455_v9  ;;  %v2558_v0 = vadd.f32 %v2557_v27, %v2556_v59  ;;  %v2566_v12 = vrot.slane %v2565_v33, 1  ;;  %v2464_v29 = vadd.f32 %v2463_v55, %v2462_v58  ;;  %v5997_v3 = vld [vmem:[%s5691_s13] sm:$0x7f] }
 0x1bf   : > { %5131 = vtanh.f32 %v2372_v18  ;;  %v2328_v20 = vadd.f32 %v4509_v14, %v5950_v45  ;;  %v4511_v38 = vpop.f32.mrf.mxu0  ;;  %v2700_v59 = vrot.slane %v5698_v42, %v5817_v37  ;;  %v2765_v58 = vrot.slane %v5701_v44, %v5817_v37 }
 0x1c0   : > { %v4539_v46 = vpop.f32.mrf.mxu1  ;;  %v2585_v47 = vmul.f32 0.03125, %v2558_v0  ;;  %v2592_v7 = vmul.f32 %v5960_v25, %v5960_v25  ;;  %v2567_v31 = vadd.f32 %v2566_v12, %v2565_v33  ;;  %v4512_v53 = vadd.f32 %v4511_v38, %v4510_v28  ;;  %3754 = vmatpush1.bf16.msra.mxu1 %v5054_v19 }
 0x1c1   : > { %v2377_v54 = vadd.f32 %v4537_v35, %v2328_v20  ;;  %v5966_v56 = vmul.f32 0.03125, %v2464_v29  ;;  %v4540_v60 = vadd.f32 %v4539_v46, %v4538_v23  ;;  %v2704_v39 = vrot.slane %v5988_v41, %v5822_v26 }
 0x1c2   : > { %v2599_v34 = vsub.f32 %v2585_v47, %v2592_v7  ;;  %v2586_v40 = vmul.f32 0.03125, %v2567_v31  ;;  %v2331_v57 = vadd.f32 %v4512_v53, %v5950_v45  ;;  %v2769_v44 = vrot.slane %v5997_v3, %v5822_v26 }
 0x1c3   : > { %5133 = vtanh.f32 %v2377_v54  ;;  %v2593_v6 = vmul.f32 %v5966_v56, %v5966_v56  ;;  %v2614_v37 = vsub.f32 %v5903_v13, %v5966_v56  ;;  %v2613_v4 = vsub.f32 %v5893_v2, %v5960_v25 }
 0x1c4   : > { %v2606_v10 = vmax.f32 %v2599_v34, 0.0  ;;  %v2380_v5 = vadd.f32 %v4540_v60, %v2331_v57  ;;  %v2620_v9 = vsub.f32 %v5899_v50, %v5960_v25  ;;  %v2621_v33 = vsub.f32 %v5907_v15, %v5966_v56 }
 0x1c5   : > { %v2600_v21 = vsub.f32 %v2586_v40, %v2593_v6  ;;  %v2627_v26 = vsub.f32 %v5918_v30, %v5960_v25  ;;  %v2634_v2 = vsub.f32 %v5935_v52, %v5960_v25  ;;  %v2628_v23 = vsub.f32 %v5927_v49, %v5966_v56 }
 0x1c6   : > { %v2641_v61 = vadd.f32 1e-05, %v2606_v10  ;;  %5135 = vtanh.f32 %v2380_v5  ;;  %v2635_v15 = vsub.f32 %v5942_v11, %v5966_v56 }
 0x1c7   : > { %v2607_v17 = vmax.f32 %v2600_v21, 0.0 }
 0x1c8   : > { %5137 = vrsqrt.f32 %v2641_v61  ;;  %v5971_v62 = vpop.eup %5129 }
 0x1c9   : > { %v2642_v32 = vadd.f32 1e-05, %v2607_v17  ;;  %v2466_v51 = vsel %vm2465_vm2, %v5971_v62, 0.0  ;;  %v2492_v24 = vmul.f32 %v5971_v62, %v5971_v62 }
 0x1cb   : > { %5139 = vrsqrt.f32 %v2642_v32  ;;  %v2568_v0 = vsel %vm2465_vm2, %v2492_v24, 0.0 }
 0x1cc   : > { %v5973_v45 = vpop.eup %5131 }
 0x1cd   : > { %v2467_v63 = vsel %vm2465_vm2, %v5973_v45, 0.0  ;;  %v2499_v36 = vmul.f32 %v5973_v45, %v5973_v45 }
 0x1ce   : > { %v2468_v8 = vadd.f32 %v2467_v63, %v2466_v51 }
 0x1cf   : > { %v2569_v14 = vsel %vm2465_vm2, %v2499_v36, 0.0 }
 0x1d0   : > { %v5977_v1 = vpop.eup %5133  ;;  %v2570_v25 = vadd.f32 %v2569_v14, %v2568_v0 }
 0x1d1   : > { %v2469_v42 = vsel %vm2465_vm2, %v5977_v1, 0.0  ;;  %v2506_v55 = vmul.f32 %v5977_v1, %v5977_v1 }
 0x1d2   : > { %v2470_v18 = vadd.f32 %v2469_v42, %v2468_v8 }
 0x1d3   : > { %v6007_v27 = vpop.eup %5135  ;;  %v2571_v20 = vsel %vm2465_vm2, %v2506_v55, 0.0 }
 0x1d4   : > { %v2513_v13 = vmul.f32 %v6007_v27, %v6007_v27  ;;  %v2471_v50 = vsel %vm2465_vm2, %v6007_v27, 0.0  ;;  %v2572_v40 = vadd.f32 %v2571_v20, %v2570_v25 }
 0x1d5   : > { %v5138_v28 = vpop.eup %5137  ;;  %v2472_v30 = vadd.f32 %v2471_v50, %v2470_v18 }
 0x1d6   : > { %v2655_v12 = vmul.f32 %v5138_v28, %v2613_v4  ;;  %v2662_v29 = vmul.f32 %v5138_v28, %v2620_v9  ;;  %v2669_v19 = vmul.f32 %v5138_v28, %v2627_v26  ;;  %v2676_v48 = vmul.f32 %v5138_v28, %v2634_v2 }
 0x1d7   : > { %v2473_v52 = vrot.slane %v2472_v30, 4  ;;  %v2573_v35 = vsel %vm2465_vm2, %v2513_v13, 0.0 }
 0x1d8   : > { %v5140_v38 = vpop.eup %5139  ;;  %v2720_v46 = vmul.f32 %v2700_v59, %v2655_v12  ;;  %v2727_v47 = vmul.f32 %v2700_v59, %v2662_v29  ;;  %v2734_v49 = vmul.f32 %v2700_v59, %v2669_v19  ;;  %v2741_v7 = vmul.f32 %v2700_v59, %v2676_v48 }
 0x1d9   : > { %v2656_v31 = vmul.f32 %v5140_v38, %v2614_v37  ;;  %v2663_v11 = vmul.f32 %v5140_v38, %v2621_v33  ;;  %v2670_v53 = vmul.f32 %v5140_v38, %v2628_v23  ;;  %v2677_v54 = vmul.f32 %v5140_v38, %v2635_v15 }
 0x1da   : > { %v2785_v56 = vadd.f32 %v2765_v58, %v2720_v46  ;;  %v2799_v34 = vadd.f32 %v2765_v58, %v2734_v49  ;;  %v2792_v6 = vadd.f32 %v2765_v58, %v2727_v47  ;;  %v2806_v10 = vadd.f32 %v2765_v58, %v2741_v7 }
 0x1db   : > { %v2721_v57 = vmul.f32 %v2704_v39, %v2656_v31  ;;  %v2735_v60 = vmul.f32 %v2704_v39, %v2670_v53  ;;  %v2474_v61 = vadd.f32 %v2473_v52, %v2472_v30  ;;  %v2574_v17 = vadd.f32 %v2573_v35, %v2572_v40 }
 0x1dc   : > { %v2820_v5 = vrot.slane %v2785_v56, 4  ;;  %v2906_v21 = vrot.slane %v2799_v34, 4  ;;  %v2728_v32 = vmul.f32 %v2704_v39, %v2663_v11  ;;  %v2742_v63 = vmul.f32 %v2704_v39, %v2677_v54 }
 0x1dd   : > { %v2786_v36 = vadd.f32 %v2769_v44, %v2721_v57  ;;  %v2800_v51 = vadd.f32 %v2769_v44, %v2735_v60  ;;  %v2475_v8 = vrot.slane %v2474_v61, 2  ;;  %v2575_v42 = vrot.slane %v2574_v17, 4 }
 0x1de   : > { %v2834_v59 = vmax.f32 %v2785_v56, %v2820_v5  ;;  %v2920_v24 = vmax.f32 %v2799_v34, %v2906_v21  ;;  %v2793_v18 = vadd.f32 %v2769_v44, %v2728_v32  ;;  %v2807_v58 = vadd.f32 %v2769_v44, %v2742_v63 }
 0x1df   : > { %v2821_v37 = vrot.slane %v2786_v36, 4  ;;  %v2907_v4 = vrot.slane %v2800_v51, 4  ;;  %v2476_v33 = vadd.f32 %v2475_v8, %v2474_v61  ;;  %v2576_v26 = vadd.f32 %v2575_v42, %v2574_v17 }
 0x1e0   : > { %v2841_v9 = vmax.f32 %v2834_v59, %v2792_v6  ;;  %v2927_v55 = vmax.f32 %v2920_v24, %v2806_v10 }
 0x1e1   : > { %v2835_v13 = vmax.f32 %v2786_v36, %v2821_v37  ;;  %v2921_v2 = vmax.f32 %v2800_v51, %v2907_v4  ;;  %v2477_v14 = vrot.slane %v2476_v33, 1  ;;  %v2577_v28 = vrot.slane %v2576_v26, 2 }
 0x1e2   : > { %v2873_v50 = vsel %vm2844_vm0, %v2841_v9, -inf  ;;  %v2958_v39 = vsel %vm2844_vm0, %v2927_v55, -inf  ;;  %v2708_v55 = vrot.slane %v5988_v41, %v5915_v43 }
 0x1e3   : > { %v2842_v23 = vmax.f32 %v2835_v13, %v2793_v18  ;;  %v2928_v15 = vmax.f32 %v2921_v2, %v2807_v58  ;;  %v2874_v30 = vrot.slane %v2873_v50, 4  ;;  %v2959_v0 = vrot.slane %v2958_v39, 4 }
 0x1e4   : > { %v2478_v12 = vadd.f32 %v2477_v14, %v2476_v33  ;;  %v2578_v29 = vadd.f32 %v2577_v28, %v2576_v26  ;;  %v2773_v2 = vrot.slane %v5997_v3, %v5915_v43 }
 0x1e5   : > { %v2880_v19 = vsel %vm2844_vm0, %v2842_v23, -inf  ;;  %v2965_v48 = vsel %vm2844_vm0, %v2928_v15, -inf  ;;  %v2875_v52 = vmax.f32 %v2873_v50, %v2874_v30  ;;  %v2960_v44 = vmax.f32 %v2958_v39, %v2959_v0 }
 0x1e6   : > { %v2881_v25 = vrot.slane %v2880_v19, 4  ;;  %v2966_v20 = vrot.slane %v2965_v48, 4  ;;  %v2485_v35 = vmul.f32 0.03125, %v2478_v12  ;;  %v2579_v38 = vrot.slane %v2578_v29, 1 }
 0x1e7   : > { %v2876_v46 = vrot.slane %v2875_v52, 2  ;;  %v2961_v47 = vrot.slane %v2960_v44, 2 }
 0x1e8   : > { %v2882_v49 = vmax.f32 %v2880_v19, %v2881_v25  ;;  %v2967_v7 = vmax.f32 %v2965_v48, %v2966_v20  ;;  %v2580_v31 = vadd.f32 %v2579_v38, %v2578_v29  ;;  %v2594_v11 = vmul.f32 %v2485_v35, %v2485_v35 }
 0x1e9   : > { %v2877_v53 = vmax.f32 %v2875_v52, %v2876_v46  ;;  %v2962_v54 = vmax.f32 %v2960_v44, %v2961_v47  ;;  %v2615_v33 = vsub.f32 %v5971_v62, %v2485_v35  ;;  %v2622_v26 = vsub.f32 %v5973_v45, %v2485_v35 }
 0x1ea   : > { %v2883_v56 = vrot.slane %v2882_v49, 2  ;;  %v2968_v34 = vrot.slane %v2967_v7, 2  ;;  %v2587_v40 = vmul.f32 0.03125, %v2580_v31  ;;  %v2629_v18 = vsub.f32 %v5977_v1, %v2485_v35 }
 0x1eb   : > { %v2878_v57 = vrot.slane %v2877_v53, 1  ;;  %v2963_v60 = vrot.slane %v2962_v54, 1  ;;  %v2636_v58 = vsub.f32 %v6007_v27, %v2485_v35 }
 0x1ec   : > { %v2884_v6 = vmax.f32 %v2882_v49, %v2883_v56  ;;  %v2969_v10 = vmax.f32 %v2967_v7, %v2968_v34  ;;  %v2601_v5 = vsub.f32 %v2587_v40, %v2594_v11 }
 0x1ed   : > { %v2879_v21 = vmax.f32 %v2877_v53, %v2878_v57  ;;  %v2964_v61 = vmax.f32 %v2962_v54, %v2963_v60  ;;  %v5057_v60 = vld [vmem:[%s6049_s17 + $0x78] sm:$0xff]  }
 0x1ee   : > { %v2885_v17 = vrot.slane %v2884_v6, 1  ;;  %v2970_v32 = vrot.slane %v2969_v10, 1  ;;  %v2608_v63 = vmax.f32 %v2601_v5, 0.0  ;;  %4541 = vmatprep.subr.bf16.mxu1 %v5057_v60  ;;  %v5059_v5 = vld [vmem:[%s6049_s17 + $0x70] sm:$0xff]  }
 0x1ef   : > { %v2984_v36 = vsel %vm2979_vm1, %v2879_v21, %v2964_v61  ;;  %v5060_v61 = vld [vmem:[%s6049_s17 + $0x30] sm:$0xff]  }
 0x1f0   : > { %v2886_v51 = vmax.f32 %v2884_v6, %v2885_v17  ;;  %v2971_v59 = vmax.f32 %v2969_v10, %v2970_v32  ;;  %v2643_v24 = vadd.f32 1e-05, %v2608_v63  ;;  %v2991_v42 = vmax.f32 %v2984_v36, 0.0  ;;  %v5058_v10 = vld [vmem:[%s6049_s17 + $0x38] sm:$0xff]   ;;  %v5061_v17 = vld [vmem:[%s6049_s17 + $0x68] sm:$0xff]   ;;  %v5063_v63 = vld [vmem:[%s6049_s17 + $0x60] sm:$0xff]  }
 0x1f1   : > { %v5062_v32 = vld [vmem:[%s6049_s17 + $0x28] sm:$0xff]   ;;  %v5064_v36 = vld [vmem:[%s6049_s17 + $0x20] sm:$0xff]  }
 0x1f2   : > { %v2985_v8 = vsel %vm2979_vm1, %v2886_v51, %v2971_v59  ;;  %5141 = vrsqrt.f32 %v2643_v24  ;;  %v2998_v9 = vpack.c.bf16 %v2991_v42, %v2991_v42  ;;  %v5065_v51 = vld [vmem:[%s6049_s17 + $0x58] sm:$0xff]   ;;  %v5067_v24 = vld [vmem:[%s6049_s17 + $0x50] sm:$0xff]   ;;  %v5069_v42 = vld [vmem:[%s6049_s17 + $0x48] sm:$0xff]  }
 0x1f3   : > { %v2992_v37 = vmax.f32 %v2985_v8, 0.0  ;;  %v5066_v59 = vld [vmem:[%s6049_s17 + $0x18] sm:$0xff]   ;;  %v5068_v8 = vld [vmem:[%s6049_s17 + $0x10] sm:$0xff]  }
 0x1f5   : > { %v2999_v4 = vpack.c.bf16 %v2992_v37, %v2992_v37  ;;  %v5070_v37 = vld [vmem:[%s6049_s17 + $0x8] sm:$0xff]  }
 0x1f7   : > { %3730 = vmatprep.mubr.bf16.mxu0 %v2999_v4  ;;  %v5071_v4 = vld [vmem:[%s6049_s17 + $0x40] sm:$0xff]  }
 0x1f8   : > { %3731 = vmatmul.mubr.bf16.vlgmr.msra.gmra.mxu0 %v2998_v9  ;;  %v5072_v9 = vld [vmem:[%s6049_s17] sm:$0xff]  }
 0x1ff   : > { %v5142_v13 = vpop.eup %5141 }
 0x200   : > { %v2657_v50 = vmul.f32 %v5142_v13, %v2615_v33  ;;  %v2664_v39 = vmul.f32 %v5142_v13, %v2622_v26  ;;  %v2671_v14 = vmul.f32 %v5142_v13, %v2629_v18  ;;  %v2678_v28 = vmul.f32 %v5142_v13, %v2636_v58 }
 0x202   : > { %v2722_v23 = vmul.f32 %v2708_v55, %v2657_v50  ;;  %v2736_v15 = vmul.f32 %v2708_v55, %v2671_v14  ;;  %v2729_v30 = vmul.f32 %v2708_v55, %v2664_v39  ;;  %v2743_v41 = vmul.f32 %v2708_v55, %v2678_v28  ;;  %v3101_v55 = vld [vmem:[%s460_s21] sm:$0x3] }
 0x203   : > { %v3106_v33 = vrot.slane %v3101_v55, %v5578_v16  ;;  %v3110_v26 = vrot.slane %v3101_v55, %v5586_v22 }
 0x204   : > { %v2787_v0 = vadd.f32 %v2773_v2, %v2722_v23  ;;  %v2801_v62 = vadd.f32 %v2773_v2, %v2736_v15  ;;  %v2794_v29 = vadd.f32 %v2773_v2, %v2729_v30  ;;  %v2808_v1 = vadd.f32 %v2773_v2, %v2743_v41 }
 0x206   : > { %v2822_v12 = vrot.slane %v2787_v0, 4  ;;  %v2908_v45 = vrot.slane %v2801_v62, 4 }
 0x208   : > { %v2836_v19 = vmax.f32 %v2787_v0, %v2822_v12  ;;  %v2922_v27 = vmax.f32 %v2801_v62, %v2908_v45 }
 0x20a   : > { %v2843_v48 = vmax.f32 %v2836_v19, %v2794_v29  ;;  %v2929_v52 = vmax.f32 %v2922_v27, %v2808_v1 }
 0x20c   : > { %v2888_v43 = vsel %vm2887_vm3, %v2843_v48, -inf  ;;  %v2972_v3 = vsel %vm2887_vm3, %v2929_v52, -inf }
 0x20d   : > { %v2889_v44 = vrot.slane %v2888_v43, 4  ;;  %v2973_v25 = vrot.slane %v2972_v3, 4 }
 0x20f   : > { %v2890_v20 = vmax.f32 %v2888_v43, %v2889_v44  ;;  %v2974_v35 = vmax.f32 %v2972_v3, %v2973_v25  ;;  %v4464_v44 = vld [vmem:[%s468_s24] ss:$0 sm:$0xff] }
 0x211   : > { %v2891_v38 = vrot.slane %v2890_v20, 2  ;;  %v2975_v46 = vrot.slane %v2974_v35, 2 }
 0x213   : > { %v2892_v47 = vmax.f32 %v2890_v20, %v2891_v38  ;;  %v2976_v49 = vmax.f32 %v2974_v35, %v2975_v46 }
 0x215   : > { %v2893_v7 = vrot.slane %v2892_v47, 1  ;;  %v2977_v31 = vrot.slane %v2976_v49, 1 }
 0x217   : > { %v2894_v11 = vmax.f32 %v2892_v47, %v2893_v7  ;;  %v2978_v53 = vmax.f32 %v2976_v49, %v2977_v31 }
 0x219   : > { %v2986_v54 = vsel %vm2979_vm1, %v2894_v11, %v2978_v53 }
 0x21a   : > { %v2993_v56 = vmax.f32 %v2986_v54, 0.0 }
 0x21c   : > { %v3000_v34 = vpack.c.bf16 %v2993_v56, %v2993_v56 }
 0x21e   : > { %4463 = vmatmul.mubr.msk.bf16.vlgmr.msra.gmra.mxu1 %vm2465_vm2, %v3000_v34 }
 0x21f   : > { %4542 = vmatpush3.bf16.msra.mxu1 %v5058_v10 }
 0x220   : > { %4543 = vmatprep.subr.bf16.mxu1 %v5059_v5 }
 0x223   : > { %4544 = vmatpush3.bf16.msra.mxu1 %v5060_v61 }
 0x224   : > { %4545 = vmatprep.subr.bf16.mxu1 %v5061_v17 }
 0x227   : > { %4546 = vmatpush3.bf16.msra.mxu1 %v5062_v32 }
 0x228   : > { %4547 = vmatprep.subr.bf16.mxu1 %v5063_v63 }
 0x22b   : > { %4548 = vmatpush3.bf16.msra.mxu1 %v5064_v36 }
 0x22c   : > { %4549 = vmatprep.subr.bf16.mxu1 %v5065_v51 }
 0x22f   : > { %4550 = vmatpush3.bf16.msra.mxu1 %v5066_v59 }
 0x230   : > { %4551 = vmatprep.subr.bf16.mxu1 %v5067_v24 }
 0x233   : > { %4552 = vmatpush3.bf16.msra.mxu1 %v5068_v8 }
 0x234   : > { %4553 = vmatprep.subr.bf16.mxu1 %v5069_v42 }
 0x237   : > { %4554 = vmatpush3.bf16.msra.mxu1 %v5070_v37 }
 0x238   : > { %4555 = vmatprep.subr.bf16.mxu1 %v5071_v4 }
 0x23b   : > { %v3650_v40 = vpop.f32.mrf.mxu0  ;;  %4556 = vmatpush3.bf16.msra.mxu1 %v5072_v9 }
 0x23c   : > { %v3651_v18 = vadd.f32 %v3650_v40, %v3106_v33 }
 0x23d   : > { %v3652_v57 = vpop.f32.mrf.mxu0 }
 0x23e   : > { %v3653_v13 = vadd.f32 %v3652_v57, %v3110_v26 }
 0x23f   : > { %v3654_v6 = vpop.f32.mrf.mxu0 }
 0x241   : > { %v3655_v21 = vpop.f32.mrf.mxu0 }
 0x27b   : > { %v3691_v58 = vpop.f32.mrf.mxu1 }
 0x27c   : > { %v3692_v2 = vadd.f32 %v3691_v58, %v3651_v18 }
 0x27d   : > { %v3693_v50 = vpop.f32.mrf.mxu1 }
 0x27e   : > { %v3694_v39 = vadd.f32 %v3693_v50, %v3653_v13 }
 0x27f   : > { %v3695_v14 = vpop.f32.mrf.mxu1 }
 0x281   : > { %v3696_v28 = vpop.f32.mrf.mxu1 }
 0x2b8   : > { %v3732_v23 = vpop.f32.mrf.mxu0 }
 0x2b9   : > { %v3733_v0 = vadd.f32 %v3732_v23, %v3692_v2 }
 0x2ba   : > { %v3734_v15 = vpop.f32.mrf.mxu0 }
 0x2bb   : > { %v3735_v12 = vadd.f32 %v3734_v15, %v3694_v39 }
 0x2bc   : > { %v3736_v30 = vpop.f32.mrf.mxu0 }
 0x2be   : > { %v3737_v41 = vpop.f32.mrf.mxu0 }
 0x2de   : > { %v3773_v62 = vpop.f32.mrf.mxu1 }
 0x2df   : > { %v3774_v45 = vadd.f32 %v3773_v62, %v3733_v0 }
 0x2e0   : > { %v3775_v16 = vpop.f32.mrf.mxu1 }
 0x2e1   : > { %v3776_v29 = vadd.f32 %v3775_v16, %v3735_v12  ;;  %5143 = vtanh.f32 %v3774_v45 }
 0x2e2   : > { %v3777_v22 = vpop.f32.mrf.mxu1 }
 0x2e3   : > { %5145 = vtanh.f32 %v3776_v29 }
 0x2e4   : > { %v3778_v1 = vpop.f32.mrf.mxu1 }
 0x2ee   : > { %v5144_v19 = vpop.eup %5143 }
 0x2ef   : > { %v3782_v52 = vpack.c.bf16 %v5144_v19, %v5144_v19 }
 0x2f0   : > { %v5146_v27 = vpop.eup %5145 }
 0x2f1   : > { %v3783_v48 = vpack.c.bf16 %v5146_v27, %v5146_v27 }
 0x2f3   : > { %3951 = vmatprep.mubr.bf16.mxu1 %v3783_v48 }
 0x2f4   : > { %3952 = vmatmul.mubr.bf16.vlgmr.msra.gmra.mxu1 %v3782_v52 }
 0x3b4   : > { %v4557_v43 = vpop.f32.mrf.mxu1 }
 0x3b6   : > { %v4558_v3 = vpop.f32.mrf.mxu1 }
 0x3b7   : > { %v4559_v25 = vadd.f32 %v4558_v3, %v4557_v43 }
 0x3b8   : > { %v4560_v20 = vpop.f32.mrf.mxu1 }
 0x3b9   : > { %v3954_v35 = vadd.f32 %v4559_v25, %v4464_v44 }
 0x3ba   : > { %v4561_v38 = vpop.f32.mrf.mxu1 }
 0x3bb   : > { %v3960_v46 = vsel %vm3959_vm4, %v3954_v35, -inf }
 0x3bc   : > { %3961 = vmax.xlane.f32.xlu0 %v3960_v46 }
 0x445   : > { %v3962_v47 = vpop.xlane.xlu0 %3961 }
 0x446   : > { %v3963_v49 = vsub.f32 %v3954_v35, %v3962_v47 }
 0x448   : > { %v3964_v7 = vmul.f32 1.442695, %v3963_v49 }
 0x44a   : > { %5147 = vpow2.f32 %v3964_v7 }
 0x457   : > { %v5148_v31 = vpop.eup %5147 }
 0x458   : > { %v3966_v11 = vsel %vm3959_vm4, %v5148_v31, 0.0 }
 0x459   : > { %3967 = vadd.xlane.f32.xlu0 %v3966_v11 }
 0x4e2   : > { %v3968_v53 = vpop.xlane.xlu0 %3967 }
 0x4e3   : > { %5149 = vrcp.f32 %v3968_v53 }
 0x4f0   : > { %v5150_v54 = vpop.eup %5149 }
 0x4f1   : > { %v3970_v56 = vmul.f32 %v5150_v54, %v5148_v31 }
 0x4f3   : > { %3971 = vst.msk [vmem:[%s472_s27] sm:$0x3] %vm3959_vm4, %v3970_v56 }
 0x4f4 PF: > { %s19_s30 = sadd.s32 1, %s5168_s30  }
 0x4f5   : > { %p16_p4 = scmp.ge.s32.totalorder %s19_s30, 7  }
 0x4f7   :  { %18 = sbr.rel (!%p16_p4) target bundleno = 1 (0x1), region = 110 }

</bundles_post_ra>
